<compile_context>
chip_gen: v5e
topology: v5e:2x2
jax: 0.10.0
libtpu: 0.0.40
codegen_flags: <defaults>
</compile_context>

<pallas_src>
import functools

import numpy as np
import jax
import jax.numpy as jnp
from jax import lax
from jax.experimental import pallas as pl
from jax.experimental.pallas import tpu as pltpu

NEG_INF = -1e30   # finite stand-in for -inf in the additive attention mask
LN_EPS = 1e-5     # PyTorch nn.LayerNorm default


def _layernorm(x, g, b):
    mu = jnp.mean(x, axis=-1, keepdims=True)
    var = jnp.mean((x - mu) ** 2, axis=-1, keepdims=True)
    return (x - mu) * lax.rsqrt(var + LN_EPS) * g + b


# ----------------------------------------------------------------------------
# Kernel: grid = (B, kv_tiles).  Per batch element the self-attention block and
# the folded cross-attention query matrix are computed once (t == 0) and kept in
# VMEM scratch; every KV tile then does two bf16 GEMMs + online softmax.
# ----------------------------------------------------------------------------
def _focused_decoder_layer_kernel(
        # inputs
        tgt_ref, qpos_ref, kvpT_ref, src_ref, coords_ref, boxes_ref,
        sa_wt_ref, sa_b_ref, ca_w_ref, small_ref, l1wt_ref, l1b_ref, l2wt_ref,
        # outputs + scratch
        *refs, num_heads, return_weights, bf16_exp):
    if return_weights:
        out_ref, w_ref, m_out_ref, l_out_ref = refs[:4]
        x_sc, a_sc, m_sc, l_sc, acc_sc = refs[4:]
    else:
        out_ref = refs[0]
        w_ref = m_out_ref = l_out_ref = None
        x_sc, a_sc, m_sc, l_sc, acc_sc = refs[1:]

    Nq, C = tgt_ref.shape[1], tgt_ref.shape[2]
    H = num_heads
    dh = C // H
    HNq = H * Nq
    scale = dh ** -0.5
    t = pl.program_id(1)
    bf16 = jnp.bfloat16

    # packed small-vector rows: 0 sa_ob, 1 n2g, 2 n2b, 3 ca_pb, 4 n1g, 5 n1b,
    #                           6 l2b, 7 n3g, 8 n3b

    # --- once per batch element: self-attn + norm2, folded cross-attn query ---
    @pl.when(t == 0)
    def _init():
        tgt = tgt_ref[0]
        qpos = qpos_ref[0]
        qin = tgt + qpos
        qin_b = qin.astype(bf16)
        # nn.MultiheadAttention: q = k = tgt + query_pos, v = tgt.  bf16 weight
        # GEMMs with f32 accumulation.
        q = jnp.dot(qin_b, sa_wt_ref[0], preferred_element_type=jnp.float32) + sa_b_ref[0:1, :]
        k = jnp.dot(qin_b, sa_wt_ref[1], preferred_element_type=jnp.float32) + sa_b_ref[1:2, :]
        v = (jnp.dot(tgt.astype(bf16), sa_wt_ref[2], preferred_element_type=jnp.float32)
             + sa_b_ref[2:3, :])
        # Per-head loop: O(Nq^2*C) once per batch element, OFF the KV hot path
        # (that path is fully head-batched via the folded-weight trick below).
        # TODO(synk): fold into one batched dot_general once Mosaic 3-D major-dim
        # transposes are verified on all target shapes.
        ctx_parts = []
        for h in range(H):
            lo = h * dh
            qh = q[:, lo:lo + dh]
            kh = k[:, lo:lo + dh]
            vh = v[:, lo:lo + dh]
            s = lax.dot_general(qh, kh, (((1,), (1,)), ((), ())),
                                preferred_element_type=jnp.float32) * scale
            s = s - jnp.max(s, axis=-1, keepdims=True)
            e = jnp.exp(s)
            p = e / jnp.sum(e, axis=-1, keepdims=True)
            ctx_parts.append(jnp.dot(p, vh, preferred_element_type=jnp.float32))
        ctx = jnp.concatenate(ctx_parts, axis=-1)
        sa_out = (jnp.dot(ctx.astype(bf16), sa_wt_ref[3],
                          preferred_element_type=jnp.float32) + small_ref[0:1, :])
        x = _layernorm(tgt + sa_out, small_ref[1:2, :], small_ref[2:3, :])
        x_sc[...] = x

        # Folded cross-attention query matrix (scale already included):
        #   A[h*Nq + q, :] = scale * ((x+qpos) @ Wk^T)[:, h-slice] @ Wk[h-slice, :]
        # so per KV tile S = A @ (src+pos)^T gives all heads in one GEMM.
        kw = ca_w_ref[0]       # Wk        (C_out, C_in)  bf16
        kwt = ca_w_ref[1]      # Wk^T      (C_in, C_out)  bf16
        qp = jnp.dot((x + qpos).astype(bf16), kwt, preferred_element_type=jnp.float32)
        qp_b = qp.astype(bf16)
        a_parts = []
        for h in range(H):
            lo = h * dh
            a_parts.append(jnp.dot(qp_b[:, lo:lo + dh], kw[lo:lo + dh, :],
                                   preferred_element_type=jnp.float32))
        a_sc[...] = (jnp.concatenate(a_parts, axis=0) * scale).astype(bf16)

        m_sc[...] = jnp.full((HNq, 1), -jnp.inf, jnp.float32)
        l_sc[...] = jnp.zeros((HNq, 1), jnp.float32)
        acc_sc[...] = jnp.zeros((HNq, C), jnp.float32)

    # --- every KV tile: one bf16 QK GEMM for all heads + online softmax ------
    kvpT = kvpT_ref[0]                               # (C, kv_tile) bf16, pre-added
    s = jnp.dot(a_sc[...], kvpT, preferred_element_type=jnp.float32)   # (H*Nq, kv)

    # Box mask computed ONCE at (Nq, kv_tile) from box bounds + flattened
    # (z,y,x) coords, broadcast over heads via a free leading-dim reshape.
    z = coords_ref[0:1, :]
    y = coords_ref[1:2, :]
    xw = coords_ref[2:3, :]
    bx = boxes_ref[...]                              # (Nq, 6) int32
    inside = ((z >= bx[:, 0:1]) & (z < bx[:, 3:4]) &
              (y >= bx[:, 1:2]) & (y < bx[:, 4:5]) &
              (xw >= bx[:, 2:3]) & (xw < bx[:, 5:6]))        # (Nq, kv)
    kvt = s.shape[-1]
    s = jnp.where(inside[None, :, :], s.reshape(H, Nq, kvt), NEG_INF).reshape(HNq, kvt)
    if return_weights:
        w_ref[0] = s.astype(bf16)                    # raw masked scores, per tile

    m_prev = m_sc[...]
    m_new = jnp.maximum(m_prev, jnp.max(s, axis=-1, keepdims=True))
    alpha = jnp.exp(m_prev - m_new)
    if bf16_exp:
        # v6e/v7x only: EUP bf16 exp is ~2x f32; do NOT enable on v5e.
        p_b = jnp.exp((s - m_new).astype(bf16))
        l_sc[...] = alpha * l_sc[...] + jnp.sum(p_b, axis=-1,
                                                keepdims=True).astype(jnp.float32)
    else:
        p = jnp.exp(s - m_new)
        l_sc[...] = alpha * l_sc[...] + jnp.sum(p, axis=-1, keepdims=True)
        p_b = p.astype(bf16)
    # Deferred V projection: accumulate P @ src (per head); Wv applied at the end.
    acc_sc[...] = alpha * acc_sc[...] + jnp.dot(p_b, src_ref[0],
                                                preferred_element_type=jnp.float32)
    m_sc[...] = m_new

    # --- last KV tile: finalize cross-attn, FFN, write outputs ---------------
    @pl.when(t == pl.num_programs(1) - 1)
    def _finalize():
        x = x_sc[...]
        inv_l = pl.reciprocal(l_sc[...], approx=True)
        u_b = (acc_sc[...] * inv_l).astype(bf16)     # (H*Nq, C) unprojected ctx
        vwt = ca_w_ref[2]                            # Wv^T bf16
        ctx_parts = []
        for h in range(H):
            lo = h * dh
            ctx_parts.append(jnp.dot(u_b[h * Nq:(h + 1) * Nq, :], vwt[:, lo:lo + dh],
                                     preferred_element_type=jnp.float32))
        ctx = jnp.concatenate(ctx_parts, axis=-1)    # (Nq, C)
        ca_out = (jnp.dot(ctx.astype(bf16), ca_w_ref[3],
                          preferred_element_type=jnp.float32) + small_ref[3:4, :])
        x = _layernorm(x + ca_out, small_ref[4:5, :], small_ref[5:6, :])
        h1 = jnp.maximum(
            jnp.dot(x.astype(bf16), l1wt_ref[...], preferred_element_type=jnp.float32)
            + l1b_ref[...], 0.0)
        ffn = (jnp.dot(h1.astype(bf16), l2wt_ref[...], preferred_element_type=jnp.float32)
               + small_ref[6:7, :])
        x = _layernorm(x + ffn, small_ref[7:8, :], small_ref[8:9, :])
        out_ref[0] = x
        if return_weights:
            m_out_ref[0] = m_sc[...]
            l_out_ref[0] = l_sc[...]


# ----------------------------------------------------------------------------
# Host wrapper: packs / pre-transposes parameters (bf16), builds the bf16 KV
# stream, picks a generation-aware kv_tile / VMEM limit, launches the kernel and
# (optionally) normalizes the streamed raw scores into softmax weights.
# ----------------------------------------------------------------------------
def focused_decoder_layer(tgt, query_pos, src, src_pos, boxes, coords, params,
                          num_heads, *, kv_tile=None, return_weights=True,
                          bf16_exp=False):
    B, Nq, C = tgt.shape
    Nkv = src.shape[1]
    H = num_heads
    assert C % H == 0
    HNq = H * Nq
    d_ffn = params['l1w'].shape[0]

    # --- generation-aware tiling / VMEM budget --------------------------------
    try:
        vmem_cap = int(pltpu.get_tpu_info().vmem_capacity_bytes)
    except Exception:
        vmem_cap = 64 * 1024 * 1024                  # conservative (v7x per-TC)
    vmem_limit = min(int(vmem_cap * 3 // 4), 112 * 1024 * 1024)

    nkv_ceil = ((Nkv + 127) // 128) * 128
    if kv_tile is None:
        # large tiles amortize the ~0.35us/step overhead; smaller on 64 MiB parts
        kv_tile = 2048 if vmem_cap >= 96 * 1024 * 1024 else 1024
    kv_tile = max(128, (min(int(kv_tile), nkv_ceil) // 128) * 128)

    # Rough working set: single-buffered bf16 weights + scratch (resident) plus
    # the per-step double-buffered bf16 KV stream, f32 score intermediates and
    # the optional streamed-weights tile.  Shrink kv_tile until it fits.
    resident = ((8 * C * C + 2 * C * d_ffn) * 2                 # bf16 weights
                + (12 * C + d_ffn) * 4                          # f32 vectors
                + (2 * Nq * C) * 4                              # tgt/qpos tiles
                + (HNq * (C + 2) + Nq * C) * 4 + HNq * C * 2)   # scratch

    def _step_bytes(tile):
        kv_stream = 2 * (2 * C * tile * 2 + 3 * tile * 4)       # kvpT+src bf16, coords
        inter = 4 * HNq * tile * 4                              # s/p/mask f32 temps
        wout = (2 * HNq * tile * 2) if return_weights else 0    # streamed bf16 scores
        return kv_stream + inter + wout

    while kv_tile > 128 and resident + _step_bytes(kv_tile) > int(vmem_limit * 0.7):
        kv_tile -= 128

    T = pl.cdiv(Nkv, kv_tile)
    Nkv_p = T * kv_tile

    # --- array prep ------------------------------------------------------------
    boxes = jnp.asarray(boxes, jnp.int32)            # (Nq, 6)
    coords = jnp.asarray(coords, jnp.int32)          # (3, Nkv)
    pad = Nkv_p - Nkv
    if pad:
        src = jnp.pad(src, ((0, 0), (0, pad), (0, 0)))
        src_pos = jnp.pad(src_pos, ((0, 0), (0, pad), (0, 0)))
        coords = jnp.pad(coords, ((0, 0), (0, pad)), constant_values=2 ** 30)

    # bf16 KV stream: pre-added + pre-transposed K side -> plain NN QK matmul.
    kvpT = jnp.swapaxes(src + src_pos, 1, 2).astype(jnp.bfloat16)   # (B, C, Nkv_p)
    src_b = src.astype(jnp.bfloat16)                                # (B, Nkv_p, C)

    # Host-side weight pre-transpose / packing, bf16 MXU operands.
    sa_w = params['sa_w']                            # (3C, C) packed in_proj
    sa_wt = jnp.stack([sa_w[0:C].T, sa_w[C:2 * C].T, sa_w[2 * C:3 * C].T,
                       params['sa_ow'].T], axis=0).astype(jnp.bfloat16)   # (4, C, C)
    sa_b = params['sa_b'].reshape(3, C).astype(jnp.float32)
    ca_w = jnp.stack([params['ca_kw'], params['ca_kw'].T,
                      params['ca_vw'].T, params['ca_pw'].T],
                     axis=0).astype(jnp.bfloat16)                         # (4, C, C)
    small = jnp.stack([params['sa_ob'], params['n2g'], params['n2b'],
                       params['ca_pb'], params['n1g'], params['n1b'],
                       params['l2b'], params['n3g'], params['n3b']],
                      axis=0).astype(jnp.float32)                         # (9, C)
    l1wt = params['l1w'].T.astype(jnp.bfloat16)      # (C, d_ffn)
    l1b = params['l1b'].reshape(1, d_ffn).astype(jnp.float32)
    l2wt = params['l2w'].T.astype(jnp.bfloat16)      # (d_ffn, C)

    # --- specs -----------------------------------------------------------------
    def _make_in_specs(single_buffer_consts):
        def sp(shape, imap, const=False):
            if const and single_buffer_consts and hasattr(pl, 'Buffered'):
                try:
                    return pl.BlockSpec(shape, imap, pipeline_mode=pl.Buffered(1))
                except TypeError:
                    return pl.BlockSpec(shape, imap)
            return pl.BlockSpec(shape, imap)
        return [
            sp((1, Nq, C), lambda b, t: (b, 0, 0), True),        # tgt
            sp((1, Nq, C), lambda b, t: (b, 0, 0), True),        # query_pos
            pl.BlockSpec((1, C, kv_tile), lambda b, t: (b, 0, t)),   # (src+pos)^T bf16
            pl.BlockSpec((1, kv_tile, C), lambda b, t: (b, t, 0)),   # src bf16
            pl.BlockSpec((3, kv_tile), lambda b, t: (0, t)),         # coords
            sp((Nq, 6), lambda b, t: (0, 0), True),              # boxes
            sp((4, C, C), lambda b, t: (0, 0, 0), True),         # self-attn weights
            sp((3, C), lambda b, t: (0, 0), True),               # self-attn biases
            sp((4, C, C), lambda b, t: (0, 0, 0), True),         # cross-attn weights
            sp((9, C), lambda b, t: (0, 0), True),               # packed small vecs
            sp((C, d_ffn), lambda b, t: (0, 0), True),           # l1 weight^T
            sp((1, d_ffn), lambda b, t: (0, 0), True),           # l1 bias
            sp((d_ffn, C), lambda b, t: (0, 0), True),           # l2 weight^T
        ]

    out_shapes = [jax.ShapeDtypeStruct((B, Nq, C), jnp.float32)]
    out_specs = [pl.BlockSpec((1, Nq, C), lambda b, t: (b, 0, 0))]
    if return_weights:
        out_shapes += [jax.ShapeDtypeStruct((B, HNq, Nkv_p), jnp.bfloat16),
                       jax.ShapeDtypeStruct((B, HNq, 1), jnp.float32),
                       jax.ShapeDtypeStruct((B, HNq, 1), jnp.float32)]
        out_specs += [pl.BlockSpec((1, HNq, kv_tile), lambda b, t: (b, 0, t)),
                      pl.BlockSpec((1, HNq, 1), lambda b, t: (b, 0, 0)),
                      pl.BlockSpec((1, HNq, 1), lambda b, t: (b, 0, 0))]

    scratch = [
        pltpu.VMEM((Nq, C), jnp.float32),     # x after self-attn + norm2
        pltpu.VMEM((HNq, C), jnp.bfloat16),   # folded query matrix A
        pltpu.VMEM((HNq, 1), jnp.float32),    # online-softmax running max
        pltpu.VMEM((HNq, 1), jnp.float32),    # online-softmax running sum
        pltpu.VMEM((HNq, C), jnp.float32),    # unprojected context accumulator
    ]

    kernel = functools.partial(_focused_decoder_layer_kernel, num_heads=H,
                               return_weights=return_weights, bf16_exp=bf16_exp)
    args = (tgt, query_pos, kvpT, src_b, coords, boxes,
            sa_wt, sa_b, ca_w, small, l1wt, l1b, l2wt)

    def _launch(single_buffer_consts):
        return pl.pallas_call(
            kernel,
            out_shape=tuple(out_shapes),
            grid=(B, T),
            in_specs=_make_in_specs(single_buffer_consts),
            out_specs=tuple(out_specs),
            scratch_shapes=scratch,
            compiler_params=pltpu.CompilerParams(
                dimension_semantics=("parallel", "arbitrary"),
                vmem_limit_bytes=vmem_limit),
        )(*args)

    try:
        res = _launch(True)
    except Exception:
        # Fall back to default double-buffering if single-buffer pipeline_mode is
        # unsupported by this jax/libtpu version.
        res = _launch(False)

    if not return_weights:
        return res[0]
    out, scores, m, l = res
    # Normalize streamed bf16 raw scores with the exact f32 row stats (cheap
    # fused elementwise epilogue; masked entries are exactly 0).
    w = jnp.exp(scores.astype(jnp.float32) - m) * (1.0 / l)
    w = w[:, :, :Nkv].reshape(B, H, Nq, Nkv)
    return out, w


# ----------------------------------------------------------------------------
# Host-side helpers replicating generate_attn_masks() from the module __init__.
# ----------------------------------------------------------------------------
def generate_attn_boxes(attn_areas, input_shape, num_queries_per_organ,
                        restrict_attn=True, padding=0):
    areas = np.asarray(attn_areas, dtype=np.float64)         # (num_organs, 6)
    vols = np.repeat(areas, num_queries_per_organ, axis=0)
    ishape = np.asarray(input_shape)
    vols = vols * np.tile(ishape, 2) - padding
    vols = np.clip(vols, np.zeros(6), np.tile(ishape, 2).astype(np.float64))
    vols[:, :3] = np.floor(vols[:, :3])
    vols[:, 3:] = np.ceil(vols[:, 3:])
    vols = vols.astype(np.int32)
    if not restrict_attn:                                     # unrestricted -> full box
        vols[:, :3] = 0
        vols[:, 3:] = np.tile(ishape, (vols.shape[0], 1)).astype(np.int32)
    return vols                                               # (Nq, 6)


def make_coords(input_shape):
    D, Hh, W = input_shape
    zz, yy, xx = np.meshgrid(np.arange(D), np.arange(Hh), np.arange(W), indexing='ij')
    return np.stack([zz.reshape(-1), yy.reshape(-1), xx.reshape(-1)]).astype(np.int32)


def boxes_to_bool_mask(boxes, input_shape):
    D, Hh, W = input_shape
    nq = boxes.shape[0]
    m = np.ones((nq, D, Hh, W), dtype=bool)
    for q in range(nq):
        z0, y0, x0, z1, y1, x1 = boxes[q]
        m[q, z0:z1, y0:y1, x0:x1] = False
    return m.reshape(nq, -1)


# ----------------------------------------------------------------------------
# Pure-JAX reference (same math, batched, f32) for correctness checking.
# ----------------------------------------------------------------------------
def ref_forward(tgt, qpos, src, spos, mask_add, p, H):
    C = tgt.shape[-1]
    dh = C // H
    scale = dh ** -0.5

    def ln(x, g, b):
        mu = x.mean(-1, keepdims=True)
        var = ((x - mu) ** 2).mean(-1, keepdims=True)
        return (x - mu) / jnp.sqrt(var + LN_EPS) * g + b

    def mha(q, k, v, mask=None):
        B, Nq, _ = q.shape
        Nkv = k.shape[1]
        qh = q.reshape(B, Nq, H, dh)
        kh = k.reshape(B, Nkv, H, dh)
        vh = v.reshape(B, Nkv, H, dh)
        s = jnp.einsum('bqhd,bkhd->bhqk', qh, kh) * scale
        if mask is not None:
            s = s + mask[None, None]
        a = jax.nn.softmax(s, axis=-1)
        ctx = jnp.einsum('bhqk,bkhd->bqhd', a, vh).reshape(B, Nq, C)
        return ctx, a

    qin = tgt + qpos
    q = qin @ p['sa_w'][:C].T + p['sa_b'][:C]
    k = qin @ p['sa_w'][C:2 * C].T + p['sa_b'][C:2 * C]
    v = tgt @ p['sa_w'][2 * C:].T + p['sa_b'][2 * C:]
    ctx, _ = mha(q, k, v)
    x = ln(tgt + ctx @ p['sa_ow'].T + p['sa_ob'], p['n2g'], p['n2b'])

    qc = (x + qpos) @ p['ca_kw'].T         # query uses k_proj (reference quirk)
    kc = (src + spos) @ p['ca_kw'].T
    vc = src @ p['ca_vw'].T
    ctx2, w = mha(qc, kc, vc, mask_add)
    x = ln(x + ctx2 @ p['ca_pw'].T + p['ca_pb'], p['n1g'], p['n1b'])

    h = jax.nn.relu(x @ p['l1w'].T + p['l1b'])
    x = ln(x + h @ p['l2w'].T + p['l2b'], p['n3g'], p['n3b'])
    return x, w


# ----------------------------------------------------------------------------
# Main
# ----------------------------------------------------------------------------
if __name__ == "__main__":
    B = 2
    d_model = 32
    d_ffn = 64
    n_heads = 4
    num_organs = 8
    num_queries_per_organ = 1                      # allowed value in the reference
    num_queries = num_organs * num_queries_per_organ
    input_shape = [4, 8, 8]                        # N_kv = 256 -> 2 KV tiles of 128
    n_kv = int(np.prod(input_shape))

    # synthetic bbox_props attn_areas (deterministic, non-empty boxes)
    rng = np.random.RandomState(0)
    lo = rng.uniform(0.0, 0.4, (num_organs, 3))
    hi = np.clip(lo + rng.uniform(0.3, 0.6, (num_organs, 3)), 0.0, 1.0)
    attn_areas = np.concatenate([lo, hi], axis=1)

    boxes = generate_attn_boxes(attn_areas, input_shape, num_queries_per_organ, True)
    coords = make_coords(input_shape)
    bool_mask = boxes_to_bool_mask(boxes, input_shape)
    mask_add = jnp.asarray(np.where(bool_mask, NEG_INF, 0.0), dtype=jnp.float32)

    key = jax.random.PRNGKey(0)
    keys = jax.random.split(key, 16)

    def init(k, shape):
        return jax.random.normal(k, shape, jnp.float32) * 0.02

    params = {
        # self-attn (nn.MultiheadAttention): packed in_proj + out_proj
        'sa_w': init(keys[0], (3 * d_model, d_model)),
        'sa_b': init(keys[1], (3 * d_model,)),
        'sa_ow': init(keys[2], (d_model, d_model)),
        'sa_ob': init(keys[3], (d_model,)),
        'n2g': jnp.ones((d_model,), jnp.float32),
        'n2b': jnp.zeros((d_model,), jnp.float32),
        # cross-attn (FocusedAttn): k/v proj have no bias; q_proj unused in forward
        'ca_kw': init(keys[4], (d_model, d_model)),
        'ca_vw': init(keys[5], (d_model, d_model)),
        'ca_pw': init(keys[6], (d_model, d_model)),
        'ca_pb': init(keys[7], (d_model,)),
        'n1g': jnp.ones((d_model,), jnp.float32),
        'n1b': jnp.zeros((d_model,), jnp.float32),
        # FFN
        'l1w': init(keys[8], (d_ffn, d_model)),
        'l1b': init(keys[9], (d_ffn,)),
        'l2w': init(keys[10], (d_model, d_ffn)),
        'l2b': init(keys[11], (d_model,)),
        'n3g': jnp.ones((d_model,), jnp.float32),
        'n3b': jnp.zeros((d_model,), jnp.float32),
    }

    tgt = jax.random.normal(keys[12], (B, num_queries, d_model), jnp.float32)
    query_pos = jax.random.normal(keys[13], (B, num_queries, d_model), jnp.float32)
    src = jax.random.normal(keys[14], (B, n_kv, d_model), jnp.float32)
    src_pos = jax.random.normal(keys[15], (B, n_kv, d_model), jnp.float32)

    out, weights = focused_decoder_layer(tgt, query_pos, src, src_pos,
                                         boxes, coords, params, n_heads,
                                         kv_tile=128, return_weights=True)
    jax.block_until_ready(out)
    jax.block_until_ready(weights)

    ref_out, ref_w = ref_forward(tgt, query_pos, src, src_pos, mask_add, params, n_heads)
    assert out.shape == (B, num_queries, d_model)
    assert weights.shape == (B, n_heads, num_queries, n_kv)
    # bf16 is used for all MXU operands (f32 accumulation) and the streamed
    # scores, so tolerance is a little looser than pure-f32.
    np.testing.assert_allclose(np.asarray(out), np.asarray(ref_out), rtol=3e-2, atol=3e-2)
    np.testing.assert_allclose(np.asarray(weights), np.asarray(ref_w), rtol=3e-2, atol=3e-2)

    print("KERNEL_OK")
</pallas_src>

<mosaic_0001>
module attributes {stable_mosaic.version = 11 : i64} {
  func.func @_focused_decoder_layer_kernel(%arg0: i32, %arg1: i32, %arg2: memref<1x8x32xf32, #tpu.memory_space<vmem>>, %arg3: memref<1x8x32xf32, #tpu.memory_space<vmem>>, %arg4: memref<1x32x128xbf16, #tpu.memory_space<vmem>>, %arg5: memref<1x128x32xbf16, #tpu.memory_space<vmem>>, %arg6: memref<3x128xi32, #tpu.memory_space<vmem>>, %arg7: memref<8x6xi32, #tpu.memory_space<vmem>>, %arg8: memref<4x32x32xbf16, #tpu.memory_space<vmem>>, %arg9: memref<3x32xf32, #tpu.memory_space<vmem>>, %arg10: memref<4x32x32xbf16, #tpu.memory_space<vmem>>, %arg11: memref<9x32xf32, #tpu.memory_space<vmem>>, %arg12: memref<32x64xbf16, #tpu.memory_space<vmem>>, %arg13: memref<1x64xf32, #tpu.memory_space<vmem>>, %arg14: memref<64x32xbf16, #tpu.memory_space<vmem>>, %arg15: memref<1x8x32xf32, #tpu.memory_space<vmem>>, %arg16: memref<1x32x128xbf16, #tpu.memory_space<vmem>>, %arg17: memref<1x32x1xf32, #tpu.memory_space<vmem>>, %arg18: memref<1x32x1xf32, #tpu.memory_space<vmem>>, %arg19: memref<8x32xf32, #tpu.memory_space<vmem>>, %arg20: memref<32x32xbf16, #tpu.memory_space<vmem>>, %arg21: memref<32x1xf32, #tpu.memory_space<vmem>>, %arg22: memref<32x1xf32, #tpu.memory_space<vmem>>, %arg23: memref<32x32xf32, #tpu.memory_space<vmem>>) attributes {dimension_semantics = [#tpu.dimension_semantics<parallel>, #tpu.dimension_semantics<arbitrary>], iteration_bounds = array<i64: 2, 2>, scalar_prefetch = 0 : i64, scratch_operands = 5 : i64, tpu.core_type = #tpu.core_type<tc>, window_params = [{pipeline_mode = #tpu.pipeline_mode<synchronous>, transform_indices = @transform_0, window_bounds = array<i64: 1, 8, 32>}, {pipeline_mode = #tpu.pipeline_mode<synchronous>, transform_indices = @transform_1, window_bounds = array<i64: 1, 8, 32>}, {transform_indices = @transform_2, window_bounds = array<i64: 1, 32, 128>}, {transform_indices = @transform_3, window_bounds = array<i64: 1, 128, 32>}, {transform_indices = @transform_4, window_bounds = array<i64: 3, 128>}, {pipeline_mode = #tpu.pipeline_mode<synchronous>, transform_indices = @transform_5, window_bounds = array<i64: 8, 6>}, {pipeline_mode = #tpu.pipeline_mode<synchronous>, transform_indices = @transform_6, window_bounds = array<i64: 4, 32, 32>}, {pipeline_mode = #tpu.pipeline_mode<synchronous>, transform_indices = @transform_7, window_bounds = array<i64: 3, 32>}, {pipeline_mode = #tpu.pipeline_mode<synchronous>, transform_indices = @transform_8, window_bounds = array<i64: 4, 32, 32>}, {pipeline_mode = #tpu.pipeline_mode<synchronous>, transform_indices = @transform_9, window_bounds = array<i64: 9, 32>}, {pipeline_mode = #tpu.pipeline_mode<synchronous>, transform_indices = @transform_10, window_bounds = array<i64: 32, 64>}, {pipeline_mode = #tpu.pipeline_mode<synchronous>, transform_indices = @transform_11, window_bounds = array<i64: 1, 64>}, {pipeline_mode = #tpu.pipeline_mode<synchronous>, transform_indices = @transform_12, window_bounds = array<i64: 64, 32>}, {transform_indices = @transform_13, window_bounds = array<i64: 1, 8, 32>}, {transform_indices = @transform_14, window_bounds = array<i64: 1, 32, 128>}, {transform_indices = @transform_15, window_bounds = array<i64: 1, 32, 1>}, {transform_indices = @transform_16, window_bounds = array<i64: 1, 32, 1>}]} {
    %c0_i32 = arith.constant 0 : i32
    %0 = arith.cmpi eq, %arg1, %c0_i32 : i32
    %1 = arith.extui %0 : i1 to i32
    %c0_i32_0 = arith.constant 0 : i32
    %2 = arith.cmpi ne, %1, %c0_i32_0 : i32
    scf.if %2 {
      %c0_34 = arith.constant 0 : index
      %c0_35 = arith.constant 0 : index
      %c0_36 = arith.constant 0 : index
      %79 = vector.load %arg2[%c0_34, %c0_35, %c0_36] : memref<1x8x32xf32, #tpu.memory_space<vmem>>, vector<1x8x32xf32>
      %80 = vector.shape_cast %79 : vector<1x8x32xf32> to vector<8x32xf32>
      %c0_37 = arith.constant 0 : index
      %c0_38 = arith.constant 0 : index
      %c0_39 = arith.constant 0 : index
      %81 = vector.load %arg3[%c0_37, %c0_38, %c0_39] : memref<1x8x32xf32, #tpu.memory_space<vmem>>, vector<1x8x32xf32>
      %82 = vector.shape_cast %81 : vector<1x8x32xf32> to vector<8x32xf32>
      %83 = arith.addf %80, %82 : vector<8x32xf32>
      %84 = arith.truncf %83 : vector<8x32xf32> to vector<8x32xbf16>
      %c0_40 = arith.constant 0 : index
      %c0_41 = arith.constant 0 : index
      %c0_42 = arith.constant 0 : index
      %85 = vector.load %arg8[%c0_40, %c0_41, %c0_42] : memref<4x32x32xbf16, #tpu.memory_space<vmem>>, vector<1x32x32xbf16>
      %86 = vector.shape_cast %85 : vector<1x32x32xbf16> to vector<32x32xbf16>
      %cst_43 = arith.constant dense<0.000000e+00> : vector<8x32xf32>
      %87 = tpu.matmul %84, %86, %cst_43 {dimension_numbers = #tpu.dot_dimension_numbers<[1], [0], [0], [1], [0, 0, 1, 1], [], []>} : vector<8x32xbf16>, vector<32x32xbf16>, vector<8x32xf32> -> vector<8x32xf32>
      %c0_44 = arith.constant 0 : index
      %c0_45 = arith.constant 0 : index
      %88 = vector.load %arg9[%c0_44, %c0_45] : memref<3x32xf32, #tpu.memory_space<vmem>>, vector<1x32xf32>
      %89 = vector.broadcast %88 : vector<1x32xf32> to vector<8x32xf32>
      %90 = arith.addf %87, %89 : vector<8x32xf32>
      %c1_46 = arith.constant 1 : index
      %c0_47 = arith.constant 0 : index
      %c0_48 = arith.constant 0 : index
      %91 = vector.load %arg8[%c1_46, %c0_47, %c0_48] : memref<4x32x32xbf16, #tpu.memory_space<vmem>>, vector<1x32x32xbf16>
      %92 = vector.shape_cast %91 : vector<1x32x32xbf16> to vector<32x32xbf16>
      %cst_49 = arith.constant dense<0.000000e+00> : vector<8x32xf32>
      %93 = tpu.matmul %84, %92, %cst_49 {dimension_numbers = #tpu.dot_dimension_numbers<[1], [0], [0], [1], [0, 0, 1, 1], [], []>} : vector<8x32xbf16>, vector<32x32xbf16>, vector<8x32xf32> -> vector<8x32xf32>
      %c1_50 = arith.constant 1 : index
      %c0_51 = arith.constant 0 : index
      %94 = vector.load %arg9[%c1_50, %c0_51] : memref<3x32xf32, #tpu.memory_space<vmem>>, vector<1x32xf32>
      %95 = vector.broadcast %94 : vector<1x32xf32> to vector<8x32xf32>
      %96 = arith.addf %93, %95 : vector<8x32xf32>
      %97 = arith.truncf %80 : vector<8x32xf32> to vector<8x32xbf16>
      %c2_52 = arith.constant 2 : index
      %c0_53 = arith.constant 0 : index
      %c0_54 = arith.constant 0 : index
      %98 = vector.load %arg8[%c2_52, %c0_53, %c0_54] : memref<4x32x32xbf16, #tpu.memory_space<vmem>>, vector<1x32x32xbf16>
      %99 = vector.shape_cast %98 : vector<1x32x32xbf16> to vector<32x32xbf16>
      %cst_55 = arith.constant dense<0.000000e+00> : vector<8x32xf32>
      %100 = tpu.matmul %97, %99, %cst_55 {dimension_numbers = #tpu.dot_dimension_numbers<[1], [0], [0], [1], [0, 0, 1, 1], [], []>} : vector<8x32xbf16>, vector<32x32xbf16>, vector<8x32xf32> -> vector<8x32xf32>
      %c2_56 = arith.constant 2 : index
      %c0_57 = arith.constant 0 : index
      %101 = vector.load %arg9[%c2_56, %c0_57] : memref<3x32xf32, #tpu.memory_space<vmem>>, vector<1x32xf32>
      %102 = vector.broadcast %101 : vector<1x32xf32> to vector<8x32xf32>
      %103 = arith.addf %100, %102 : vector<8x32xf32>
      %104 = vector.extract_strided_slice %90 {offsets = [0, 0], sizes = [8, 8], strides = [1, 1]} : vector<8x32xf32> to vector<8x8xf32>
      %105 = vector.extract_strided_slice %96 {offsets = [0, 0], sizes = [8, 8], strides = [1, 1]} : vector<8x32xf32> to vector<8x8xf32>
      %106 = vector.extract_strided_slice %103 {offsets = [0, 0], sizes = [8, 8], strides = [1, 1]} : vector<8x32xf32> to vector<8x8xf32>
      %cst_58 = arith.constant dense<0.000000e+00> : vector<8x8xf32>
      %107 = tpu.matmul %104, %105, %cst_58 {dimension_numbers = #tpu.dot_dimension_numbers<[1], [1], [0], [0], [0, 0, 1, 0], [], []>} : vector<8x8xf32>, vector<8x8xf32>, vector<8x8xf32> -> vector<8x8xf32>
      %cst_59 = arith.constant 0.353553385 : f32
      %108 = vector.broadcast %cst_59 : f32 to vector<8x8xf32>
      %109 = arith.mulf %107, %108 : vector<8x8xf32>
      %cst_60 = arith.constant dense<0xFF800000> : vector<8xf32>
      %110 = vector.multi_reduction <maximumf>, %109, %cst_60 [1] : vector<8x8xf32> to vector<8xf32>
      %111 = vector.shape_cast %110 : vector<8xf32> to vector<8x1xf32>
      %112 = vector.broadcast %111 : vector<8x1xf32> to vector<8x8xf32>
      %113 = arith.subf %109, %112 : vector<8x8xf32>
      %114 = math.exp %113 : vector<8x8xf32>
      %cst_61 = arith.constant dense<0.000000e+00> : vector<8xf32>
      %115 = vector.multi_reduction <add>, %114, %cst_61 [1] : vector<8x8xf32> to vector<8xf32>
      %116 = vector.shape_cast %115 : vector<8xf32> to vector<8x1xf32>
      %117 = vector.broadcast %116 : vector<8x1xf32> to vector<8x8xf32>
      %118 = arith.divf %114, %117 : vector<8x8xf32>
      %cst_62 = arith.constant dense<0.000000e+00> : vector<8x8xf32>
      %119 = tpu.matmul %118, %106, %cst_62 {dimension_numbers = #tpu.dot_dimension_numbers<[1], [0], [0], [1], [0, 0, 1, 1], [], []>} : vector<8x8xf32>, vector<8x8xf32>, vector<8x8xf32> -> vector<8x8xf32>
      %120 = vector.extract_strided_slice %90 {offsets = [0, 8], sizes = [8, 8], strides = [1, 1]} : vector<8x32xf32> to vector<8x8xf32>
      %121 = vector.extract_strided_slice %96 {offsets = [0, 8], sizes = [8, 8], strides = [1, 1]} : vector<8x32xf32> to vector<8x8xf32>
      %122 = vector.extract_strided_slice %103 {offsets = [0, 8], sizes = [8, 8], strides = [1, 1]} : vector<8x32xf32> to vector<8x8xf32>
      %cst_63 = arith.constant dense<0.000000e+00> : vector<8x8xf32>
      %123 = tpu.matmul %120, %121, %cst_63 {dimension_numbers = #tpu.dot_dimension_numbers<[1], [1], [0], [0], [0, 0, 1, 0], [], []>} : vector<8x8xf32>, vector<8x8xf32>, vector<8x8xf32> -> vector<8x8xf32>
      %cst_64 = arith.constant 0.353553385 : f32
      %124 = vector.broadcast %cst_64 : f32 to vector<8x8xf32>
      %125 = arith.mulf %123, %124 : vector<8x8xf32>
      %cst_65 = arith.constant dense<0xFF800000> : vector<8xf32>
      %126 = vector.multi_reduction <maximumf>, %125, %cst_65 [1] : vector<8x8xf32> to vector<8xf32>
      %127 = vector.shape_cast %126 : vector<8xf32> to vector<8x1xf32>
      %128 = vector.broadcast %127 : vector<8x1xf32> to vector<8x8xf32>
      %129 = arith.subf %125, %128 : vector<8x8xf32>
      %130 = math.exp %129 : vector<8x8xf32>
      %cst_66 = arith.constant dense<0.000000e+00> : vector<8xf32>
      %131 = vector.multi_reduction <add>, %130, %cst_66 [1] : vector<8x8xf32> to vector<8xf32>
      %132 = vector.shape_cast %131 : vector<8xf32> to vector<8x1xf32>
      %133 = vector.broadcast %132 : vector<8x1xf32> to vector<8x8xf32>
      %134 = arith.divf %130, %133 : vector<8x8xf32>
      %cst_67 = arith.constant dense<0.000000e+00> : vector<8x8xf32>
      %135 = tpu.matmul %134, %122, %cst_67 {dimension_numbers = #tpu.dot_dimension_numbers<[1], [0], [0], [1], [0, 0, 1, 1], [], []>} : vector<8x8xf32>, vector<8x8xf32>, vector<8x8xf32> -> vector<8x8xf32>
      %136 = vector.extract_strided_slice %90 {offsets = [0, 16], sizes = [8, 8], strides = [1, 1]} : vector<8x32xf32> to vector<8x8xf32>
      %137 = vector.extract_strided_slice %96 {offsets = [0, 16], sizes = [8, 8], strides = [1, 1]} : vector<8x32xf32> to vector<8x8xf32>
      %138 = vector.extract_strided_slice %103 {offsets = [0, 16], sizes = [8, 8], strides = [1, 1]} : vector<8x32xf32> to vector<8x8xf32>
      %cst_68 = arith.constant dense<0.000000e+00> : vector<8x8xf32>
      %139 = tpu.matmul %136, %137, %cst_68 {dimension_numbers = #tpu.dot_dimension_numbers<[1], [1], [0], [0], [0, 0, 1, 0], [], []>} : vector<8x8xf32>, vector<8x8xf32>, vector<8x8xf32> -> vector<8x8xf32>
      %cst_69 = arith.constant 0.353553385 : f32
      %140 = vector.broadcast %cst_69 : f32 to vector<8x8xf32>
      %141 = arith.mulf %139, %140 : vector<8x8xf32>
      %cst_70 = arith.constant dense<0xFF800000> : vector<8xf32>
      %142 = vector.multi_reduction <maximumf>, %141, %cst_70 [1] : vector<8x8xf32> to vector<8xf32>
      %143 = vector.shape_cast %142 : vector<8xf32> to vector<8x1xf32>
      %144 = vector.broadcast %143 : vector<8x1xf32> to vector<8x8xf32>
      %145 = arith.subf %141, %144 : vector<8x8xf32>
      %146 = math.exp %145 : vector<8x8xf32>
      %cst_71 = arith.constant dense<0.000000e+00> : vector<8xf32>
      %147 = vector.multi_reduction <add>, %146, %cst_71 [1] : vector<8x8xf32> to vector<8xf32>
      %148 = vector.shape_cast %147 : vector<8xf32> to vector<8x1xf32>
      %149 = vector.broadcast %148 : vector<8x1xf32> to vector<8x8xf32>
      %150 = arith.divf %146, %149 : vector<8x8xf32>
      %cst_72 = arith.constant dense<0.000000e+00> : vector<8x8xf32>
      %151 = tpu.matmul %150, %138, %cst_72 {dimension_numbers = #tpu.dot_dimension_numbers<[1], [0], [0], [1], [0, 0, 1, 1], [], []>} : vector<8x8xf32>, vector<8x8xf32>, vector<8x8xf32> -> vector<8x8xf32>
      %152 = vector.extract_strided_slice %90 {offsets = [0, 24], sizes = [8, 8], strides = [1, 1]} : vector<8x32xf32> to vector<8x8xf32>
      %153 = vector.extract_strided_slice %96 {offsets = [0, 24], sizes = [8, 8], strides = [1, 1]} : vector<8x32xf32> to vector<8x8xf32>
      %154 = vector.extract_strided_slice %103 {offsets = [0, 24], sizes = [8, 8], strides = [1, 1]} : vector<8x32xf32> to vector<8x8xf32>
      %cst_73 = arith.constant dense<0.000000e+00> : vector<8x8xf32>
      %155 = tpu.matmul %152, %153, %cst_73 {dimension_numbers = #tpu.dot_dimension_numbers<[1], [1], [0], [0], [0, 0, 1, 0], [], []>} : vector<8x8xf32>, vector<8x8xf32>, vector<8x8xf32> -> vector<8x8xf32>
      %cst_74 = arith.constant 0.353553385 : f32
      %156 = vector.broadcast %cst_74 : f32 to vector<8x8xf32>
      %157 = arith.mulf %155, %156 : vector<8x8xf32>
      %cst_75 = arith.constant dense<0xFF800000> : vector<8xf32>
      %158 = vector.multi_reduction <maximumf>, %157, %cst_75 [1] : vector<8x8xf32> to vector<8xf32>
      %159 = vector.shape_cast %158 : vector<8xf32> to vector<8x1xf32>
      %160 = vector.broadcast %159 : vector<8x1xf32> to vector<8x8xf32>
      %161 = arith.subf %157, %160 : vector<8x8xf32>
      %162 = math.exp %161 : vector<8x8xf32>
      %cst_76 = arith.constant dense<0.000000e+00> : vector<8xf32>
      %163 = vector.multi_reduction <add>, %162, %cst_76 [1] : vector<8x8xf32> to vector<8xf32>
      %164 = vector.shape_cast %163 : vector<8xf32> to vector<8x1xf32>
      %165 = vector.broadcast %164 : vector<8x1xf32> to vector<8x8xf32>
      %166 = arith.divf %162, %165 : vector<8x8xf32>
      %cst_77 = arith.constant dense<0.000000e+00> : vector<8x8xf32>
      %167 = tpu.matmul %166, %154, %cst_77 {dimension_numbers = #tpu.dot_dimension_numbers<[1], [0], [0], [1], [0, 0, 1, 1], [], []>} : vector<8x8xf32>, vector<8x8xf32>, vector<8x8xf32> -> vector<8x8xf32>
      %168 = tpu.concatenate %119, %135, %151, %167 in 1 : vector<8x8xf32>, vector<8x8xf32>, vector<8x8xf32>, vector<8x8xf32> -> vector<8x32xf32>
      %169 = arith.truncf %168 : vector<8x32xf32> to vector<8x32xbf16>
      %c3 = arith.constant 3 : index
      %c0_78 = arith.constant 0 : index
      %c0_79 = arith.constant 0 : index
      %170 = vector.load %arg8[%c3, %c0_78, %c0_79] : memref<4x32x32xbf16, #tpu.memory_space<vmem>>, vector<1x32x32xbf16>
      %171 = vector.shape_cast %170 : vector<1x32x32xbf16> to vector<32x32xbf16>
      %cst_80 = arith.constant dense<0.000000e+00> : vector<8x32xf32>
      %172 = tpu.matmul %169, %171, %cst_80 {dimension_numbers = #tpu.dot_dimension_numbers<[1], [0], [0], [1], [0, 0, 1, 1], [], []>} : vector<8x32xbf16>, vector<32x32xbf16>, vector<8x32xf32> -> vector<8x32xf32>
      %c0_81 = arith.constant 0 : index
      %c0_82 = arith.constant 0 : index
      %173 = vector.load %arg11[%c0_81, %c0_82] : memref<9x32xf32, #tpu.memory_space<vmem>>, vector<1x32xf32>
      %174 = vector.broadcast %173 : vector<1x32xf32> to vector<8x32xf32>
      %175 = arith.addf %172, %174 : vector<8x32xf32>
      %176 = arith.addf %80, %175 : vector<8x32xf32>
      %c1_83 = arith.constant 1 : index
      %c0_84 = arith.constant 0 : index
      %177 = vector.load %arg11[%c1_83, %c0_84] : memref<9x32xf32, #tpu.memory_space<vmem>>, vector<1x32xf32>
      %c2_85 = arith.constant 2 : index
      %c0_86 = arith.constant 0 : index
      %178 = vector.load %arg11[%c2_85, %c0_86] : memref<9x32xf32, #tpu.memory_space<vmem>>, vector<1x32xf32>
      %cst_87 = arith.constant dense<0.000000e+00> : vector<8xf32>
      %179 = vector.multi_reduction <add>, %176, %cst_87 [1] : vector<8x32xf32> to vector<8xf32>
      %180 = vector.shape_cast %179 : vector<8xf32> to vector<8x1xf32>
      %cst_88 = arith.constant 3.200000e+01 : f32
      %181 = vector.broadcast %cst_88 : f32 to vector<8x1xf32>
      %182 = arith.divf %180, %181 : vector<8x1xf32>
      %183 = vector.broadcast %182 : vector<8x1xf32> to vector<8x32xf32>
      %184 = arith.subf %176, %183 : vector<8x32xf32>
      %185 = arith.mulf %184, %184 : vector<8x32xf32>
      %cst_89 = arith.constant dense<0.000000e+00> : vector<8xf32>
      %186 = vector.multi_reduction <add>, %185, %cst_89 [1] : vector<8x32xf32> to vector<8xf32>
      %187 = vector.shape_cast %186 : vector<8xf32> to vector<8x1xf32>
      %cst_90 = arith.constant 3.200000e+01 : f32
      %188 = vector.broadcast %cst_90 : f32 to vector<8x1xf32>
      %189 = arith.divf %187, %188 : vector<8x1xf32>
      %190 = vector.broadcast %182 : vector<8x1xf32> to vector<8x32xf32>
      %191 = arith.subf %176, %190 : vector<8x32xf32>
      %cst_91 = arith.constant 9.99999974E-6 : f32
      %192 = vector.broadcast %cst_91 : f32 to vector<8x1xf32>
      %193 = arith.addf %189, %192 : vector<8x1xf32>
      %194 = math.rsqrt %193 : vector<8x1xf32>
      %195 = vector.broadcast %194 : vector<8x1xf32> to vector<8x32xf32>
      %196 = arith.mulf %191, %195 : vector<8x32xf32>
      %197 = vector.broadcast %177 : vector<1x32xf32> to vector<8x32xf32>
      %198 = arith.mulf %196, %197 : vector<8x32xf32>
      %199 = vector.broadcast %178 : vector<1x32xf32> to vector<8x32xf32>
      %200 = arith.addf %198, %199 : vector<8x32xf32>
      %c0_92 = arith.constant 0 : index
      %c0_93 = arith.constant 0 : index
      %201 = vector.load %arg19[%c0_92, %c0_93] : memref<8x32xf32, #tpu.memory_space<vmem>>, vector<8x32xf32>
      tpu.vector_store %arg19[%c0_92, %c0_93], %200 {strides = array<i32>} : memref<8x32xf32, #tpu.memory_space<vmem>>, vector<8x32xf32>,
      %c0_94 = arith.constant 0 : index
      %c0_95 = arith.constant 0 : index
      %c0_96 = arith.constant 0 : index
      %202 = vector.load %arg10[%c0_94, %c0_95, %c0_96] : memref<4x32x32xbf16, #tpu.memory_space<vmem>>, vector<1x32x32xbf16>
      %203 = vector.shape_cast %202 : vector<1x32x32xbf16> to vector<32x32xbf16>
      %c1_97 = arith.constant 1 : index
      %c0_98 = arith.constant 0 : index
      %c0_99 = arith.constant 0 : index
      %204 = vector.load %arg10[%c1_97, %c0_98, %c0_99] : memref<4x32x32xbf16, #tpu.memory_space<vmem>>, vector<1x32x32xbf16>
      %205 = vector.shape_cast %204 : vector<1x32x32xbf16> to vector<32x32xbf16>
      %206 = arith.addf %200, %82 : vector<8x32xf32>
      %207 = arith.truncf %206 : vector<8x32xf32> to vector<8x32xbf16>
      %cst_100 = arith.constant dense<0.000000e+00> : vector<8x32xf32>
      %208 = tpu.matmul %207, %205, %cst_100 {dimension_numbers = #tpu.dot_dimension_numbers<[1], [0], [0], [1], [0, 0, 1, 1], [], []>} : vector<8x32xbf16>, vector<32x32xbf16>, vector<8x32xf32> -> vector<8x32xf32>
      %209 = arith.truncf %208 : vector<8x32xf32> to vector<8x32xbf16>
      %210 = vector.extract_strided_slice %209 {offsets = [0, 0], sizes = [8, 8], strides = [1, 1]} : vector<8x32xbf16> to vector<8x8xbf16>
      %211 = vector.extract_strided_slice %203 {offsets = [0, 0], sizes = [8, 32], strides = [1, 1]} : vector<32x32xbf16> to vector<8x32xbf16>
      %cst_101 = arith.constant dense<0.000000e+00> : vector<8x32xf32>
      %212 = tpu.matmul %210, %211, %cst_101 {dimension_numbers = #tpu.dot_dimension_numbers<[1], [0], [0], [1], [0, 0, 1, 1], [], []>} : vector<8x8xbf16>, vector<8x32xbf16>, vector<8x32xf32> -> vector<8x32xf32>
      %213 = vector.extract_strided_slice %209 {offsets = [0, 8], sizes = [8, 8], strides = [1, 1]} : vector<8x32xbf16> to vector<8x8xbf16>
      %214 = vector.extract_strided_slice %203 {offsets = [8, 0], sizes = [8, 32], strides = [1, 1]} : vector<32x32xbf16> to vector<8x32xbf16>
      %cst_102 = arith.constant dense<0.000000e+00> : vector<8x32xf32>
      %215 = tpu.matmul %213, %214, %cst_102 {dimension_numbers = #tpu.dot_dimension_numbers<[1], [0], [0], [1], [0, 0, 1, 1], [], []>} : vector<8x8xbf16>, vector<8x32xbf16>, vector<8x32xf32> -> vector<8x32xf32>
      %216 = vector.extract_strided_slice %209 {offsets = [0, 16], sizes = [8, 8], strides = [1, 1]} : vector<8x32xbf16> to vector<8x8xbf16>
      %217 = vector.extract_strided_slice %203 {offsets = [16, 0], sizes = [8, 32], strides = [1, 1]} : vector<32x32xbf16> to vector<8x32xbf16>
      %cst_103 = arith.constant dense<0.000000e+00> : vector<8x32xf32>
      %218 = tpu.matmul %216, %217, %cst_103 {dimension_numbers = #tpu.dot_dimension_numbers<[1], [0], [0], [1], [0, 0, 1, 1], [], []>} : vector<8x8xbf16>, vector<8x32xbf16>, vector<8x32xf32> -> vector<8x32xf32>
      %219 = vector.extract_strided_slice %209 {offsets = [0, 24], sizes = [8, 8], strides = [1, 1]} : vector<8x32xbf16> to vector<8x8xbf16>
      %220 = vector.extract_strided_slice %203 {offsets = [24, 0], sizes = [8, 32], strides = [1, 1]} : vector<32x32xbf16> to vector<8x32xbf16>
      %cst_104 = arith.constant dense<0.000000e+00> : vector<8x32xf32>
      %221 = tpu.matmul %219, %220, %cst_104 {dimension_numbers = #tpu.dot_dimension_numbers<[1], [0], [0], [1], [0, 0, 1, 1], [], []>} : vector<8x8xbf16>, vector<8x32xbf16>, vector<8x32xf32> -> vector<8x32xf32>
      %222 = tpu.concatenate %212, %215, %218, %221 in 0 : vector<8x32xf32>, vector<8x32xf32>, vector<8x32xf32>, vector<8x32xf32> -> vector<32x32xf32>
      %cst_105 = arith.constant 0.353553385 : f32
      %223 = vector.broadcast %cst_105 : f32 to vector<32x32xf32>
      %224 = arith.mulf %222, %223 : vector<32x32xf32>
      %225 = arith.truncf %224 : vector<32x32xf32> to vector<32x32xbf16>
      %c0_106 = arith.constant 0 : index
      %c0_107 = arith.constant 0 : index
      %226 = vector.load %arg20[%c0_106, %c0_107] : memref<32x32xbf16, #tpu.memory_space<vmem>>, vector<32x32xbf16>
      tpu.vector_store %arg20[%c0_106, %c0_107], %225 {strides = array<i32>} : memref<32x32xbf16, #tpu.memory_space<vmem>>, vector<32x32xbf16>,
      %cst_108 = arith.constant 0xFF800000 : f32
      %227 = vector.broadcast %cst_108 : f32 to vector<32x1xf32>
      %c0_109 = arith.constant 0 : index
      %c0_110 = arith.constant 0 : index
      %228 = vector.load %arg21[%c0_109, %c0_110] : memref<32x1xf32, #tpu.memory_space<vmem>>, vector<32x1xf32>
      tpu.vector_store %arg21[%c0_109, %c0_110], %227 {strides = array<i32>} : memref<32x1xf32, #tpu.memory_space<vmem>>, vector<32x1xf32>,
      %cst_111 = arith.constant 0.000000e+00 : f32
      %229 = vector.broadcast %cst_111 : f32 to vector<32x1xf32>
      %c0_112 = arith.constant 0 : index
      %c0_113 = arith.constant 0 : index
      %230 = vector.load %arg22[%c0_112, %c0_113] : memref<32x1xf32, #tpu.memory_space<vmem>>, vector<32x1xf32>
      tpu.vector_store %arg22[%c0_112, %c0_113], %229 {strides = array<i32>} : memref<32x1xf32, #tpu.memory_space<vmem>>, vector<32x1xf32>,
      %cst_114 = arith.constant 0.000000e+00 : f32
      %231 = vector.broadcast %cst_114 : f32 to vector<32x32xf32>
      %c0_115 = arith.constant 0 : index
      %c0_116 = arith.constant 0 : index
      %232 = vector.load %arg23[%c0_115, %c0_116] : memref<32x32xf32, #tpu.memory_space<vmem>>, vector<32x32xf32>
      tpu.vector_store %arg23[%c0_115, %c0_116], %231 {strides = array<i32>} : memref<32x32xf32, #tpu.memory_space<vmem>>, vector<32x32xf32>,
    } else {
    }
    %c0 = arith.constant 0 : index
    %c0_1 = arith.constant 0 : index
    %c0_2 = arith.constant 0 : index
    %3 = vector.load %arg4[%c0, %c0_1, %c0_2] : memref<1x32x128xbf16, #tpu.memory_space<vmem>>, vector<1x32x128xbf16>
    %4 = vector.shape_cast %3 : vector<1x32x128xbf16> to vector<32x128xbf16>
    %c0_3 = arith.constant 0 : index
    %c0_4 = arith.constant 0 : index
    %5 = vector.load %arg20[%c0_3, %c0_4] : memref<32x32xbf16, #tpu.memory_space<vmem>>, vector<32x32xbf16>
    %cst = arith.constant dense<0.000000e+00> : vector<32x128xf32>
    %6 = tpu.matmul %5, %4, %cst {dimension_numbers = #tpu.dot_dimension_numbers<[1], [0], [0], [1], [0, 0, 1, 1], [], []>} : vector<32x32xbf16>, vector<32x128xbf16>, vector<32x128xf32> -> vector<32x128xf32>
    %c0_5 = arith.constant 0 : index
    %c0_6 = arith.constant 0 : index
    %7 = vector.load %arg6[%c0_5, %c0_6] : memref<3x128xi32, #tpu.memory_space<vmem>>, vector<1x128xi32>
    %c1 = arith.constant 1 : index
    %c0_7 = arith.constant 0 : index
    %8 = vector.load %arg6[%c1, %c0_7] : memref<3x128xi32, #tpu.memory_space<vmem>>, vector<1x128xi32>
    %c2 = arith.constant 2 : index
    %c0_8 = arith.constant 0 : index
    %9 = vector.load %arg6[%c2, %c0_8] : memref<3x128xi32, #tpu.memory_space<vmem>>, vector<1x128xi32>
    %c0_9 = arith.constant 0 : index
    %c0_10 = arith.constant 0 : index
    %10 = vector.load %arg7[%c0_9, %c0_10] : memref<8x6xi32, #tpu.memory_space<vmem>>, vector<8x6xi32>
    %11 = vector.extract_strided_slice %10 {offsets = [0, 0], sizes = [8, 1], strides = [1, 1]} : vector<8x6xi32> to vector<8x1xi32>
    %12 = vector.broadcast %7 : vector<1x128xi32> to vector<8x128xi32>
    %13 = vector.broadcast %11 : vector<8x1xi32> to vector<8x128xi32>
    %14 = arith.cmpi sge, %12, %13 : vector<8x128xi32>
    %15 = vector.extract_strided_slice %10 {offsets = [0, 3], sizes = [8, 1], strides = [1, 1]} : vector<8x6xi32> to vector<8x1xi32>
    %16 = vector.broadcast %7 : vector<1x128xi32> to vector<8x128xi32>
    %17 = vector.broadcast %15 : vector<8x1xi32> to vector<8x128xi32>
    %18 = arith.cmpi slt, %16, %17 : vector<8x128xi32>
    %19 = arith.andi %14, %18 : vector<8x128xi1>
    %20 = vector.extract_strided_slice %10 {offsets = [0, 1], sizes = [8, 1], strides = [1, 1]} : vector<8x6xi32> to vector<8x1xi32>
    %21 = vector.broadcast %8 : vector<1x128xi32> to vector<8x128xi32>
    %22 = vector.broadcast %20 : vector<8x1xi32> to vector<8x128xi32>
    %23 = arith.cmpi sge, %21, %22 : vector<8x128xi32>
    %24 = arith.andi %19, %23 : vector<8x128xi1>
    %25 = vector.extract_strided_slice %10 {offsets = [0, 4], sizes = [8, 1], strides = [1, 1]} : vector<8x6xi32> to vector<8x1xi32>
    %26 = vector.broadcast %8 : vector<1x128xi32> to vector<8x128xi32>
    %27 = vector.broadcast %25 : vector<8x1xi32> to vector<8x128xi32>
    %28 = arith.cmpi slt, %26, %27 : vector<8x128xi32>
    %29 = arith.andi %24, %28 : vector<8x128xi1>
    %30 = vector.extract_strided_slice %10 {offsets = [0, 2], sizes = [8, 1], strides = [1, 1]} : vector<8x6xi32> to vector<8x1xi32>
    %31 = vector.broadcast %9 : vector<1x128xi32> to vector<8x128xi32>
    %32 = vector.broadcast %30 : vector<8x1xi32> to vector<8x128xi32>
    %33 = arith.cmpi sge, %31, %32 : vector<8x128xi32>
    %34 = arith.andi %29, %33 : vector<8x128xi1>
    %35 = vector.extract_strided_slice %10 {offsets = [0, 5], sizes = [8, 1], strides = [1, 1]} : vector<8x6xi32> to vector<8x1xi32>
    %36 = vector.broadcast %9 : vector<1x128xi32> to vector<8x128xi32>
    %37 = vector.broadcast %35 : vector<8x1xi32> to vector<8x128xi32>
    %38 = arith.cmpi slt, %36, %37 : vector<8x128xi32>
    %39 = arith.andi %34, %38 : vector<8x128xi1>
    %40 = vector.shape_cast %39 : vector<8x128xi1> to vector<1x8x128xi1>
    %41 = vector.shape_cast %6 : vector<32x128xf32> to vector<4x8x128xf32>
    %cst_11 = arith.constant -1.000000e+30 : f32
    %42 = vector.shape_cast %40 : vector<1x8x128xi1> to vector<1x8x128xi1>
    %43 = vector.broadcast %42 : vector<1x8x128xi1> to vector<4x8x128xi1>
    %44 = vector.broadcast %cst_11 : f32 to vector<4x8x128xf32>
    %45 = arith.select %43, %41, %44 : vector<4x8x128xi1>, vector<4x8x128xf32>
    %46 = vector.shape_cast %45 : vector<4x8x128xf32> to vector<32x128xf32>
    %47 = arith.truncf %46 : vector<32x128xf32> to vector<32x128xbf16>
    %c0_12 = arith.constant 0 : index
    %c0_13 = arith.constant 0 : index
    %c0_14 = arith.constant 0 : index
    %48 = vector.load %arg16[%c0_12, %c0_13, %c0_14] : memref<1x32x128xbf16, #tpu.memory_space<vmem>>, vector<1x32x128xbf16>
    %49 = vector.shape_cast %48 : vector<1x32x128xbf16> to vector<32x128xbf16>
    %50 = vector.shape_cast %47 : vector<32x128xbf16> to vector<1x32x128xbf16>
    tpu.vector_store %arg16[%c0_12, %c0_13, %c0_14], %50 {strides = array<i32>} : memref<1x32x128xbf16, #tpu.memory_space<vmem>>, vector<1x32x128xbf16>,
    %c0_15 = arith.constant 0 : index
    %c0_16 = arith.constant 0 : index
    %51 = vector.load %arg21[%c0_15, %c0_16] : memref<32x1xf32, #tpu.memory_space<vmem>>, vector<32x1xf32>
    %cst_17 = arith.constant dense<0xFF800000> : vector<32xf32>
    %52 = vector.multi_reduction <maximumf>, %46, %cst_17 [1] : vector<32x128xf32> to vector<32xf32>
    %53 = vector.shape_cast %52 : vector<32xf32> to vector<32x1xf32>
    %54 = arith.maximumf %51, %53 : vector<32x1xf32>
    %55 = arith.subf %51, %54 : vector<32x1xf32>
    %56 = math.exp %55 : vector<32x1xf32>
    %57 = vector.broadcast %54 : vector<32x1xf32> to vector<32x128xf32>
    %58 = arith.subf %46, %57 : vector<32x128xf32>
    %59 = math.exp %58 : vector<32x128xf32>
    %c0_18 = arith.constant 0 : index
    %c0_19 = arith.constant 0 : index
    %60 = vector.load %arg22[%c0_18, %c0_19] : memref<32x1xf32, #tpu.memory_space<vmem>>, vector<32x1xf32>
    %61 = arith.mulf %56, %60 : vector<32x1xf32>
    %cst_20 = arith.constant dense<0.000000e+00> : vector<32xf32>
    %62 = vector.multi_reduction <add>, %59, %cst_20 [1] : vector<32x128xf32> to vector<32xf32>
    %63 = vector.shape_cast %62 : vector<32xf32> to vector<32x1xf32>
    %64 = arith.addf %61, %63 : vector<32x1xf32>
    %c0_21 = arith.constant 0 : index
    %c0_22 = arith.constant 0 : index
    %65 = vector.load %arg22[%c0_21, %c0_22] : memref<32x1xf32, #tpu.memory_space<vmem>>, vector<32x1xf32>
    tpu.vector_store %arg22[%c0_21, %c0_22], %64 {strides = array<i32>} : memref<32x1xf32, #tpu.memory_space<vmem>>, vector<32x1xf32>,
    %66 = arith.truncf %59 : vector<32x128xf32> to vector<32x128xbf16>
    %c0_23 = arith.constant 0 : index
    %c0_24 = arith.constant 0 : index
    %67 = vector.load %arg23[%c0_23, %c0_24] : memref<32x32xf32, #tpu.memory_space<vmem>>, vector<32x32xf32>
    %68 = vector.broadcast %56 : vector<32x1xf32> to vector<32x32xf32>
    %69 = arith.mulf %68, %67 : vector<32x32xf32>
    %c0_25 = arith.constant 0 : index
    %c0_26 = arith.constant 0 : index
    %c0_27 = arith.constant 0 : index
    %70 = vector.load %arg5[%c0_25, %c0_26, %c0_27] : memref<1x128x32xbf16, #tpu.memory_space<vmem>>, vector<1x128x32xbf16>
    %71 = vector.shape_cast %70 : vector<1x128x32xbf16> to vector<128x32xbf16>
    %cst_28 = arith.constant dense<0.000000e+00> : vector<32x32xf32>
    %72 = tpu.matmul %66, %71, %cst_28 {dimension_numbers = #tpu.dot_dimension_numbers<[1], [0], [0], [1], [0, 0, 1, 1], [], []>} : vector<32x128xbf16>, vector<128x32xbf16>, vector<32x32xf32> -> vector<32x32xf32>
    %73 = arith.addf %69, %72 : vector<32x32xf32>
    %c0_29 = arith.constant 0 : index
    %c0_30 = arith.constant 0 : index
    %74 = vector.load %arg23[%c0_29, %c0_30] : memref<32x32xf32, #tpu.memory_space<vmem>>, vector<32x32xf32>
    tpu.vector_store %arg23[%c0_29, %c0_30], %73 {strides = array<i32>} : memref<32x32xf32, #tpu.memory_space<vmem>>, vector<32x32xf32>,
    %c0_31 = arith.constant 0 : index
    %c0_32 = arith.constant 0 : index
    %75 = vector.load %arg21[%c0_31, %c0_32] : memref<32x1xf32, #tpu.memory_space<vmem>>, vector<32x1xf32>
    tpu.vector_store %arg21[%c0_31, %c0_32], %54 {strides = array<i32>} : memref<32x1xf32, #tpu.memory_space<vmem>>, vector<32x1xf32>,
    %c1_i32 = arith.constant 1 : i32
    %76 = arith.cmpi eq, %arg1, %c1_i32 : i32
    %77 = arith.extui %76 : i1 to i32
    %c0_i32_33 = arith.constant 0 : i32
    %78 = arith.cmpi ne, %77, %c0_i32_33 : i32
    scf.if %78 {
      %c0_34 = arith.constant 0 : index
      %c0_35 = arith.constant 0 : index
      %79 = vector.load %arg19[%c0_34, %c0_35] : memref<8x32xf32, #tpu.memory_space<vmem>>, vector<8x32xf32>
      %c0_36 = arith.constant 0 : index
      %c0_37 = arith.constant 0 : index
      %80 = vector.load %arg22[%c0_36, %c0_37] : memref<32x1xf32, #tpu.memory_space<vmem>>, vector<32x1xf32>
      %81 = tpu.reciprocal %80 {approx = true} : vector<32x1xf32> -> vector<32x1xf32>
      %c0_38 = arith.constant 0 : index
      %c0_39 = arith.constant 0 : index
      %82 = vector.load %arg23[%c0_38, %c0_39] : memref<32x32xf32, #tpu.memory_space<vmem>>, vector<32x32xf32>
      %83 = vector.broadcast %81 : vector<32x1xf32> to vector<32x32xf32>
      %84 = arith.mulf %82, %83 : vector<32x32xf32>
      %85 = arith.truncf %84 : vector<32x32xf32> to vector<32x32xbf16>
      %c2_40 = arith.constant 2 : index
      %c0_41 = arith.constant 0 : index
      %c0_42 = arith.constant 0 : index
      %86 = vector.load %arg10[%c2_40, %c0_41, %c0_42] : memref<4x32x32xbf16, #tpu.memory_space<vmem>>, vector<1x32x32xbf16>
      %87 = vector.shape_cast %86 : vector<1x32x32xbf16> to vector<32x32xbf16>
      %88 = vector.extract_strided_slice %85 {offsets = [0, 0], sizes = [8, 32], strides = [1, 1]} : vector<32x32xbf16> to vector<8x32xbf16>
      %89 = vector.extract_strided_slice %87 {offsets = [0, 0], sizes = [32, 8], strides = [1, 1]} : vector<32x32xbf16> to vector<32x8xbf16>
      %cst_43 = arith.constant dense<0.000000e+00> : vector<8x8xf32>
      %90 = tpu.matmul %88, %89, %cst_43 {dimension_numbers = #tpu.dot_dimension_numbers<[1], [0], [0], [1], [0, 0, 1, 1], [], []>} : vector<8x32xbf16>, vector<32x8xbf16>, vector<8x8xf32> -> vector<8x8xf32>
      %91 = vector.extract_strided_slice %85 {offsets = [8, 0], sizes = [8, 32], strides = [1, 1]} : vector<32x32xbf16> to vector<8x32xbf16>
      %92 = vector.extract_strided_slice %87 {offsets = [0, 8], sizes = [32, 8], strides = [1, 1]} : vector<32x32xbf16> to vector<32x8xbf16>
      %cst_44 = arith.constant dense<0.000000e+00> : vector<8x8xf32>
      %93 = tpu.matmul %91, %92, %cst_44 {dimension_numbers = #tpu.dot_dimension_numbers<[1], [0], [0], [1], [0, 0, 1, 1], [], []>} : vector<8x32xbf16>, vector<32x8xbf16>, vector<8x8xf32> -> vector<8x8xf32>
      %94 = vector.extract_strided_slice %85 {offsets = [16, 0], sizes = [8, 32], strides = [1, 1]} : vector<32x32xbf16> to vector<8x32xbf16>
      %95 = vector.extract_strided_slice %87 {offsets = [0, 16], sizes = [32, 8], strides = [1, 1]} : vector<32x32xbf16> to vector<32x8xbf16>
      %cst_45 = arith.constant dense<0.000000e+00> : vector<8x8xf32>
      %96 = tpu.matmul %94, %95, %cst_45 {dimension_numbers = #tpu.dot_dimension_numbers<[1], [0], [0], [1], [0, 0, 1, 1], [], []>} : vector<8x32xbf16>, vector<32x8xbf16>, vector<8x8xf32> -> vector<8x8xf32>
      %97 = vector.extract_strided_slice %85 {offsets = [24, 0], sizes = [8, 32], strides = [1, 1]} : vector<32x32xbf16> to vector<8x32xbf16>
      %98 = vector.extract_strided_slice %87 {offsets = [0, 24], sizes = [32, 8], strides = [1, 1]} : vector<32x32xbf16> to vector<32x8xbf16>
      %cst_46 = arith.constant dense<0.000000e+00> : vector<8x8xf32>
      %99 = tpu.matmul %97, %98, %cst_46 {dimension_numbers = #tpu.dot_dimension_numbers<[1], [0], [0], [1], [0, 0, 1, 1], [], []>} : vector<8x32xbf16>, vector<32x8xbf16>, vector<8x8xf32> -> vector<8x8xf32>
      %100 = tpu.concatenate %90, %93, %96, %99 in 1 : vector<8x8xf32>, vector<8x8xf32>, vector<8x8xf32>, vector<8x8xf32> -> vector<8x32xf32>
      %101 = arith.truncf %100 : vector<8x32xf32> to vector<8x32xbf16>
      %c3 = arith.constant 3 : index
      %c0_47 = arith.constant 0 : index
      %c0_48 = arith.constant 0 : index
      %102 = vector.load %arg10[%c3, %c0_47, %c0_48] : memref<4x32x32xbf16, #tpu.memory_space<vmem>>, vector<1x32x32xbf16>
      %103 = vector.shape_cast %102 : vector<1x32x32xbf16> to vector<32x32xbf16>
      %cst_49 = arith.constant dense<0.000000e+00> : vector<8x32xf32>
      %104 = tpu.matmul %101, %103, %cst_49 {dimension_numbers = #tpu.dot_dimension_numbers<[1], [0], [0], [1], [0, 0, 1, 1], [], []>} : vector<8x32xbf16>, vector<32x32xbf16>, vector<8x32xf32> -> vector<8x32xf32>
      %c3_50 = arith.constant 3 : index
      %c0_51 = arith.constant 0 : index
      %105 = vector.load %arg11[%c3_50, %c0_51] : memref<9x32xf32, #tpu.memory_space<vmem>>, vector<1x32xf32>
      %106 = vector.broadcast %105 : vector<1x32xf32> to vector<8x32xf32>
      %107 = arith.addf %104, %106 : vector<8x32xf32>
      %108 = arith.addf %79, %107 : vector<8x32xf32>
      %c4 = arith.constant 4 : index
      %c0_52 = arith.constant 0 : index
      %109 = vector.load %arg11[%c4, %c0_52] : memref<9x32xf32, #tpu.memory_space<vmem>>, vector<1x32xf32>
      %c5 = arith.constant 5 : index
      %c0_53 = arith.constant 0 : index
      %110 = vector.load %arg11[%c5, %c0_53] : memref<9x32xf32, #tpu.memory_space<vmem>>, vector<1x32xf32>
      %cst_54 = arith.constant dense<0.000000e+00> : vector<8xf32>
      %111 = vector.multi_reduction <add>, %108, %cst_54 [1] : vector<8x32xf32> to vector<8xf32>
      %112 = vector.shape_cast %111 : vector<8xf32> to vector<8x1xf32>
      %cst_55 = arith.constant 3.200000e+01 : f32
      %113 = vector.broadcast %cst_55 : f32 to vector<8x1xf32>
      %114 = arith.divf %112, %113 : vector<8x1xf32>
      %115 = vector.broadcast %114 : vector<8x1xf32> to vector<8x32xf32>
      %116 = arith.subf %108, %115 : vector<8x32xf32>
      %117 = arith.mulf %116, %116 : vector<8x32xf32>
      %cst_56 = arith.constant dense<0.000000e+00> : vector<8xf32>
      %118 = vector.multi_reduction <add>, %117, %cst_56 [1] : vector<8x32xf32> to vector<8xf32>
      %119 = vector.shape_cast %118 : vector<8xf32> to vector<8x1xf32>
      %cst_57 = arith.constant 3.200000e+01 : f32
      %120 = vector.broadcast %cst_57 : f32 to vector<8x1xf32>
      %121 = arith.divf %119, %120 : vector<8x1xf32>
      %122 = vector.broadcast %114 : vector<8x1xf32> to vector<8x32xf32>
      %123 = arith.subf %108, %122 : vector<8x32xf32>
      %cst_58 = arith.constant 9.99999974E-6 : f32
      %124 = vector.broadcast %cst_58 : f32 to vector<8x1xf32>
      %125 = arith.addf %121, %124 : vector<8x1xf32>
      %126 = math.rsqrt %125 : vector<8x1xf32>
      %127 = vector.broadcast %126 : vector<8x1xf32> to vector<8x32xf32>
      %128 = arith.mulf %123, %127 : vector<8x32xf32>
      %129 = vector.broadcast %109 : vector<1x32xf32> to vector<8x32xf32>
      %130 = arith.mulf %128, %129 : vector<8x32xf32>
      %131 = vector.broadcast %110 : vector<1x32xf32> to vector<8x32xf32>
      %132 = arith.addf %130, %131 : vector<8x32xf32>
      %133 = arith.truncf %132 : vector<8x32xf32> to vector<8x32xbf16>
      %c0_59 = arith.constant 0 : index
      %c0_60 = arith.constant 0 : index
      %134 = vector.load %arg12[%c0_59, %c0_60] : memref<32x64xbf16, #tpu.memory_space<vmem>>, vector<32x64xbf16>
      %cst_61 = arith.constant dense<0.000000e+00> : vector<8x64xf32>
      %135 = tpu.matmul %133, %134, %cst_61 {dimension_numbers = #tpu.dot_dimension_numbers<[1], [0], [0], [1], [0, 0, 1, 1], [], []>} : vector<8x32xbf16>, vector<32x64xbf16>, vector<8x64xf32> -> vector<8x64xf32>
      %c0_62 = arith.constant 0 : index
      %c0_63 = arith.constant 0 : index
      %136 = vector.load %arg13[%c0_62, %c0_63] : memref<1x64xf32, #tpu.memory_space<vmem>>, vector<1x64xf32>
      %137 = vector.broadcast %136 : vector<1x64xf32> to vector<8x64xf32>
      %138 = arith.addf %135, %137 : vector<8x64xf32>
      %cst_64 = arith.constant 0.000000e+00 : f32
      %139 = vector.broadcast %cst_64 : f32 to vector<8x64xf32>
      %140 = arith.maximumf %138, %139 : vector<8x64xf32>
      %141 = arith.truncf %140 : vector<8x64xf32> to vector<8x64xbf16>
      %c0_65 = arith.constant 0 : index
      %c0_66 = arith.constant 0 : index
      %142 = vector.load %arg14[%c0_65, %c0_66] : memref<64x32xbf16, #tpu.memory_space<vmem>>, vector<64x32xbf16>
      %cst_67 = arith.constant dense<0.000000e+00> : vector<8x32xf32>
      %143 = tpu.matmul %141, %142, %cst_67 {dimension_numbers = #tpu.dot_dimension_numbers<[1], [0], [0], [1], [0, 0, 1, 1], [], []>} : vector<8x64xbf16>, vector<64x32xbf16>, vector<8x32xf32> -> vector<8x32xf32>
      %c6 = arith.constant 6 : index
      %c0_68 = arith.constant 0 : index
      %144 = vector.load %arg11[%c6, %c0_68] : memref<9x32xf32, #tpu.memory_space<vmem>>, vector<1x32xf32>
      %145 = vector.broadcast %144 : vector<1x32xf32> to vector<8x32xf32>
      %146 = arith.addf %143, %145 : vector<8x32xf32>
      %147 = arith.addf %132, %146 : vector<8x32xf32>
      %c7 = arith.constant 7 : index
      %c0_69 = arith.constant 0 : index
      %148 = vector.load %arg11[%c7, %c0_69] : memref<9x32xf32, #tpu.memory_space<vmem>>, vector<1x32xf32>
      %c8 = arith.constant 8 : index
      %c0_70 = arith.constant 0 : index
      %149 = vector.load %arg11[%c8, %c0_70] : memref<9x32xf32, #tpu.memory_space<vmem>>, vector<1x32xf32>
      %cst_71 = arith.constant dense<0.000000e+00> : vector<8xf32>
      %150 = vector.multi_reduction <add>, %147, %cst_71 [1] : vector<8x32xf32> to vector<8xf32>
      %151 = vector.shape_cast %150 : vector<8xf32> to vector<8x1xf32>
      %cst_72 = arith.constant 3.200000e+01 : f32
      %152 = vector.broadcast %cst_72 : f32 to vector<8x1xf32>
      %153 = arith.divf %151, %152 : vector<8x1xf32>
      %154 = vector.broadcast %153 : vector<8x1xf32> to vector<8x32xf32>
      %155 = arith.subf %147, %154 : vector<8x32xf32>
      %156 = arith.mulf %155, %155 : vector<8x32xf32>
      %cst_73 = arith.constant dense<0.000000e+00> : vector<8xf32>
      %157 = vector.multi_reduction <add>, %156, %cst_73 [1] : vector<8x32xf32> to vector<8xf32>
      %158 = vector.shape_cast %157 : vector<8xf32> to vector<8x1xf32>
      %cst_74 = arith.constant 3.200000e+01 : f32
      %159 = vector.broadcast %cst_74 : f32 to vector<8x1xf32>
      %160 = arith.divf %158, %159 : vector<8x1xf32>
      %161 = vector.broadcast %153 : vector<8x1xf32> to vector<8x32xf32>
      %162 = arith.subf %147, %161 : vector<8x32xf32>
      %cst_75 = arith.constant 9.99999974E-6 : f32
      %163 = vector.broadcast %cst_75 : f32 to vector<8x1xf32>
      %164 = arith.addf %160, %163 : vector<8x1xf32>
      %165 = math.rsqrt %164 : vector<8x1xf32>
      %166 = vector.broadcast %165 : vector<8x1xf32> to vector<8x32xf32>
      %167 = arith.mulf %162, %166 : vector<8x32xf32>
      %168 = vector.broadcast %148 : vector<1x32xf32> to vector<8x32xf32>
      %169 = arith.mulf %167, %168 : vector<8x32xf32>
      %170 = vector.broadcast %149 : vector<1x32xf32> to vector<8x32xf32>
      %171 = arith.addf %169, %170 : vector<8x32xf32>
      %c0_76 = arith.constant 0 : index
      %c0_77 = arith.constant 0 : index
      %c0_78 = arith.constant 0 : index
      %172 = vector.load %arg15[%c0_76, %c0_77, %c0_78] : memref<1x8x32xf32, #tpu.memory_space<vmem>>, vector<1x8x32xf32>
      %173 = vector.shape_cast %172 : vector<1x8x32xf32> to vector<8x32xf32>
      %174 = vector.shape_cast %171 : vector<8x32xf32> to vector<1x8x32xf32>
      tpu.vector_store %arg15[%c0_76, %c0_77, %c0_78], %174 {strides = array<i32>} : memref<1x8x32xf32, #tpu.memory_space<vmem>>, vector<1x8x32xf32>,
      %c0_79 = arith.constant 0 : index
      %c0_80 = arith.constant 0 : index
      %175 = vector.load %arg21[%c0_79, %c0_80] : memref<32x1xf32, #tpu.memory_space<vmem>>, vector<32x1xf32>
      %c0_81 = arith.constant 0 : index
      %c0_82 = arith.constant 0 : index
      %c0_83 = arith.constant 0 : index
      %176 = vector.load %arg17[%c0_81, %c0_82, %c0_83] : memref<1x32x1xf32, #tpu.memory_space<vmem>>, vector<1x32x1xf32>
      %177 = vector.shape_cast %176 : vector<1x32x1xf32> to vector<32x1xf32>
      %178 = vector.shape_cast %175 : vector<32x1xf32> to vector<1x32x1xf32>
      tpu.vector_store %arg17[%c0_81, %c0_82, %c0_83], %178 {strides = array<i32>} : memref<1x32x1xf32, #tpu.memory_space<vmem>>, vector<1x32x1xf32>,
      %c0_84 = arith.constant 0 : index
      %c0_85 = arith.constant 0 : index
      %179 = vector.load %arg22[%c0_84, %c0_85] : memref<32x1xf32, #tpu.memory_space<vmem>>, vector<32x1xf32>
      %c0_86 = arith.constant 0 : index
      %c0_87 = arith.constant 0 : index
      %c0_88 = arith.constant 0 : index
      %180 = vector.load %arg18[%c0_86, %c0_87, %c0_88] : memref<1x32x1xf32, #tpu.memory_space<vmem>>, vector<1x32x1xf32>
      %181 = vector.shape_cast %180 : vector<1x32x1xf32> to vector<32x1xf32>
      %182 = vector.shape_cast %179 : vector<32x1xf32> to vector<1x32x1xf32>
      tpu.vector_store %arg18[%c0_86, %c0_87, %c0_88], %182 {strides = array<i32>} : memref<1x32x1xf32, #tpu.memory_space<vmem>>, vector<1x32x1xf32>,
    } else {
    }
    return
  }
  func.func @transform_0(%arg0: i32, %arg1: i32) -> (i32, i32, i32) {
    %c0_i32 = arith.constant 0 : i32
    %c0_i32_0 = arith.constant 0 : i32
    %c0_i32_1 = arith.constant 0 : i32
    return %arg0, %c0_i32, %c0_i32_0 : i32, i32, i32
  }
  func.func @transform_1(%arg0: i32, %arg1: i32) -> (i32, i32, i32) {
    %c0_i32 = arith.constant 0 : i32
    %c0_i32_0 = arith.constant 0 : i32
    %c0_i32_1 = arith.constant 0 : i32
    return %arg0, %c0_i32, %c0_i32_0 : i32, i32, i32
  }
  func.func @transform_2(%arg0: i32, %arg1: i32) -> (i32, i32, i32) {
    %c0_i32 = arith.constant 0 : i32
    %c0_i32_0 = arith.constant 0 : i32
    return %arg0, %c0_i32, %arg1 : i32, i32, i32
  }
  func.func @transform_3(%arg0: i32, %arg1: i32) -> (i32, i32, i32) {
    %c0_i32 = arith.constant 0 : i32
    %c0_i32_0 = arith.constant 0 : i32
    return %arg0, %arg1, %c0_i32 : i32, i32, i32
  }
  func.func @transform_4(%arg0: i32, %arg1: i32) -> (i32, i32) {
    %c0_i32 = arith.constant 0 : i32
    %c0_i32_0 = arith.constant 0 : i32
    return %c0_i32, %arg1 : i32, i32
  }
  func.func @transform_5(%arg0: i32, %arg1: i32) -> (i32, i32) {
    %c0_i32 = arith.constant 0 : i32
    %c0_i32_0 = arith.constant 0 : i32
    %c0_i32_1 = arith.constant 0 : i32
    return %c0_i32, %c0_i32_0 : i32, i32
  }
  func.func @transform_6(%arg0: i32, %arg1: i32) -> (i32, i32, i32) {
    %c0_i32 = arith.constant 0 : i32
    %c0_i32_0 = arith.constant 0 : i32
    %c0_i32_1 = arith.constant 0 : i32
    %c0_i32_2 = arith.constant 0 : i32
    return %c0_i32, %c0_i32_0, %c0_i32_1 : i32, i32, i32
  }
  func.func @transform_7(%arg0: i32, %arg1: i32) -> (i32, i32) {
    %c0_i32 = arith.constant 0 : i32
    %c0_i32_0 = arith.constant 0 : i32
    %c0_i32_1 = arith.constant 0 : i32
    return %c0_i32, %c0_i32_0 : i32, i32
  }
  func.func @transform_8(%arg0: i32, %arg1: i32) -> (i32, i32, i32) {
    %c0_i32 = arith.constant 0 : i32
    %c0_i32_0 = arith.constant 0 : i32
    %c0_i32_1 = arith.constant 0 : i32
    %c0_i32_2 = arith.constant 0 : i32
    return %c0_i32, %c0_i32_0, %c0_i32_1 : i32, i32, i32
  }
  func.func @transform_9(%arg0: i32, %arg1: i32) -> (i32, i32) {
    %c0_i32 = arith.constant 0 : i32
    %c0_i32_0 = arith.constant 0 : i32
    %c0_i32_1 = arith.constant 0 : i32
    return %c0_i32, %c0_i32_0 : i32, i32
  }
  func.func @transform_10(%arg0: i32, %arg1: i32) -> (i32, i32) {
    %c0_i32 = arith.constant 0 : i32
    %c0_i32_0 = arith.constant 0 : i32
    %c0_i32_1 = arith.constant 0 : i32
    return %c0_i32, %c0_i32_0 : i32, i32
  }
  func.func @transform_11(%arg0: i32, %arg1: i32) -> (i32, i32) {
    %c0_i32 = arith.constant 0 : i32
    %c0_i32_0 = arith.constant 0 : i32
    %c0_i32_1 = arith.constant 0 : i32
    return %c0_i32, %c0_i32_0 : i32, i32
  }
  func.func @transform_12(%arg0: i32, %arg1: i32) -> (i32, i32) {
    %c0_i32 = arith.constant 0 : i32
    %c0_i32_0 = arith.constant 0 : i32
    %c0_i32_1 = arith.constant 0 : i32
    return %c0_i32, %c0_i32_0 : i32, i32
  }
  func.func @transform_13(%arg0: i32, %arg1: i32) -> (i32, i32, i32) {
    %c0_i32 = arith.constant 0 : i32
    %c0_i32_0 = arith.constant 0 : i32
    %c0_i32_1 = arith.constant 0 : i32
    return %arg0, %c0_i32, %c0_i32_0 : i32, i32, i32
  }
  func.func @transform_14(%arg0: i32, %arg1: i32) -> (i32, i32, i32) {
    %c0_i32 = arith.constant 0 : i32
    %c0_i32_0 = arith.constant 0 : i32
    return %arg0, %c0_i32, %arg1 : i32, i32, i32
  }
  func.func @transform_15(%arg0: i32, %arg1: i32) -> (i32, i32, i32) {
    %c0_i32 = arith.constant 0 : i32
    %c0_i32_0 = arith.constant 0 : i32
    %c0_i32_1 = arith.constant 0 : i32
    return %arg0, %c0_i32, %c0_i32_0 : i32, i32, i32
  }
  func.func @transform_16(%arg0: i32, %arg1: i32) -> (i32, i32, i32) {
    %c0_i32 = arith.constant 0 : i32
    %c0_i32_0 = arith.constant 0 : i32
    %c0_i32_1 = arith.constant 0 : i32
    return %arg0, %c0_i32, %c0_i32_0 : i32, i32, i32
  }
}

module attributes {stable_mosaic.version = 11 : i64} {
  func.func @_focused_decoder_layer_kernel(%arg0: i32, %arg1: i32, %arg2: memref<1x8x32xf32, #tpu.memory_space<vmem>>, %arg3: memref<1x8x32xf32, #tpu.memory_space<vmem>>, %arg4: memref<1x32x128xbf16, #tpu.memory_space<vmem>>, %arg5: memref<1x128x32xbf16, #tpu.memory_space<vmem>>, %arg6: memref<3x128xi32, #tpu.memory_space<vmem>>, %arg7: memref<8x6xi32, #tpu.memory_space<vmem>>, %arg8: memref<4x32x32xbf16, #tpu.memory_space<vmem>>, %arg9: memref<3x32xf32, #tpu.memory_space<vmem>>, %arg10: memref<4x32x32xbf16, #tpu.memory_space<vmem>>, %arg11: memref<9x32xf32, #tpu.memory_space<vmem>>, %arg12: memref<32x64xbf16, #tpu.memory_space<vmem>>, %arg13: memref<1x64xf32, #tpu.memory_space<vmem>>, %arg14: memref<64x32xbf16, #tpu.memory_space<vmem>>, %arg15: memref<1x8x32xf32, #tpu.memory_space<vmem>>, %arg16: memref<1x32x128xbf16, #tpu.memory_space<vmem>>, %arg17: memref<1x32x1xf32, #tpu.memory_space<vmem>>, %arg18: memref<1x32x1xf32, #tpu.memory_space<vmem>>, %arg19: memref<8x32xf32, #tpu.memory_space<vmem>>, %arg20: memref<32x32xbf16, #tpu.memory_space<vmem>>, %arg21: memref<32x1xf32, #tpu.memory_space<vmem>>, %arg22: memref<32x1xf32, #tpu.memory_space<vmem>>, %arg23: memref<32x32xf32, #tpu.memory_space<vmem>>) attributes {dimension_semantics = [#tpu.dimension_semantics<parallel>, #tpu.dimension_semantics<arbitrary>], iteration_bounds = array<i64: 2, 2>, scalar_prefetch = 0 : i64, scratch_operands = 5 : i64, tpu.core_type = #tpu.core_type<tc>, window_params = [{transform_indices = @transform_0, window_bounds = array<i64: 1, 8, 32>}, {transform_indices = @transform_1, window_bounds = array<i64: 1, 8, 32>}, {transform_indices = @transform_2, window_bounds = array<i64: 1, 32, 128>}, {transform_indices = @transform_3, window_bounds = array<i64: 1, 128, 32>}, {transform_indices = @transform_4, window_bounds = array<i64: 3, 128>}, {pipeline_mode = #tpu.pipeline_mode<synchronous>, transform_indices = @transform_5, window_bounds = array<i64: 8, 6>}, {pipeline_mode = #tpu.pipeline_mode<synchronous>, transform_indices = @transform_6, window_bounds = array<i64: 4, 32, 32>}, {pipeline_mode = #tpu.pipeline_mode<synchronous>, transform_indices = @transform_7, window_bounds = array<i64: 3, 32>}, {pipeline_mode = #tpu.pipeline_mode<synchronous>, transform_indices = @transform_8, window_bounds = array<i64: 4, 32, 32>}, {pipeline_mode = #tpu.pipeline_mode<synchronous>, transform_indices = @transform_9, window_bounds = array<i64: 9, 32>}, {pipeline_mode = #tpu.pipeline_mode<synchronous>, transform_indices = @transform_10, window_bounds = array<i64: 32, 64>}, {pipeline_mode = #tpu.pipeline_mode<synchronous>, transform_indices = @transform_11, window_bounds = array<i64: 1, 64>}, {pipeline_mode = #tpu.pipeline_mode<synchronous>, transform_indices = @transform_12, window_bounds = array<i64: 64, 32>}, {transform_indices = @transform_13, window_bounds = array<i64: 1, 8, 32>}, {transform_indices = @transform_14, window_bounds = array<i64: 1, 32, 128>}, {transform_indices = @transform_15, window_bounds = array<i64: 1, 32, 1>}, {transform_indices = @transform_16, window_bounds = array<i64: 1, 32, 1>}]} {
    %c0_i32 = arith.constant 0 : i32
    %0 = arith.cmpi eq, %arg1, %c0_i32 : i32
    %1 = arith.extui %0 : i1 to i32
    %c0_i32_0 = arith.constant 0 : i32
    %2 = arith.cmpi ne, %1, %c0_i32_0 : i32
    scf.if %2 {
      %c0_34 = arith.constant 0 : index
      %c0_35 = arith.constant 0 : index
      %c0_36 = arith.constant 0 : index
      %79 = vector.load %arg2[%c0_34, %c0_35, %c0_36] : memref<1x8x32xf32, #tpu.memory_space<vmem>>, vector<1x8x32xf32>
      %80 = vector.shape_cast %79 : vector<1x8x32xf32> to vector<8x32xf32>
      %c0_37 = arith.constant 0 : index
      %c0_38 = arith.constant 0 : index
      %c0_39 = arith.constant 0 : index
      %81 = vector.load %arg3[%c0_37, %c0_38, %c0_39] : memref<1x8x32xf32, #tpu.memory_space<vmem>>, vector<1x8x32xf32>
      %82 = vector.shape_cast %81 : vector<1x8x32xf32> to vector<8x32xf32>
      %83 = arith.addf %80, %82 : vector<8x32xf32>
      %84 = arith.truncf %83 : vector<8x32xf32> to vector<8x32xbf16>
      %c0_40 = arith.constant 0 : index
      %c0_41 = arith.constant 0 : index
      %c0_42 = arith.constant 0 : index
      %85 = vector.load %arg8[%c0_40, %c0_41, %c0_42] : memref<4x32x32xbf16, #tpu.memory_space<vmem>>, vector<1x32x32xbf16>
      %86 = vector.shape_cast %85 : vector<1x32x32xbf16> to vector<32x32xbf16>
      %cst_43 = arith.constant dense<0.000000e+00> : vector<8x32xf32>
      %87 = tpu.matmul %84, %86, %cst_43 {dimension_numbers = #tpu.dot_dimension_numbers<[1], [0], [0], [1], [0, 0, 1, 1], [], []>} : vector<8x32xbf16>, vector<32x32xbf16>, vector<8x32xf32> -> vector<8x32xf32>
      %c0_44 = arith.constant 0 : index
      %c0_45 = arith.constant 0 : index
      %88 = vector.load %arg9[%c0_44, %c0_45] : memref<3x32xf32, #tpu.memory_space<vmem>>, vector<1x32xf32>
      %89 = vector.broadcast %88 : vector<1x32xf32> to vector<8x32xf32>
      %90 = arith.addf %87, %89 : vector<8x32xf32>
      %c1_46 = arith.constant 1 : index
      %c0_47 = arith.constant 0 : index
      %c0_48 = arith.constant 0 : index
      %91 = vector.load %arg8[%c1_46, %c0_47, %c0_48] : memref<4x32x32xbf16, #tpu.memory_space<vmem>>, vector<1x32x32xbf16>
      %92 = vector.shape_cast %91 : vector<1x32x32xbf16> to vector<32x32xbf16>
      %cst_49 = arith.constant dense<0.000000e+00> : vector<8x32xf32>
      %93 = tpu.matmul %84, %92, %cst_49 {dimension_numbers = #tpu.dot_dimension_numbers<[1], [0], [0], [1], [0, 0, 1, 1], [], []>} : vector<8x32xbf16>, vector<32x32xbf16>, vector<8x32xf32> -> vector<8x32xf32>
      %c1_50 = arith.constant 1 : index
      %c0_51 = arith.constant 0 : index
      %94 = vector.load %arg9[%c1_50, %c0_51] : memref<3x32xf32, #tpu.memory_space<vmem>>, vector<1x32xf32>
      %95 = vector.broadcast %94 : vector<1x32xf32> to vector<8x32xf32>
      %96 = arith.addf %93, %95 : vector<8x32xf32>
      %97 = arith.truncf %80 : vector<8x32xf32> to vector<8x32xbf16>
      %c2_52 = arith.constant 2 : index
      %c0_53 = arith.constant 0 : index
      %c0_54 = arith.constant 0 : index
      %98 = vector.load %arg8[%c2_52, %c0_53, %c0_54] : memref<4x32x32xbf16, #tpu.memory_space<vmem>>, vector<1x32x32xbf16>
      %99 = vector.shape_cast %98 : vector<1x32x32xbf16> to vector<32x32xbf16>
      %cst_55 = arith.constant dense<0.000000e+00> : vector<8x32xf32>
      %100 = tpu.matmul %97, %99, %cst_55 {dimension_numbers = #tpu.dot_dimension_numbers<[1], [0], [0], [1], [0, 0, 1, 1], [], []>} : vector<8x32xbf16>, vector<32x32xbf16>, vector<8x32xf32> -> vector<8x32xf32>
      %c2_56 = arith.constant 2 : index
      %c0_57 = arith.constant 0 : index
      %101 = vector.load %arg9[%c2_56, %c0_57] : memref<3x32xf32, #tpu.memory_space<vmem>>, vector<1x32xf32>
      %102 = vector.broadcast %101 : vector<1x32xf32> to vector<8x32xf32>
      %103 = arith.addf %100, %102 : vector<8x32xf32>
      %104 = vector.extract_strided_slice %90 {offsets = [0, 0], sizes = [8, 8], strides = [1, 1]} : vector<8x32xf32> to vector<8x8xf32>
      %105 = vector.extract_strided_slice %96 {offsets = [0, 0], sizes = [8, 8], strides = [1, 1]} : vector<8x32xf32> to vector<8x8xf32>
      %106 = vector.extract_strided_slice %103 {offsets = [0, 0], sizes = [8, 8], strides = [1, 1]} : vector<8x32xf32> to vector<8x8xf32>
      %cst_58 = arith.constant dense<0.000000e+00> : vector<8x8xf32>
      %107 = tpu.matmul %104, %105, %cst_58 {dimension_numbers = #tpu.dot_dimension_numbers<[1], [1], [0], [0], [0, 0, 1, 0], [], []>} : vector<8x8xf32>, vector<8x8xf32>, vector<8x8xf32> -> vector<8x8xf32>
      %cst_59 = arith.constant 0.353553385 : f32
      %108 = vector.broadcast %cst_59 : f32 to vector<8x8xf32>
      %109 = arith.mulf %107, %108 : vector<8x8xf32>
      %cst_60 = arith.constant dense<0xFF800000> : vector<8xf32>
      %110 = vector.multi_reduction <maximumf>, %109, %cst_60 [1] : vector<8x8xf32> to vector<8xf32>
      %111 = vector.shape_cast %110 : vector<8xf32> to vector<8x1xf32>
      %112 = vector.broadcast %111 : vector<8x1xf32> to vector<8x8xf32>
      %113 = arith.subf %109, %112 : vector<8x8xf32>
      %114 = math.exp %113 : vector<8x8xf32>
      %cst_61 = arith.constant dense<0.000000e+00> : vector<8xf32>
      %115 = vector.multi_reduction <add>, %114, %cst_61 [1] : vector<8x8xf32> to vector<8xf32>
      %116 = vector.shape_cast %115 : vector<8xf32> to vector<8x1xf32>
      %117 = vector.broadcast %116 : vector<8x1xf32> to vector<8x8xf32>
      %118 = arith.divf %114, %117 : vector<8x8xf32>
      %cst_62 = arith.constant dense<0.000000e+00> : vector<8x8xf32>
      %119 = tpu.matmul %118, %106, %cst_62 {dimension_numbers = #tpu.dot_dimension_numbers<[1], [0], [0], [1], [0, 0, 1, 1], [], []>} : vector<8x8xf32>, vector<8x8xf32>, vector<8x8xf32> -> vector<8x8xf32>
      %120 = vector.extract_strided_slice %90 {offsets = [0, 8], sizes = [8, 8], strides = [1, 1]} : vector<8x32xf32> to vector<8x8xf32>
      %121 = vector.extract_strided_slice %96 {offsets = [0, 8], sizes = [8, 8], strides = [1, 1]} : vector<8x32xf32> to vector<8x8xf32>
      %122 = vector.extract_strided_slice %103 {offsets = [0, 8], sizes = [8, 8], strides = [1, 1]} : vector<8x32xf32> to vector<8x8xf32>
      %cst_63 = arith.constant dense<0.000000e+00> : vector<8x8xf32>
      %123 = tpu.matmul %120, %121, %cst_63 {dimension_numbers = #tpu.dot_dimension_numbers<[1], [1], [0], [0], [0, 0, 1, 0], [], []>} : vector<8x8xf32>, vector<8x8xf32>, vector<8x8xf32> -> vector<8x8xf32>
      %cst_64 = arith.constant 0.353553385 : f32
      %124 = vector.broadcast %cst_64 : f32 to vector<8x8xf32>
      %125 = arith.mulf %123, %124 : vector<8x8xf32>
      %cst_65 = arith.constant dense<0xFF800000> : vector<8xf32>
      %126 = vector.multi_reduction <maximumf>, %125, %cst_65 [1] : vector<8x8xf32> to vector<8xf32>
      %127 = vector.shape_cast %126 : vector<8xf32> to vector<8x1xf32>
      %128 = vector.broadcast %127 : vector<8x1xf32> to vector<8x8xf32>
      %129 = arith.subf %125, %128 : vector<8x8xf32>
      %130 = math.exp %129 : vector<8x8xf32>
      %cst_66 = arith.constant dense<0.000000e+00> : vector<8xf32>
      %131 = vector.multi_reduction <add>, %130, %cst_66 [1] : vector<8x8xf32> to vector<8xf32>
      %132 = vector.shape_cast %131 : vector<8xf32> to vector<8x1xf32>
      %133 = vector.broadcast %132 : vector<8x1xf32> to vector<8x8xf32>
      %134 = arith.divf %130, %133 : vector<8x8xf32>
      %cst_67 = arith.constant dense<0.000000e+00> : vector<8x8xf32>
      %135 = tpu.matmul %134, %122, %cst_67 {dimension_numbers = #tpu.dot_dimension_numbers<[1], [0], [0], [1], [0, 0, 1, 1], [], []>} : vector<8x8xf32>, vector<8x8xf32>, vector<8x8xf32> -> vector<8x8xf32>
      %136 = vector.extract_strided_slice %90 {offsets = [0, 16], sizes = [8, 8], strides = [1, 1]} : vector<8x32xf32> to vector<8x8xf32>
      %137 = vector.extract_strided_slice %96 {offsets = [0, 16], sizes = [8, 8], strides = [1, 1]} : vector<8x32xf32> to vector<8x8xf32>
      %138 = vector.extract_strided_slice %103 {offsets = [0, 16], sizes = [8, 8], strides = [1, 1]} : vector<8x32xf32> to vector<8x8xf32>
      %cst_68 = arith.constant dense<0.000000e+00> : vector<8x8xf32>
      %139 = tpu.matmul %136, %137, %cst_68 {dimension_numbers = #tpu.dot_dimension_numbers<[1], [1], [0], [0], [0, 0, 1, 0], [], []>} : vector<8x8xf32>, vector<8x8xf32>, vector<8x8xf32> -> vector<8x8xf32>
      %cst_69 = arith.constant 0.353553385 : f32
      %140 = vector.broadcast %cst_69 : f32 to vector<8x8xf32>
      %141 = arith.mulf %139, %140 : vector<8x8xf32>
      %cst_70 = arith.constant dense<0xFF800000> : vector<8xf32>
      %142 = vector.multi_reduction <maximumf>, %141, %cst_70 [1] : vector<8x8xf32> to vector<8xf32>
      %143 = vector.shape_cast %142 : vector<8xf32> to vector<8x1xf32>
      %144 = vector.broadcast %143 : vector<8x1xf32> to vector<8x8xf32>
      %145 = arith.subf %141, %144 : vector<8x8xf32>
      %146 = math.exp %145 : vector<8x8xf32>
      %cst_71 = arith.constant dense<0.000000e+00> : vector<8xf32>
      %147 = vector.multi_reduction <add>, %146, %cst_71 [1] : vector<8x8xf32> to vector<8xf32>
      %148 = vector.shape_cast %147 : vector<8xf32> to vector<8x1xf32>
      %149 = vector.broadcast %148 : vector<8x1xf32> to vector<8x8xf32>
      %150 = arith.divf %146, %149 : vector<8x8xf32>
      %cst_72 = arith.constant dense<0.000000e+00> : vector<8x8xf32>
      %151 = tpu.matmul %150, %138, %cst_72 {dimension_numbers = #tpu.dot_dimension_numbers<[1], [0], [0], [1], [0, 0, 1, 1], [], []>} : vector<8x8xf32>, vector<8x8xf32>, vector<8x8xf32> -> vector<8x8xf32>
      %152 = vector.extract_strided_slice %90 {offsets = [0, 24], sizes = [8, 8], strides = [1, 1]} : vector<8x32xf32> to vector<8x8xf32>
      %153 = vector.extract_strided_slice %96 {offsets = [0, 24], sizes = [8, 8], strides = [1, 1]} : vector<8x32xf32> to vector<8x8xf32>
      %154 = vector.extract_strided_slice %103 {offsets = [0, 24], sizes = [8, 8], strides = [1, 1]} : vector<8x32xf32> to vector<8x8xf32>
      %cst_73 = arith.constant dense<0.000000e+00> : vector<8x8xf32>
      %155 = tpu.matmul %152, %153, %cst_73 {dimension_numbers = #tpu.dot_dimension_numbers<[1], [1], [0], [0], [0, 0, 1, 0], [], []>} : vector<8x8xf32>, vector<8x8xf32>, vector<8x8xf32> -> vector<8x8xf32>
      %cst_74 = arith.constant 0.353553385 : f32
      %156 = vector.broadcast %cst_74 : f32 to vector<8x8xf32>
      %157 = arith.mulf %155, %156 : vector<8x8xf32>
      %cst_75 = arith.constant dense<0xFF800000> : vector<8xf32>
      %158 = vector.multi_reduction <maximumf>, %157, %cst_75 [1] : vector<8x8xf32> to vector<8xf32>
      %159 = vector.shape_cast %158 : vector<8xf32> to vector<8x1xf32>
      %160 = vector.broadcast %159 : vector<8x1xf32> to vector<8x8xf32>
      %161 = arith.subf %157, %160 : vector<8x8xf32>
      %162 = math.exp %161 : vector<8x8xf32>
      %cst_76 = arith.constant dense<0.000000e+00> : vector<8xf32>
      %163 = vector.multi_reduction <add>, %162, %cst_76 [1] : vector<8x8xf32> to vector<8xf32>
      %164 = vector.shape_cast %163 : vector<8xf32> to vector<8x1xf32>
      %165 = vector.broadcast %164 : vector<8x1xf32> to vector<8x8xf32>
      %166 = arith.divf %162, %165 : vector<8x8xf32>
      %cst_77 = arith.constant dense<0.000000e+00> : vector<8x8xf32>
      %167 = tpu.matmul %166, %154, %cst_77 {dimension_numbers = #tpu.dot_dimension_numbers<[1], [0], [0], [1], [0, 0, 1, 1], [], []>} : vector<8x8xf32>, vector<8x8xf32>, vector<8x8xf32> -> vector<8x8xf32>
      %168 = tpu.concatenate %119, %135, %151, %167 in 1 : vector<8x8xf32>, vector<8x8xf32>, vector<8x8xf32>, vector<8x8xf32> -> vector<8x32xf32>
      %169 = arith.truncf %168 : vector<8x32xf32> to vector<8x32xbf16>
      %c3 = arith.constant 3 : index
      %c0_78 = arith.constant 0 : index
      %c0_79 = arith.constant 0 : index
      %170 = vector.load %arg8[%c3, %c0_78, %c0_79] : memref<4x32x32xbf16, #tpu.memory_space<vmem>>, vector<1x32x32xbf16>
      %171 = vector.shape_cast %170 : vector<1x32x32xbf16> to vector<32x32xbf16>
      %cst_80 = arith.constant dense<0.000000e+00> : vector<8x32xf32>
      %172 = tpu.matmul %169, %171, %cst_80 {dimension_numbers = #tpu.dot_dimension_numbers<[1], [0], [0], [1], [0, 0, 1, 1], [], []>} : vector<8x32xbf16>, vector<32x32xbf16>, vector<8x32xf32> -> vector<8x32xf32>
      %c0_81 = arith.constant 0 : index
      %c0_82 = arith.constant 0 : index
      %173 = vector.load %arg11[%c0_81, %c0_82] : memref<9x32xf32, #tpu.memory_space<vmem>>, vector<1x32xf32>
      %174 = vector.broadcast %173 : vector<1x32xf32> to vector<8x32xf32>
      %175 = arith.addf %172, %174 : vector<8x32xf32>
      %176 = arith.addf %80, %175 : vector<8x32xf32>
      %c1_83 = arith.constant 1 : index
      %c0_84 = arith.constant 0 : index
      %177 = vector.load %arg11[%c1_83, %c0_84] : memref<9x32xf32, #tpu.memory_space<vmem>>, vector<1x32xf32>
      %c2_85 = arith.constant 2 : index
      %c0_86 = arith.constant 0 : index
      %178 = vector.load %arg11[%c2_85, %c0_86] : memref<9x32xf32, #tpu.memory_space<vmem>>, vector<1x32xf32>
      %cst_87 = arith.constant dense<0.000000e+00> : vector<8xf32>
      %179 = vector.multi_reduction <add>, %176, %cst_87 [1] : vector<8x32xf32> to vector<8xf32>
      %180 = vector.shape_cast %179 : vector<8xf32> to vector<8x1xf32>
      %cst_88 = arith.constant 3.200000e+01 : f32
      %181 = vector.broadcast %cst_88 : f32 to vector<8x1xf32>
      %182 = arith.divf %180, %181 : vector<8x1xf32>
      %183 = vector.broadcast %182 : vector<8x1xf32> to vector<8x32xf32>
      %184 = arith.subf %176, %183 : vector<8x32xf32>
      %185 = arith.mulf %184, %184 : vector<8x32xf32>
      %cst_89 = arith.constant dense<0.000000e+00> : vector<8xf32>
      %186 = vector.multi_reduction <add>, %185, %cst_89 [1] : vector<8x32xf32> to vector<8xf32>
      %187 = vector.shape_cast %186 : vector<8xf32> to vector<8x1xf32>
      %cst_90 = arith.constant 3.200000e+01 : f32
      %188 = vector.broadcast %cst_90 : f32 to vector<8x1xf32>
      %189 = arith.divf %187, %188 : vector<8x1xf32>
      %190 = vector.broadcast %182 : vector<8x1xf32> to vector<8x32xf32>
      %191 = arith.subf %176, %190 : vector<8x32xf32>
      %cst_91 = arith.constant 9.99999974E-6 : f32
      %192 = vector.broadcast %cst_91 : f32 to vector<8x1xf32>
      %193 = arith.addf %189, %192 : vector<8x1xf32>
      %194 = math.rsqrt %193 : vector<8x1xf32>
      %195 = vector.broadcast %194 : vector<8x1xf32> to vector<8x32xf32>
      %196 = arith.mulf %191, %195 : vector<8x32xf32>
      %197 = vector.broadcast %177 : vector<1x32xf32> to vector<8x32xf32>
      %198 = arith.mulf %196, %197 : vector<8x32xf32>
      %199 = vector.broadcast %178 : vector<1x32xf32> to vector<8x32xf32>
      %200 = arith.addf %198, %199 : vector<8x32xf32>
      %c0_92 = arith.constant 0 : index
      %c0_93 = arith.constant 0 : index
      %201 = vector.load %arg19[%c0_92, %c0_93] : memref<8x32xf32, #tpu.memory_space<vmem>>, vector<8x32xf32>
      tpu.vector_store %arg19[%c0_92, %c0_93], %200 {strides = array<i32>} : memref<8x32xf32, #tpu.memory_space<vmem>>, vector<8x32xf32>,
      %c0_94 = arith.constant 0 : index
      %c0_95 = arith.constant 0 : index
      %c0_96 = arith.constant 0 : index
      %202 = vector.load %arg10[%c0_94, %c0_95, %c0_96] : memref<4x32x32xbf16, #tpu.memory_space<vmem>>, vector<1x32x32xbf16>
      %203 = vector.shape_cast %202 : vector<1x32x32xbf16> to vector<32x32xbf16>
      %c1_97 = arith.constant 1 : index
      %c0_98 = arith.constant 0 : index
      %c0_99 = arith.constant 0 : index
      %204 = vector.load %arg10[%c1_97, %c0_98, %c0_99] : memref<4x32x32xbf16, #tpu.memory_space<vmem>>, vector<1x32x32xbf16>
      %205 = vector.shape_cast %204 : vector<1x32x32xbf16> to vector<32x32xbf16>
      %206 = arith.addf %200, %82 : vector<8x32xf32>
      %207 = arith.truncf %206 : vector<8x32xf32> to vector<8x32xbf16>
      %cst_100 = arith.constant dense<0.000000e+00> : vector<8x32xf32>
      %208 = tpu.matmul %207, %205, %cst_100 {dimension_numbers = #tpu.dot_dimension_numbers<[1], [0], [0], [1], [0, 0, 1, 1], [], []>} : vector<8x32xbf16>, vector<32x32xbf16>, vector<8x32xf32> -> vector<8x32xf32>
      %209 = arith.truncf %208 : vector<8x32xf32> to vector<8x32xbf16>
      %210 = vector.extract_strided_slice %209 {offsets = [0, 0], sizes = [8, 8], strides = [1, 1]} : vector<8x32xbf16> to vector<8x8xbf16>
      %211 = vector.extract_strided_slice %203 {offsets = [0, 0], sizes = [8, 32], strides = [1, 1]} : vector<32x32xbf16> to vector<8x32xbf16>
      %cst_101 = arith.constant dense<0.000000e+00> : vector<8x32xf32>
      %212 = tpu.matmul %210, %211, %cst_101 {dimension_numbers = #tpu.dot_dimension_numbers<[1], [0], [0], [1], [0, 0, 1, 1], [], []>} : vector<8x8xbf16>, vector<8x32xbf16>, vector<8x32xf32> -> vector<8x32xf32>
      %213 = vector.extract_strided_slice %209 {offsets = [0, 8], sizes = [8, 8], strides = [1, 1]} : vector<8x32xbf16> to vector<8x8xbf16>
      %214 = vector.extract_strided_slice %203 {offsets = [8, 0], sizes = [8, 32], strides = [1, 1]} : vector<32x32xbf16> to vector<8x32xbf16>
      %cst_102 = arith.constant dense<0.000000e+00> : vector<8x32xf32>
      %215 = tpu.matmul %213, %214, %cst_102 {dimension_numbers = #tpu.dot_dimension_numbers<[1], [0], [0], [1], [0, 0, 1, 1], [], []>} : vector<8x8xbf16>, vector<8x32xbf16>, vector<8x32xf32> -> vector<8x32xf32>
      %216 = vector.extract_strided_slice %209 {offsets = [0, 16], sizes = [8, 8], strides = [1, 1]} : vector<8x32xbf16> to vector<8x8xbf16>
      %217 = vector.extract_strided_slice %203 {offsets = [16, 0], sizes = [8, 32], strides = [1, 1]} : vector<32x32xbf16> to vector<8x32xbf16>
      %cst_103 = arith.constant dense<0.000000e+00> : vector<8x32xf32>
      %218 = tpu.matmul %216, %217, %cst_103 {dimension_numbers = #tpu.dot_dimension_numbers<[1], [0], [0], [1], [0, 0, 1, 1], [], []>} : vector<8x8xbf16>, vector<8x32xbf16>, vector<8x32xf32> -> vector<8x32xf32>
      %219 = vector.extract_strided_slice %209 {offsets = [0, 24], sizes = [8, 8], strides = [1, 1]} : vector<8x32xbf16> to vector<8x8xbf16>
      %220 = vector.extract_strided_slice %203 {offsets = [24, 0], sizes = [8, 32], strides = [1, 1]} : vector<32x32xbf16> to vector<8x32xbf16>
      %cst_104 = arith.constant dense<0.000000e+00> : vector<8x32xf32>
      %221 = tpu.matmul %219, %220, %cst_104 {dimension_numbers = #tpu.dot_dimension_numbers<[1], [0], [0], [1], [0, 0, 1, 1], [], []>} : vector<8x8xbf16>, vector<8x32xbf16>, vector<8x32xf32> -> vector<8x32xf32>
      %222 = tpu.concatenate %212, %215, %218, %221 in 0 : vector<8x32xf32>, vector<8x32xf32>, vector<8x32xf32>, vector<8x32xf32> -> vector<32x32xf32>
      %cst_105 = arith.constant 0.353553385 : f32
      %223 = vector.broadcast %cst_105 : f32 to vector<32x32xf32>
      %224 = arith.mulf %222, %223 : vector<32x32xf32>
      %225 = arith.truncf %224 : vector<32x32xf32> to vector<32x32xbf16>
      %c0_106 = arith.constant 0 : index
      %c0_107 = arith.constant 0 : index
      %226 = vector.load %arg20[%c0_106, %c0_107] : memref<32x32xbf16, #tpu.memory_space<vmem>>, vector<32x32xbf16>
      tpu.vector_store %arg20[%c0_106, %c0_107], %225 {strides = array<i32>} : memref<32x32xbf16, #tpu.memory_space<vmem>>, vector<32x32xbf16>,
      %cst_108 = arith.constant 0xFF800000 : f32
      %227 = vector.broadcast %cst_108 : f32 to vector<32x1xf32>
      %c0_109 = arith.constant 0 : index
      %c0_110 = arith.constant 0 : index
      %228 = vector.load %arg21[%c0_109, %c0_110] : memref<32x1xf32, #tpu.memory_space<vmem>>, vector<32x1xf32>
      tpu.vector_store %arg21[%c0_109, %c0_110], %227 {strides = array<i32>} : memref<32x1xf32, #tpu.memory_space<vmem>>, vector<32x1xf32>,
      %cst_111 = arith.constant 0.000000e+00 : f32
      %229 = vector.broadcast %cst_111 : f32 to vector<32x1xf32>
      %c0_112 = arith.constant 0 : index
      %c0_113 = arith.constant 0 : index
      %230 = vector.load %arg22[%c0_112, %c0_113] : memref<32x1xf32, #tpu.memory_space<vmem>>, vector<32x1xf32>
      tpu.vector_store %arg22[%c0_112, %c0_113], %229 {strides = array<i32>} : memref<32x1xf32, #tpu.memory_space<vmem>>, vector<32x1xf32>,
      %cst_114 = arith.constant 0.000000e+00 : f32
      %231 = vector.broadcast %cst_114 : f32 to vector<32x32xf32>
      %c0_115 = arith.constant 0 : index
      %c0_116 = arith.constant 0 : index
      %232 = vector.load %arg23[%c0_115, %c0_116] : memref<32x32xf32, #tpu.memory_space<vmem>>, vector<32x32xf32>
      tpu.vector_store %arg23[%c0_115, %c0_116], %231 {strides = array<i32>} : memref<32x32xf32, #tpu.memory_space<vmem>>, vector<32x32xf32>,
    } else {
    }
    %c0 = arith.constant 0 : index
    %c0_1 = arith.constant 0 : index
    %c0_2 = arith.constant 0 : index
    %3 = vector.load %arg4[%c0, %c0_1, %c0_2] : memref<1x32x128xbf16, #tpu.memory_space<vmem>>, vector<1x32x128xbf16>
    %4 = vector.shape_cast %3 : vector<1x32x128xbf16> to vector<32x128xbf16>
    %c0_3 = arith.constant 0 : index
    %c0_4 = arith.constant 0 : index
    %5 = vector.load %arg20[%c0_3, %c0_4] : memref<32x32xbf16, #tpu.memory_space<vmem>>, vector<32x32xbf16>
    %cst = arith.constant dense<0.000000e+00> : vector<32x128xf32>
    %6 = tpu.matmul %5, %4, %cst {dimension_numbers = #tpu.dot_dimension_numbers<[1], [0], [0], [1], [0, 0, 1, 1], [], []>} : vector<32x32xbf16>, vector<32x128xbf16>, vector<32x128xf32> -> vector<32x128xf32>
    %c0_5 = arith.constant 0 : index
    %c0_6 = arith.constant 0 : index
    %7 = vector.load %arg6[%c0_5, %c0_6] : memref<3x128xi32, #tpu.memory_space<vmem>>, vector<1x128xi32>
    %c1 = arith.constant 1 : index
    %c0_7 = arith.constant 0 : index
    %8 = vector.load %arg6[%c1, %c0_7] : memref<3x128xi32, #tpu.memory_space<vmem>>, vector<1x128xi32>
    %c2 = arith.constant 2 : index
    %c0_8 = arith.constant 0 : index
    %9 = vector.load %arg6[%c2, %c0_8] : memref<3x128xi32, #tpu.memory_space<vmem>>, vector<1x128xi32>
    %c0_9 = arith.constant 0 : index
    %c0_10 = arith.constant 0 : index
    %10 = vector.load %arg7[%c0_9, %c0_10] : memref<8x6xi32, #tpu.memory_space<vmem>>, vector<8x6xi32>
    %11 = vector.extract_strided_slice %10 {offsets = [0, 0], sizes = [8, 1], strides = [1, 1]} : vector<8x6xi32> to vector<8x1xi32>
    %12 = vector.broadcast %7 : vector<1x128xi32> to vector<8x128xi32>
    %13 = vector.broadcast %11 : vector<8x1xi32> to vector<8x128xi32>
    %14 = arith.cmpi sge, %12, %13 : vector<8x128xi32>
    %15 = vector.extract_strided_slice %10 {offsets = [0, 3], sizes = [8, 1], strides = [1, 1]} : vector<8x6xi32> to vector<8x1xi32>
    %16 = vector.broadcast %7 : vector<1x128xi32> to vector<8x128xi32>
    %17 = vector.broadcast %15 : vector<8x1xi32> to vector<8x128xi32>
    %18 = arith.cmpi slt, %16, %17 : vector<8x128xi32>
    %19 = arith.andi %14, %18 : vector<8x128xi1>
    %20 = vector.extract_strided_slice %10 {offsets = [0, 1], sizes = [8, 1], strides = [1, 1]} : vector<8x6xi32> to vector<8x1xi32>
    %21 = vector.broadcast %8 : vector<1x128xi32> to vector<8x128xi32>
    %22 = vector.broadcast %20 : vector<8x1xi32> to vector<8x128xi32>
    %23 = arith.cmpi sge, %21, %22 : vector<8x128xi32>
    %24 = arith.andi %19, %23 : vector<8x128xi1>
    %25 = vector.extract_strided_slice %10 {offsets = [0, 4], sizes = [8, 1], strides = [1, 1]} : vector<8x6xi32> to vector<8x1xi32>
    %26 = vector.broadcast %8 : vector<1x128xi32> to vector<8x128xi32>
    %27 = vector.broadcast %25 : vector<8x1xi32> to vector<8x128xi32>
    %28 = arith.cmpi slt, %26, %27 : vector<8x128xi32>
    %29 = arith.andi %24, %28 : vector<8x128xi1>
    %30 = vector.extract_strided_slice %10 {offsets = [0, 2], sizes = [8, 1], strides = [1, 1]} : vector<8x6xi32> to vector<8x1xi32>
    %31 = vector.broadcast %9 : vector<1x128xi32> to vector<8x128xi32>
    %32 = vector.broadcast %30 : vector<8x1xi32> to vector<8x128xi32>
    %33 = arith.cmpi sge, %31, %32 : vector<8x128xi32>
    %34 = arith.andi %29, %33 : vector<8x128xi1>
    %35 = vector.extract_strided_slice %10 {offsets = [0, 5], sizes = [8, 1], strides = [1, 1]} : vector<8x6xi32> to vector<8x1xi32>
    %36 = vector.broadcast %9 : vector<1x128xi32> to vector<8x128xi32>
    %37 = vector.broadcast %35 : vector<8x1xi32> to vector<8x128xi32>
    %38 = arith.cmpi slt, %36, %37 : vector<8x128xi32>
    %39 = arith.andi %34, %38 : vector<8x128xi1>
    %40 = vector.shape_cast %39 : vector<8x128xi1> to vector<1x8x128xi1>
    %41 = vector.shape_cast %6 : vector<32x128xf32> to vector<4x8x128xf32>
    %cst_11 = arith.constant -1.000000e+30 : f32
    %42 = vector.shape_cast %40 : vector<1x8x128xi1> to vector<1x8x128xi1>
    %43 = vector.broadcast %42 : vector<1x8x128xi1> to vector<4x8x128xi1>
    %44 = vector.broadcast %cst_11 : f32 to vector<4x8x128xf32>
    %45 = arith.select %43, %41, %44 : vector<4x8x128xi1>, vector<4x8x128xf32>
    %46 = vector.shape_cast %45 : vector<4x8x128xf32> to vector<32x128xf32>
    %47 = arith.truncf %46 : vector<32x128xf32> to vector<32x128xbf16>
    %c0_12 = arith.constant 0 : index
    %c0_13 = arith.constant 0 : index
    %c0_14 = arith.constant 0 : index
    %48 = vector.load %arg16[%c0_12, %c0_13, %c0_14] : memref<1x32x128xbf16, #tpu.memory_space<vmem>>, vector<1x32x128xbf16>
    %49 = vector.shape_cast %48 : vector<1x32x128xbf16> to vector<32x128xbf16>
    %50 = vector.shape_cast %47 : vector<32x128xbf16> to vector<1x32x128xbf16>
    tpu.vector_store %arg16[%c0_12, %c0_13, %c0_14], %50 {strides = array<i32>} : memref<1x32x128xbf16, #tpu.memory_space<vmem>>, vector<1x32x128xbf16>,
    %c0_15 = arith.constant 0 : index
    %c0_16 = arith.constant 0 : index
    %51 = vector.load %arg21[%c0_15, %c0_16] : memref<32x1xf32, #tpu.memory_space<vmem>>, vector<32x1xf32>
    %cst_17 = arith.constant dense<0xFF800000> : vector<32xf32>
    %52 = vector.multi_reduction <maximumf>, %46, %cst_17 [1] : vector<32x128xf32> to vector<32xf32>
    %53 = vector.shape_cast %52 : vector<32xf32> to vector<32x1xf32>
    %54 = arith.maximumf %51, %53 : vector<32x1xf32>
    %55 = arith.subf %51, %54 : vector<32x1xf32>
    %56 = math.exp %55 : vector<32x1xf32>
    %57 = vector.broadcast %54 : vector<32x1xf32> to vector<32x128xf32>
    %58 = arith.subf %46, %57 : vector<32x128xf32>
    %59 = math.exp %58 : vector<32x128xf32>
    %c0_18 = arith.constant 0 : index
    %c0_19 = arith.constant 0 : index
    %60 = vector.load %arg22[%c0_18, %c0_19] : memref<32x1xf32, #tpu.memory_space<vmem>>, vector<32x1xf32>
    %61 = arith.mulf %56, %60 : vector<32x1xf32>
    %cst_20 = arith.constant dense<0.000000e+00> : vector<32xf32>
    %62 = vector.multi_reduction <add>, %59, %cst_20 [1] : vector<32x128xf32> to vector<32xf32>
    %63 = vector.shape_cast %62 : vector<32xf32> to vector<32x1xf32>
    %64 = arith.addf %61, %63 : vector<32x1xf32>
    %c0_21 = arith.constant 0 : index
    %c0_22 = arith.constant 0 : index
    %65 = vector.load %arg22[%c0_21, %c0_22] : memref<32x1xf32, #tpu.memory_space<vmem>>, vector<32x1xf32>
    tpu.vector_store %arg22[%c0_21, %c0_22], %64 {strides = array<i32>} : memref<32x1xf32, #tpu.memory_space<vmem>>, vector<32x1xf32>,
    %66 = arith.truncf %59 : vector<32x128xf32> to vector<32x128xbf16>
    %c0_23 = arith.constant 0 : index
    %c0_24 = arith.constant 0 : index
    %67 = vector.load %arg23[%c0_23, %c0_24] : memref<32x32xf32, #tpu.memory_space<vmem>>, vector<32x32xf32>
    %68 = vector.broadcast %56 : vector<32x1xf32> to vector<32x32xf32>
    %69 = arith.mulf %68, %67 : vector<32x32xf32>
    %c0_25 = arith.constant 0 : index
    %c0_26 = arith.constant 0 : index
    %c0_27 = arith.constant 0 : index
    %70 = vector.load %arg5[%c0_25, %c0_26, %c0_27] : memref<1x128x32xbf16, #tpu.memory_space<vmem>>, vector<1x128x32xbf16>
    %71 = vector.shape_cast %70 : vector<1x128x32xbf16> to vector<128x32xbf16>
    %cst_28 = arith.constant dense<0.000000e+00> : vector<32x32xf32>
    %72 = tpu.matmul %66, %71, %cst_28 {dimension_numbers = #tpu.dot_dimension_numbers<[1], [0], [0], [1], [0, 0, 1, 1], [], []>} : vector<32x128xbf16>, vector<128x32xbf16>, vector<32x32xf32> -> vector<32x32xf32>
    %73 = arith.addf %69, %72 : vector<32x32xf32>
    %c0_29 = arith.constant 0 : index
    %c0_30 = arith.constant 0 : index
    %74 = vector.load %arg23[%c0_29, %c0_30] : memref<32x32xf32, #tpu.memory_space<vmem>>, vector<32x32xf32>
    tpu.vector_store %arg23[%c0_29, %c0_30], %73 {strides = array<i32>} : memref<32x32xf32, #tpu.memory_space<vmem>>, vector<32x32xf32>,
    %c0_31 = arith.constant 0 : index
    %c0_32 = arith.constant 0 : index
    %75 = vector.load %arg21[%c0_31, %c0_32] : memref<32x1xf32, #tpu.memory_space<vmem>>, vector<32x1xf32>
    tpu.vector_store %arg21[%c0_31, %c0_32], %54 {strides = array<i32>} : memref<32x1xf32, #tpu.memory_space<vmem>>, vector<32x1xf32>,
    %c1_i32 = arith.constant 1 : i32
    %76 = arith.cmpi eq, %arg1, %c1_i32 : i32
    %77 = arith.extui %76 : i1 to i32
    %c0_i32_33 = arith.constant 0 : i32
    %78 = arith.cmpi ne, %77, %c0_i32_33 : i32
    scf.if %78 {
      %c0_34 = arith.constant 0 : index
      %c0_35 = arith.constant 0 : index
      %79 = vector.load %arg19[%c0_34, %c0_35] : memref<8x32xf32, #tpu.memory_space<vmem>>, vector<8x32xf32>
      %c0_36 = arith.constant 0 : index
      %c0_37 = arith.constant 0 : index
      %80 = vector.load %arg22[%c0_36, %c0_37] : memref<32x1xf32, #tpu.memory_space<vmem>>, vector<32x1xf32>
      %81 = tpu.reciprocal %80 {approx = true} : vector<32x1xf32> -> vector<32x1xf32>
      %c0_38 = arith.constant 0 : index
      %c0_39 = arith.constant 0 : index
      %82 = vector.load %arg23[%c0_38, %c0_39] : memref<32x32xf32, #tpu.memory_space<vmem>>, vector<32x32xf32>
      %83 = vector.broadcast %81 : vector<32x1xf32> to vector<32x32xf32>
      %84 = arith.mulf %82, %83 : vector<32x32xf32>
      %85 = arith.truncf %84 : vector<32x32xf32> to vector<32x32xbf16>
      %c2_40 = arith.constant 2 : index
      %c0_41 = arith.constant 0 : index
      %c0_42 = arith.constant 0 : index
      %86 = vector.load %arg10[%c2_40, %c0_41, %c0_42] : memref<4x32x32xbf16, #tpu.memory_space<vmem>>, vector<1x32x32xbf16>
      %87 = vector.shape_cast %86 : vector<1x32x32xbf16> to vector<32x32xbf16>
      %88 = vector.extract_strided_slice %85 {offsets = [0, 0], sizes = [8, 32], strides = [1, 1]} : vector<32x32xbf16> to vector<8x32xbf16>
      %89 = vector.extract_strided_slice %87 {offsets = [0, 0], sizes = [32, 8], strides = [1, 1]} : vector<32x32xbf16> to vector<32x8xbf16>
      %cst_43 = arith.constant dense<0.000000e+00> : vector<8x8xf32>
      %90 = tpu.matmul %88, %89, %cst_43 {dimension_numbers = #tpu.dot_dimension_numbers<[1], [0], [0], [1], [0, 0, 1, 1], [], []>} : vector<8x32xbf16>, vector<32x8xbf16>, vector<8x8xf32> -> vector<8x8xf32>
      %91 = vector.extract_strided_slice %85 {offsets = [8, 0], sizes = [8, 32], strides = [1, 1]} : vector<32x32xbf16> to vector<8x32xbf16>
      %92 = vector.extract_strided_slice %87 {offsets = [0, 8], sizes = [32, 8], strides = [1, 1]} : vector<32x32xbf16> to vector<32x8xbf16>
      %cst_44 = arith.constant dense<0.000000e+00> : vector<8x8xf32>
      %93 = tpu.matmul %91, %92, %cst_44 {dimension_numbers = #tpu.dot_dimension_numbers<[1], [0], [0], [1], [0, 0, 1, 1], [], []>} : vector<8x32xbf16>, vector<32x8xbf16>, vector<8x8xf32> -> vector<8x8xf32>
      %94 = vector.extract_strided_slice %85 {offsets = [16, 0], sizes = [8, 32], strides = [1, 1]} : vector<32x32xbf16> to vector<8x32xbf16>
      %95 = vector.extract_strided_slice %87 {offsets = [0, 16], sizes = [32, 8], strides = [1, 1]} : vector<32x32xbf16> to vector<32x8xbf16>
      %cst_45 = arith.constant dense<0.000000e+00> : vector<8x8xf32>
      %96 = tpu.matmul %94, %95, %cst_45 {dimension_numbers = #tpu.dot_dimension_numbers<[1], [0], [0], [1], [0, 0, 1, 1], [], []>} : vector<8x32xbf16>, vector<32x8xbf16>, vector<8x8xf32> -> vector<8x8xf32>
      %97 = vector.extract_strided_slice %85 {offsets = [24, 0], sizes = [8, 32], strides = [1, 1]} : vector<32x32xbf16> to vector<8x32xbf16>
      %98 = vector.extract_strided_slice %87 {offsets = [0, 24], sizes = [32, 8], strides = [1, 1]} : vector<32x32xbf16> to vector<32x8xbf16>
      %cst_46 = arith.constant dense<0.000000e+00> : vector<8x8xf32>
      %99 = tpu.matmul %97, %98, %cst_46 {dimension_numbers = #tpu.dot_dimension_numbers<[1], [0], [0], [1], [0, 0, 1, 1], [], []>} : vector<8x32xbf16>, vector<32x8xbf16>, vector<8x8xf32> -> vector<8x8xf32>
      %100 = tpu.concatenate %90, %93, %96, %99 in 1 : vector<8x8xf32>, vector<8x8xf32>, vector<8x8xf32>, vector<8x8xf32> -> vector<8x32xf32>
      %101 = arith.truncf %100 : vector<8x32xf32> to vector<8x32xbf16>
      %c3 = arith.constant 3 : index
      %c0_47 = arith.constant 0 : index
      %c0_48 = arith.constant 0 : index
      %102 = vector.load %arg10[%c3, %c0_47, %c0_48] : memref<4x32x32xbf16, #tpu.memory_space<vmem>>, vector<1x32x32xbf16>
      %103 = vector.shape_cast %102 : vector<1x32x32xbf16> to vector<32x32xbf16>
      %cst_49 = arith.constant dense<0.000000e+00> : vector<8x32xf32>
      %104 = tpu.matmul %101, %103, %cst_49 {dimension_numbers = #tpu.dot_dimension_numbers<[1], [0], [0], [1], [0, 0, 1, 1], [], []>} : vector<8x32xbf16>, vector<32x32xbf16>, vector<8x32xf32> -> vector<8x32xf32>
      %c3_50 = arith.constant 3 : index
      %c0_51 = arith.constant 0 : index
      %105 = vector.load %arg11[%c3_50, %c0_51] : memref<9x32xf32, #tpu.memory_space<vmem>>, vector<1x32xf32>
      %106 = vector.broadcast %105 : vector<1x32xf32> to vector<8x32xf32>
      %107 = arith.addf %104, %106 : vector<8x32xf32>
      %108 = arith.addf %79, %107 : vector<8x32xf32>
      %c4 = arith.constant 4 : index
      %c0_52 = arith.constant 0 : index
      %109 = vector.load %arg11[%c4, %c0_52] : memref<9x32xf32, #tpu.memory_space<vmem>>, vector<1x32xf32>
      %c5 = arith.constant 5 : index
      %c0_53 = arith.constant 0 : index
      %110 = vector.load %arg11[%c5, %c0_53] : memref<9x32xf32, #tpu.memory_space<vmem>>, vector<1x32xf32>
      %cst_54 = arith.constant dense<0.000000e+00> : vector<8xf32>
      %111 = vector.multi_reduction <add>, %108, %cst_54 [1] : vector<8x32xf32> to vector<8xf32>
      %112 = vector.shape_cast %111 : vector<8xf32> to vector<8x1xf32>
      %cst_55 = arith.constant 3.200000e+01 : f32
      %113 = vector.broadcast %cst_55 : f32 to vector<8x1xf32>
      %114 = arith.divf %112, %113 : vector<8x1xf32>
      %115 = vector.broadcast %114 : vector<8x1xf32> to vector<8x32xf32>
      %116 = arith.subf %108, %115 : vector<8x32xf32>
      %117 = arith.mulf %116, %116 : vector<8x32xf32>
      %cst_56 = arith.constant dense<0.000000e+00> : vector<8xf32>
      %118 = vector.multi_reduction <add>, %117, %cst_56 [1] : vector<8x32xf32> to vector<8xf32>
      %119 = vector.shape_cast %118 : vector<8xf32> to vector<8x1xf32>
      %cst_57 = arith.constant 3.200000e+01 : f32
      %120 = vector.broadcast %cst_57 : f32 to vector<8x1xf32>
      %121 = arith.divf %119, %120 : vector<8x1xf32>
      %122 = vector.broadcast %114 : vector<8x1xf32> to vector<8x32xf32>
      %123 = arith.subf %108, %122 : vector<8x32xf32>
      %cst_58 = arith.constant 9.99999974E-6 : f32
      %124 = vector.broadcast %cst_58 : f32 to vector<8x1xf32>
      %125 = arith.addf %121, %124 : vector<8x1xf32>
      %126 = math.rsqrt %125 : vector<8x1xf32>
      %127 = vector.broadcast %126 : vector<8x1xf32> to vector<8x32xf32>
      %128 = arith.mulf %123, %127 : vector<8x32xf32>
      %129 = vector.broadcast %109 : vector<1x32xf32> to vector<8x32xf32>
      %130 = arith.mulf %128, %129 : vector<8x32xf32>
      %131 = vector.broadcast %110 : vector<1x32xf32> to vector<8x32xf32>
      %132 = arith.addf %130, %131 : vector<8x32xf32>
      %133 = arith.truncf %132 : vector<8x32xf32> to vector<8x32xbf16>
      %c0_59 = arith.constant 0 : index
      %c0_60 = arith.constant 0 : index
      %134 = vector.load %arg12[%c0_59, %c0_60] : memref<32x64xbf16, #tpu.memory_space<vmem>>, vector<32x64xbf16>
      %cst_61 = arith.constant dense<0.000000e+00> : vector<8x64xf32>
      %135 = tpu.matmul %133, %134, %cst_61 {dimension_numbers = #tpu.dot_dimension_numbers<[1], [0], [0], [1], [0, 0, 1, 1], [], []>} : vector<8x32xbf16>, vector<32x64xbf16>, vector<8x64xf32> -> vector<8x64xf32>
      %c0_62 = arith.constant 0 : index
      %c0_63 = arith.constant 0 : index
      %136 = vector.load %arg13[%c0_62, %c0_63] : memref<1x64xf32, #tpu.memory_space<vmem>>, vector<1x64xf32>
      %137 = vector.broadcast %136 : vector<1x64xf32> to vector<8x64xf32>
      %138 = arith.addf %135, %137 : vector<8x64xf32>
      %cst_64 = arith.constant 0.000000e+00 : f32
      %139 = vector.broadcast %cst_64 : f32 to vector<8x64xf32>
      %140 = arith.maximumf %138, %139 : vector<8x64xf32>
      %141 = arith.truncf %140 : vector<8x64xf32> to vector<8x64xbf16>
      %c0_65 = arith.constant 0 : index
      %c0_66 = arith.constant 0 : index
      %142 = vector.load %arg14[%c0_65, %c0_66] : memref<64x32xbf16, #tpu.memory_space<vmem>>, vector<64x32xbf16>
      %cst_67 = arith.constant dense<0.000000e+00> : vector<8x32xf32>
      %143 = tpu.matmul %141, %142, %cst_67 {dimension_numbers = #tpu.dot_dimension_numbers<[1], [0], [0], [1], [0, 0, 1, 1], [], []>} : vector<8x64xbf16>, vector<64x32xbf16>, vector<8x32xf32> -> vector<8x32xf32>
      %c6 = arith.constant 6 : index
      %c0_68 = arith.constant 0 : index
      %144 = vector.load %arg11[%c6, %c0_68] : memref<9x32xf32, #tpu.memory_space<vmem>>, vector<1x32xf32>
      %145 = vector.broadcast %144 : vector<1x32xf32> to vector<8x32xf32>
      %146 = arith.addf %143, %145 : vector<8x32xf32>
      %147 = arith.addf %132, %146 : vector<8x32xf32>
      %c7 = arith.constant 7 : index
      %c0_69 = arith.constant 0 : index
      %148 = vector.load %arg11[%c7, %c0_69] : memref<9x32xf32, #tpu.memory_space<vmem>>, vector<1x32xf32>
      %c8 = arith.constant 8 : index
      %c0_70 = arith.constant 0 : index
      %149 = vector.load %arg11[%c8, %c0_70] : memref<9x32xf32, #tpu.memory_space<vmem>>, vector<1x32xf32>
      %cst_71 = arith.constant dense<0.000000e+00> : vector<8xf32>
      %150 = vector.multi_reduction <add>, %147, %cst_71 [1] : vector<8x32xf32> to vector<8xf32>
      %151 = vector.shape_cast %150 : vector<8xf32> to vector<8x1xf32>
      %cst_72 = arith.constant 3.200000e+01 : f32
      %152 = vector.broadcast %cst_72 : f32 to vector<8x1xf32>
      %153 = arith.divf %151, %152 : vector<8x1xf32>
      %154 = vector.broadcast %153 : vector<8x1xf32> to vector<8x32xf32>
      %155 = arith.subf %147, %154 : vector<8x32xf32>
      %156 = arith.mulf %155, %155 : vector<8x32xf32>
      %cst_73 = arith.constant dense<0.000000e+00> : vector<8xf32>
      %157 = vector.multi_reduction <add>, %156, %cst_73 [1] : vector<8x32xf32> to vector<8xf32>
      %158 = vector.shape_cast %157 : vector<8xf32> to vector<8x1xf32>
      %cst_74 = arith.constant 3.200000e+01 : f32
      %159 = vector.broadcast %cst_74 : f32 to vector<8x1xf32>
      %160 = arith.divf %158, %159 : vector<8x1xf32>
      %161 = vector.broadcast %153 : vector<8x1xf32> to vector<8x32xf32>
      %162 = arith.subf %147, %161 : vector<8x32xf32>
      %cst_75 = arith.constant 9.99999974E-6 : f32
      %163 = vector.broadcast %cst_75 : f32 to vector<8x1xf32>
      %164 = arith.addf %160, %163 : vector<8x1xf32>
      %165 = math.rsqrt %164 : vector<8x1xf32>
      %166 = vector.broadcast %165 : vector<8x1xf32> to vector<8x32xf32>
      %167 = arith.mulf %162, %166 : vector<8x32xf32>
      %168 = vector.broadcast %148 : vector<1x32xf32> to vector<8x32xf32>
      %169 = arith.mulf %167, %168 : vector<8x32xf32>
      %170 = vector.broadcast %149 : vector<1x32xf32> to vector<8x32xf32>
      %171 = arith.addf %169, %170 : vector<8x32xf32>
      %c0_76 = arith.constant 0 : index
      %c0_77 = arith.constant 0 : index
      %c0_78 = arith.constant 0 : index
      %172 = vector.load %arg15[%c0_76, %c0_77, %c0_78] : memref<1x8x32xf32, #tpu.memory_space<vmem>>, vector<1x8x32xf32>
      %173 = vector.shape_cast %172 : vector<1x8x32xf32> to vector<8x32xf32>
      %174 = vector.shape_cast %171 : vector<8x32xf32> to vector<1x8x32xf32>
      tpu.vector_store %arg15[%c0_76, %c0_77, %c0_78], %174 {strides = array<i32>} : memref<1x8x32xf32, #tpu.memory_space<vmem>>, vector<1x8x32xf32>,
      %c0_79 = arith.constant 0 : index
      %c0_80 = arith.constant 0 : index
      %175 = vector.load %arg21[%c0_79, %c0_80] : memref<32x1xf32, #tpu.memory_space<vmem>>, vector<32x1xf32>
      %c0_81 = arith.constant 0 : index
      %c0_82 = arith.constant 0 : index
      %c0_83 = arith.constant 0 : index
      %176 = vector.load %arg17[%c0_81, %c0_82, %c0_83] : memref<1x32x1xf32, #tpu.memory_space<vmem>>, vector<1x32x1xf32>
      %177 = vector.shape_cast %176 : vector<1x32x1xf32> to vector<32x1xf32>
      %178 = vector.shape_cast %175 : vector<32x1xf32> to vector<1x32x1xf32>
      tpu.vector_store %arg17[%c0_81, %c0_82, %c0_83], %178 {strides = array<i32>} : memref<1x32x1xf32, #tpu.memory_space<vmem>>, vector<1x32x1xf32>,
      %c0_84 = arith.constant 0 : index
      %c0_85 = arith.constant 0 : index
      %179 = vector.load %arg22[%c0_84, %c0_85] : memref<32x1xf32, #tpu.memory_space<vmem>>, vector<32x1xf32>
      %c0_86 = arith.constant 0 : index
      %c0_87 = arith.constant 0 : index
      %c0_88 = arith.constant 0 : index
      %180 = vector.load %arg18[%c0_86, %c0_87, %c0_88] : memref<1x32x1xf32, #tpu.memory_space<vmem>>, vector<1x32x1xf32>
      %181 = vector.shape_cast %180 : vector<1x32x1xf32> to vector<32x1xf32>
      %182 = vector.shape_cast %179 : vector<32x1xf32> to vector<1x32x1xf32>
      tpu.vector_store %arg18[%c0_86, %c0_87, %c0_88], %182 {strides = array<i32>} : memref<1x32x1xf32, #tpu.memory_space<vmem>>, vector<1x32x1xf32>,
    } else {
    }
    return
  }
  func.func @transform_0(%arg0: i32, %arg1: i32) -> (i32, i32, i32) {
    %c0_i32 = arith.constant 0 : i32
    %c0_i32_0 = arith.constant 0 : i32
    %c0_i32_1 = arith.constant 0 : i32
    return %arg0, %c0_i32, %c0_i32_0 : i32, i32, i32
  }
  func.func @transform_1(%arg0: i32, %arg1: i32) -> (i32, i32, i32) {
    %c0_i32 = arith.constant 0 : i32
    %c0_i32_0 = arith.constant 0 : i32
    %c0_i32_1 = arith.constant 0 : i32
    return %arg0, %c0_i32, %c0_i32_0 : i32, i32, i32
  }
  func.func @transform_2(%arg0: i32, %arg1: i32) -> (i32, i32, i32) {
    %c0_i32 = arith.constant 0 : i32
    %c0_i32_0 = arith.constant 0 : i32
    return %arg0, %c0_i32, %arg1 : i32, i32, i32
  }
  func.func @transform_3(%arg0: i32, %arg1: i32) -> (i32, i32, i32) {
    %c0_i32 = arith.constant 0 : i32
    %c0_i32_0 = arith.constant 0 : i32
    return %arg0, %arg1, %c0_i32 : i32, i32, i32
  }
  func.func @transform_4(%arg0: i32, %arg1: i32) -> (i32, i32) {
    %c0_i32 = arith.constant 0 : i32
    %c0_i32_0 = arith.constant 0 : i32
    return %c0_i32, %arg1 : i32, i32
  }
  func.func @transform_5(%arg0: i32, %arg1: i32) -> (i32, i32) {
    %c0_i32 = arith.constant 0 : i32
    %c0_i32_0 = arith.constant 0 : i32
    %c0_i32_1 = arith.constant 0 : i32
    return %c0_i32, %c0_i32_0 : i32, i32
  }
  func.func @transform_6(%arg0: i32, %arg1: i32) -> (i32, i32, i32) {
    %c0_i32 = arith.constant 0 : i32
    %c0_i32_0 = arith.constant 0 : i32
    %c0_i32_1 = arith.constant 0 : i32
    %c0_i32_2 = arith.constant 0 : i32
    return %c0_i32, %c0_i32_0, %c0_i32_1 : i32, i32, i32
  }
  func.func @transform_7(%arg0: i32, %arg1: i32) -> (i32, i32) {
    %c0_i32 = arith.constant 0 : i32
    %c0_i32_0 = arith.constant 0 : i32
    %c0_i32_1 = arith.constant 0 : i32
    return %c0_i32, %c0_i32_0 : i32, i32
  }
  func.func @transform_8(%arg0: i32, %arg1: i32) -> (i32, i32, i32) {
    %c0_i32 = arith.constant 0 : i32
    %c0_i32_0 = arith.constant 0 : i32
    %c0_i32_1 = arith.constant 0 : i32
    %c0_i32_2 = arith.constant 0 : i32
    return %c0_i32, %c0_i32_0, %c0_i32_1 : i32, i32, i32
  }
  func.func @transform_9(%arg0: i32, %arg1: i32) -> (i32, i32) {
    %c0_i32 = arith.constant 0 : i32
    %c0_i32_0 = arith.constant 0 : i32
    %c0_i32_1 = arith.constant 0 : i32
    return %c0_i32, %c0_i32_0 : i32, i32
  }
  func.func @transform_10(%arg0: i32, %arg1: i32) -> (i32, i32) {
    %c0_i32 = arith.constant 0 : i32
    %c0_i32_0 = arith.constant 0 : i32
    %c0_i32_1 = arith.constant 0 : i32
    return %c0_i32, %c0_i32_0 : i32, i32
  }
  func.func @transform_11(%arg0: i32, %arg1: i32) -> (i32, i32) {
    %c0_i32 = arith.constant 0 : i32
    %c0_i32_0 = arith.constant 0 : i32
    %c0_i32_1 = arith.constant 0 : i32
    return %c0_i32, %c0_i32_0 : i32, i32
  }
  func.func @transform_12(%arg0: i32, %arg1: i32) -> (i32, i32) {
    %c0_i32 = arith.constant 0 : i32
    %c0_i32_0 = arith.constant 0 : i32
    %c0_i32_1 = arith.constant 0 : i32
    return %c0_i32, %c0_i32_0 : i32, i32
  }
  func.func @transform_13(%arg0: i32, %arg1: i32) -> (i32, i32, i32) {
    %c0_i32 = arith.constant 0 : i32
    %c0_i32_0 = arith.constant 0 : i32
    %c0_i32_1 = arith.constant 0 : i32
    return %arg0, %c0_i32, %c0_i32_0 : i32, i32, i32
  }
  func.func @transform_14(%arg0: i32, %arg1: i32) -> (i32, i32, i32) {
    %c0_i32 = arith.constant 0 : i32
    %c0_i32_0 = arith.constant 0 : i32
    return %arg0, %c0_i32, %arg1 : i32, i32, i32
  }
  func.func @transform_15(%arg0: i32, %arg1: i32) -> (i32, i32, i32) {
    %c0_i32 = arith.constant 0 : i32
    %c0_i32_0 = arith.constant 0 : i32
    %c0_i32_1 = arith.constant 0 : i32
    return %arg0, %c0_i32, %c0_i32_0 : i32, i32, i32
  }
  func.func @transform_16(%arg0: i32, %arg1: i32) -> (i32, i32, i32) {
    %c0_i32 = arith.constant 0 : i32
    %c0_i32_0 = arith.constant 0 : i32
    %c0_i32_1 = arith.constant 0 : i32
    return %arg0, %c0_i32, %c0_i32_0 : i32, i32, i32
  }
}

</mosaic_0001>

<bundles_post_ra>
// kernel: tpu_custom_call.1
= control target key start
LH: loop header
LB: loop body
LE: loop exit
PB: predicated region body
PF: predicated region fallthrough
CT: control target
= control target key end

     0   :  { %s3618_s0 = inlined_call_operand.vmem [shape: f32[2,8,32], index: 0, kind: input, shape index: {}]   ;;  %s3619_s1 = inlined_call_operand.vmem [shape: f32[2,8,32], index: 1, kind: input, shape index: {}]   ;;  %s3620_s2 = inlined_call_operand.vmem [shape: bf16[2,32,256], index: 2, kind: input, shape index: {}]   ;;  %s3621_s3 = inlined_call_operand.vmem [shape: bf16[2,256,32], index: 3, kind: input, shape index: {}]   ;;  %s3622_s4 = inlined_call_operand.vmem [shape: s32[3,256], index: 4, kind: input, shape index: {}]   ;;  %s3623_s5 = inlined_call_operand.vmem [shape: s32[8,6], index: 5, kind: input, shape index: {}]   ;;  %s3624_s6 = inlined_call_operand.vmem [shape: bf16[4,32,32], index: 6, kind: input, shape index: {}]   ;;  %s3625_s7 = inlined_call_operand.vmem [shape: f32[3,32], index: 7, kind: input, shape index: {}]   ;;  %s3626_s8 = inlined_call_operand.vmem [shape: bf16[4,32,32], index: 8, kind: input, shape index: {}]   ;;  %s3627_s9 = inlined_call_operand.vmem [shape: f32[9,32], index: 9, kind: input, shape index: {}]   ;;  %s3628_s10 = inlined_call_operand.vmem [shape: bf16[32,64], index: 10, kind: input, shape index: {}]   ;;  %s3629_s11 = inlined_call_operand.vmem [shape: f32[1,64], index: 11, kind: input, shape index: {}]   ;;  %s3630_s12 = inlined_call_operand.vmem [shape: bf16[64,32], index: 12, kind: input, shape index: {}]   ;;  %s3631_s13 = inlined_call_operand.hbm [shape: f32[2,8,32], index: 13, kind: output, shape index: {0}]   ;;  %s3632_s14 = inlined_call_operand.hbm [shape: bf16[2,32,256], index: 14, kind: output, shape index: {1}]   ;;  %s3633_s15 = inlined_call_operand.vmem [shape: f32[2,32,1], index: 15, kind: output, shape index: {2}]   ;;  %s3634_s16 = inlined_call_operand.vmem [shape: f32[2,32,1], index: 16, kind: output, shape index: {3}]  }
   0x1   :  { %3663 = sst [smem:[#allocation30_spill]] %s3618_s0 }
   0x2   :  { %3664 = sst [smem:[#allocation31_spill]] %s3619_s1 }
   0x3   :  { %3665 = sst [smem:[#allocation32_spill]] %s3620_s2 }
   0x4   :  { %3666 = sst [smem:[#allocation33_spill]] %s3623_s5 }
   0x5   :  { %3667 = sst [smem:[#allocation34_spill]] %s3625_s7 }
   0x6   :  { %3668 = sst [smem:[#allocation35_spill]] %s3626_s8 }
   0x7   :  { %3669 = sst [smem:[#allocation36_spill]] %s3627_s9 }
   0x8   :  { %3670 = sst [smem:[#allocation37_spill]] %s3628_s10 }
   0x9   :  { %3671 = sst [smem:[#allocation38_spill]] %s3629_s11 }
   0xa   :  { %3672 = sst [smem:[#allocation39_spill]] %s3630_s12 }
   0xb   :  { %3673 = sst [smem:[#allocation40_spill]] %s3631_s13 }
   0xc   :  { %3674 = sst [smem:[#allocation41_spill]] %s3632_s14 }
   0xd   :  { %22 = vsyncpa [#allocation9], 0 }
   0xe   :  { %24 = vsyncpa [#allocation9 + $0x1], 0 }
   0xf   :  { %25 = vsyncpa [#allocation11], 0 }
  0x10   :  { %27 = vsyncpa [#allocation11 + $0x1], 0  ;;  %s3077_s21 = smov 0   ;;  %s3079_s22 = smov 0  }
  0x11   :  { %s3081_s23 = smov 0   ;;  %s3083_s24 = smov 0  }
  0x12   :  { %s3085_s25 = smov 0   ;;  %s3087_s26 = smov 0  }
  0x13   :  { %s3089_s27 = smov 0   ;;  %s3091_s28 = smov 0  }
  0x14   :  { %s3093_s29 = smov 0   ;;  %s3095_s30 = smov 0  }
  0x15   :  { %s3097_s0 = smov 0  }
  0x16 LB: > { %3675 = sst [smem:[#allocation14_spill]] %s2924_s21  ;;  %s2346_s17 = sadd.s32 4294967295, %s2964_s0   ;;  %s2964_s0 = sphi %s3097_s0, %s33_s0   ;;  %s2960_s30 = sphi %s3095_s30, %s3731_s30   ;;  %s2956_s29 = sphi %s3093_s29, %s3730_s29   ;;  %s2952_s28 = sphi %s3091_s28, %s3729_s28   ;;  %s2948_s27 = sphi %s3089_s27, %s3728_s27   ;;  %s2944_s26 = sphi %s3087_s26, %s3727_s26   ;;  %s2940_s25 = sphi %s3085_s25, %s3726_s25   ;;  %s2936_s24 = sphi %s3083_s24, %s3725_s24   ;;  %s2932_s23 = sphi %s3081_s23, %s3733_s23   ;;  %s2928_s22 = sphi %s3079_s22, %s3732_s22   ;;  %s2924_s21 = sphi %s3077_s21, %s3723_s21  }
  0x17   : > { %3676 = sst [smem:[#allocation15_spill]] %s2928_s22  ;;  %s2347_s18 = sadd.s32 4294967294, %s2964_s0  }
  0x18   : > { %3677 = sst [smem:[#allocation16_spill]] %s2936_s24  ;;  %s42_s19 = sadd.s32 1, %s2956_s29 }
  0x19   : > { %3678 = sst [smem:[#allocation17_spill]] %s2940_s25  ;;  %s45_s20 = sadd.s32 1, %s2960_s30 }
  0x1a   : > { %3679 = sst [smem:[#allocation18_spill]] %s2944_s26  ;;  %p43_p0 = scmp.ge.s32.totalorder %s42_s19, 2 }
  0x1b   : > { %3680 = sst [smem:[#allocation19_spill]] %s2956_s29  ;;  %s106_s14 = sadd.s32 1, %s2944_s26 }
  0x1c   : > { %3681 = sst [smem:[#allocation20_spill]] %s2960_s30  ;;  %p113_p1 = scmp.ne.s32.totalorder %s2944_s26, %s2940_s25 }
  0x1d   : > { %3682 = sst [smem:[#allocation21_spill]] %s2964_s0  ;;  %p114_p2 = scmp.eq.s32.totalorder %s2964_s0, 0 }
  0x1e   : > { %s3735_s19 = smov (%p43_p0, %s42_s19), 0  ;;  %s3737_s20 = smov (!%p43_p0, %s45_s20), %s2960_s30 }
  0x1f   : > { %3683 = sst [smem:[#allocation22_spill]] %s3735_s19  ;;  %s102_s13 = ssub.s32 %s2956_s29, %s3735_s19 }
  0x20   : > { %p3148_p3 = por %p114_p2, %p113_p1  ;;  %p47_p4 = scmp.ge.s32.totalorder %s3737_s20, 2 }
  0x21   : > { %s354_s12 = sadd.s32 1, %s2936_s24  ;;  %p364_p5 = scmp.ne.s32.totalorder %s2936_s24, %s2932_s23 }
  0x22   : > { %p365_p6 = scmp.eq.s32.totalorder %s2346_s17, 3  ;;  %s3739_s20 = smov (%p47_p4, %s3737_s20), 0 }
  0x23   : > { %3685 = sst [smem:[#allocation23_spill]] %s3739_s20  ;;  %p370_p8 = scmp.ne.s32.totalorder %s2932_s23, %s2928_s22 }
  0x24   : > { %p3157_p7 = por %p365_p6, %p364_p5  ;;  %s101_s19 = ssub.s32 %s2960_s30, %s3739_s20 }
  0x25   : > { %p371_p9 = scmp.eq.s32.totalorder %s2347_s18, 3  ;;  %s103_s5 = sor.u32 %s102_s13, %s101_s19 }
  0x26   : > { %s3686_s10 = scalar_select %p3157_p7, 1, 0 }
  0x27   : > { %p352_p10 = scmp.eq.s32.totalorder %s101_s19, 0  ;;  %p104_p11 = scmp.eq.s32.totalorder %s103_s5, 0 }
  0x28   : > { %3687 = sst [smem:[#allocation24_spill]] %s3686_s10  ;;  %p3165_p12 = por %p371_p9, %p370_p8 }
  0x29   : > { %s3170_s9 = scalar_select %p352_p10, %s2936_s24, %s354_s12  }
  0x2a   : > { %s3688_s8 = scalar_select %p3165_p12, 1, 0 }
  0x2b   : > { %3690 = sst [smem:[#allocation26_spill]] %s3170_s9  ;;  %p3178_p13 = por %p365_p6, %p113_p1 }
  0x2c   : > { %3689 = sst [smem:[#allocation25_spill]] %s3688_s8  ;;  %p398_p0 = scmp.ne.s32.totalorder %s2940_s25, %s2924_s21 }
  0x2d   : > { %s3173_s17 = scalar_select %p104_p11, %s2944_s26, %s106_s14  }
  0x2e   : > { %s3692_s7 = scalar_select %p3178_p13, 1, 0 }
  0x2f   : > { %3691 = sst [smem:[#allocation27_spill]] %s3173_s17  ;;  %p3184_p2 = por %p398_p0, %p371_p9 }
  0x30   : > { %3693 = sst [smem:[#allocation28_spill]] %s3692_s7  ;;  %p2349_p4 = scmp.ge.s32.totalorder %s2964_s0, 4 }
  0x31   : > { %s3694_s20 = scalar_select %p3184_p2, 1, 0 }
  0x32   : > { %505 = sbr.rel (%p2349_p4) target bundleno = 69 (0x45), region = 56 }
  0x33   : > { %3695 = sst [smem:[#allocation29_spill]] %s3694_s20 }
  0x37   : > { %508 = sbr.rel (!%p3148_p3) target bundleno = 69 (0x45), region = 60  ;;  %s510_s5 = sand.u32 (%p3148_p3), 1, %s2944_s26  }
  0x38   : > { %s2351_s12 = sshll.u32 (%p3148_p3), %s2960_s30, 3  ;;  %s2350_s13 = sshll.u32 (%p3148_p3), %s510_s5, 4 }
  0x39   : > { %s514_s14 = sadd.s32 (%p3148_p3), %s2956_s29, %s2351_s12  ;;  %s3696_s2 = sld [smem:[#allocation32_spill]] (%p3148_p3) }
  0x3a   : > { %s2352_s18 = sshll.u32 (%p3148_p3), %s514_s14, 2  ;;  %s512_s24 = scalar_lea.vmem (%p3148_p3), [#allocation7], %s2350_s13 }
  0x3f   : > { %s516_s9 = scalar_lea.vmem %s3696_s2, %s2352_s18 }
  0x40   : > { %v533_v0 = vld [vmem:[%s516_s9] sm:$0xf]  ;;  %v535_v1 = vld [vmem:[%s516_s9 + $0x8] sm:$0xf]  ;;  %v537_v2 = vld [vmem:[%s516_s9 + $0x10] sm:$0xf] }
  0x41   : > { %534 = vst [vmem:[%s512_s24] sm:$0xf] %v533_v0  ;;  %v539_v3 = vld [vmem:[%s516_s9 + $0x18] sm:$0xf] }
  0x42   : > { %536 = vst [vmem:[%s512_s24 + $0x4] sm:$0xf] %v535_v1 }
  0x43   : > { %538 = vst [vmem:[%s512_s24 + $0x8] sm:$0xf] %v537_v2 }
  0x44   : > { %540 = vst [vmem:[%s512_s24 + $0xc] sm:$0xf] %v539_v3 }
  0x45 PF: > { %p2353_p1 = scmp.ge.s32.totalorder %s2964_s0, 1  ;;  %p591_p3 = scmp.lt.s32.totalorder %s2964_s0, 5 }
  0x47   : > { %p592_p5 = pnand %p2353_p1, %p591_p3 }
  0x48   : > { %s3649_s9 = sand.u32 (!%p592_p5), 1, %s2940_s25   ;;  %s3651_s11 = sand.u32 (!%p592_p5), 1, %s2932_s23  }
  0x49   : > { %595 = sbr.rel (%p592_p5) target bundleno = 4043 (0xfcb), region = 109  ;;  %s3203_s24 = sshll.u32 (!%p592_p5), %s3649_s9, 4 }
  0x4a   : > { %s3207_s17 = sshll.u32 (!%p592_p5), %s3651_s11, 3  ;;  %p683_p6 = scmp.lt.s32.totalorder (!%p592_p5), %s2952_s28, 1 }
  0x4b   : > { %s2359_s5 = sshll.u32 (!%p592_p5), %s2948_s27, 4  ;;  %p701_p9 = scmp.lt.s32.totalorder (!%p592_p5), %s2948_s27, 1 }
  0x4c   : > { %p694_p8 = scmp.lt.s32.totalorder (!%p592_p5), %s2359_s5, 31  ;;  %s3697_s2 = sld [smem:[#allocation30_spill]] (!%p592_p5) }
  0x4d   : > { %s3698_s1 = sld [smem:[#allocation31_spill]] (!%p592_p5)  ;;  %s600_s8 = scalar_lea.vmem (!%p592_p5), [#allocation7], %s3203_s24 }
  0x4e   : > { %s684_s12 = scalar_select %p683_p6, %s2952_s28, 1 }
  0x4f   : > { %s3741_s5 = smov (!%p694_p8, %s2359_s5), 31  ;;  %s661_s21 = scalar_lea.vmem [#allocation8], %s3207_s17 }
  0x50   : > { %s2357_s13 = sshll.u32 %s684_s12, 3  ;;  %s2360_s14 = sshll.u32 %s684_s12, 5 }
  0x51   : > { %s702_s11 = scalar_select %p701_p9, %s2948_s27, 1 }
  0x52   : > { %s686_s30 = scalar_lea.vmem %s3697_s2, %s2357_s13  ;;  %s697_s20 = sadd.s32 %s2360_s14, %s3741_s5 }
  0x53   : > { %s690_s26 = scalar_lea.vmem %s3698_s1, %s2357_s13  ;;  %s3223_s22 = scalar_lea.vmem %s3633_s15, %s2360_s14 }
  0x54   : > { %s2361_s0 = sshll.u32 %s697_s20, 2  ;;  %s2362_s7 = sshll.u32 %s702_s11, 2 }
  0x55   : > { %s3228_s10 = scalar_lea.vmem %s3621_s3, %s2361_s0  ;;  %s3233_s29 = scalar_lea.vmem %s3622_s4, %s2362_s7 }
  0x56   : > { %s3238_s5 = scalar_lea.vmem %s3634_s16, %s2360_s14  ;;  %s3243_s19 = scalar_lea.vmem [#allocation10], %s3203_s24 }
  0x57   : > { %p2367_p10 = scmp.ne.s32.totalorder %s2948_s27, 0 }
  0x58   : > { %s3699_s0 = sld [smem:[#allocation34_spill]] (!%p2367_p10)  ;;  %s2968_s12 = smov (!%p2367_p10), 112  }
  0x59   : > { %719 = sbr.rel (%p2367_p10) target bundleno = 2116 (0x844), region = 117  ;;  %s2969_s14 = smov (!%p2367_p10), 120  }
  0x5a   : > { %s2970_s2 = smov (!%p2367_p10), 104   ;;  %s2973_s13 = smov (!%p2367_p10), 16  }
  0x5b   : > { %s3702_s25 = sld [smem:[#allocation35_spill]] (!%p2367_p10) }
  0x5e   : > { %v2561_v4 = vld [vmem:[%s3624_s6 + $0x8] sm:$0xff]  ;;  %v2563_v5 = vld [vmem:[%s3624_s6 + $0x18] sm:$0xff]  ;;  %vm1369_vm0 = vcmask 7168   ;;  %v2560_v6 = vld [vmem:[%s3624_s6] sm:$0xff]  ;;  %v2966_v9 = vmov -inf   ;;  %v2967_v15 = vmov 0.0   ;;  %s3700_s20 = smov %s3699_s0 }
  0x5f   : > { %v3255_v7 = vld [vmem:[%s686_s30] sm:$0xff]  ;;  %1370 = vst.msk [vmem:[#allocation4] sm:$0xff] %vm1369_vm0, %v2966_v9  ;;  %752 = vmatpush.bf16.msra.mxu0 %v2561_v4  ;;  %784 = vmatpush.bf16.msra.mxu1 %v2563_v5  ;;  %v2562_v10 = vld [vmem:[%s3624_s6 + $0x10] sm:$0xff]  ;;  %v2565_v12 = vld [vmem:[%s3624_s6 + $0x28] sm:$0xff]  ;;  %vm742_vm1 = vcmask 261120   ;;  %vm827_vm2 = vcmask 64512  }
  0x60   : > { %v3257_v8 = vld [vmem:[%s690_s26] sm:$0xff]  ;;  %1371 = vst.msk [vmem:[#allocation4 + $0x8] sm:$0xff] %vm1369_vm0, %v2966_v9  ;;  %820 = vmatpush.bf16.msra.mxu2 %v2565_v12  ;;  %v791_v16 = vpack.c.bf16 %v3255_v7, %v3255_v7  ;;  %s2971_s26 = smov 8   ;;  %s2972_s30 = smov 24  }
  0x61   : > { %v722_v11 = vadd.f32 %v3257_v8, %v3255_v7  ;;  %1372 = vst.msk [vmem:[#allocation4 + $0x10] sm:$0xff] %vm1369_vm0, %v2966_v9  ;;  %v2564_v13 = vld [vmem:[%s3624_s6 + $0x20] sm:$0xff] }
  0x62   : > { %1373 = vst.msk [vmem:[#allocation4 + $0x18] sm:$0xff] %vm1369_vm0, %v2966_v9  ;;  %v2738_v17 = vld [vmem:[%s3699_s0 + $0x1] ss:$0 sm:$0xff]  ;;  %v2737_v18 = vld [vmem:[%s3700_s20] ss:$0 sm:$0xff] }
  0x63   : > { %v723_v14 = vpack.c.bf16 %v722_v11, %v722_v11  ;;  %1374 = vst.msk [vmem:[#allocation5] sm:$0xff] %vm1369_vm0, %v2967_v15  ;;  %753 = vmatpush.bf16.msra.mxu0 %v2560_v6  ;;  %785 = vmatpush.bf16.msra.mxu1 %v2562_v10  ;;  %v2739_v25 = vld [vmem:[%s3700_s20 + $0x2] ss:$0 sm:$0xff] }
  0x64   : > { %1375 = vst.msk [vmem:[#allocation5 + $0x8] sm:$0xff] %vm1369_vm0, %v2967_v15  ;;  %821 = vmatpush.bf16.msra.mxu2 %v2564_v13 }
  0x65   : > { %1376 = vst.msk [vmem:[#allocation5 + $0x10] sm:$0xff] %vm1369_vm0, %v2967_v15 }
  0x66   : > { %1377 = vst.msk [vmem:[#allocation5 + $0x18] sm:$0xff] %vm1369_vm0, %v2967_v15  ;;  %2376 = vmatmul.msk.bf16.vlgmr.msra.gmra.mxu0 %vm742_vm1, %v723_v14  ;;  %2389 = vmatmul.msk.bf16.vlgmr.msra.gmra.mxu1 %vm742_vm1, %v723_v14 }
  0x67   : > { %1378 = vst.msk [vmem:[#allocation6] sm:$0xff] %vm742_vm1, %v2967_v15  ;;  %2402 = vmatmul.msk.bf16.vlgmr.msra.gmra.mxu2 %vm742_vm1, %v791_v16 }
  0x68   : > { %1379 = vst.msk [vmem:[#allocation6 + $0x8] sm:$0xff] %vm742_vm1, %v2967_v15 }
  0x69   : > { %1380 = vst.msk [vmem:[#allocation6 + $0x10] sm:$0xff] %vm742_vm1, %v2967_v15 }
  0x6a   : > { %1381 = vst.msk [vmem:[#allocation6 + $0x18] sm:$0xff] %vm742_vm1, %v2967_v15 }
  0xe3   : > { %v755_v19 = vpop.f32.mrf.mxu0  ;;  %v787_v20 = vpop.f32.mrf.mxu1 }
  0xe4   : > { %v788_v21 = vadd.f32 %v2738_v17, %v787_v20  ;;  %v756_v22 = vadd.f32 %v2737_v18, %v755_v19 }
  0xe6   : > { %984 = vrot.lane.b32.xlu2 %v788_v21, %s2968_s12  ;;  %904 = vrot.lane.b32.xlu1 %v788_v21, %s2969_s14 }
  0xe7   : > { %2403 = vmatpush.xpose.msk.msra.mxu3 %vm827_vm2, %v788_v21 }
  0xea   : > { %2404 = vmatmul.msk.f32.vlgmr.msra.gmra.mxu3 %vm827_vm2, %v756_v22  ;;  %v823_v26 = vpop.f32.mrf.mxu2 }
  0xeb   : > { %v757_v23 = vpop.f32.mrf.mxu0  ;;  %v789_v24 = vpop.f32.mrf.mxu1  ;;  %v3303_v27 = vadd.f32 %v2739_v25, %v823_v26 }
  0xed   : > { %897 = vmatpush.msrb.mxu3 %v3303_v27 }
  0xee   : > { %982 = vrot.lane.b32.xlu2 %v756_v22, %s2968_s12  ;;  %902 = vrot.lane.b32.xlu1 %v756_v22, %s2969_s14 }
  0xf2   : > { %v825_v28 = vpop.f32.mrf.mxu2 }
  0xf6   : > { %1061 = vrot.lane.b32.xlu1 %v756_v22, %s2970_s2 }
 0x140   : > { %v985_v50 = vpop.permute.xlu2 %984 }
 0x148   : > { %v983_v53 = vpop.permute.xlu2 %982 }
 0x158   : > { %v905_v29 = vpop.permute.xlu1 %904 }
 0x159   : > { %2406 = vmatpush.xpose.msk.msra.mxu3 %vm827_vm2, %v905_v29 }
 0x160   : > { %v903_v51 = vpop.permute.xlu1 %902 }
 0x168   : > { %v1062_v54 = vpop.permute.xlu1 %1061 }
 0x16d   : > { %v851_v30 = vpop.f32.mrf.mxu3 }
 0x16e   : > { %v854_v31 = vmul.f32 0.35355338, %v851_v30 }
 0x170   : > { %v855_v32 = vsel %vm827_vm2, %v854_v31, -inf }
 0x171   : > { %856 = vmax.xlane.f32.xlu0 %v855_v32 }
 0x1e4   : > { %v857_v33 = vpop.xlane.xlu0 %856 }
 0x1e5   : > { %v858_v34 = vsub.f32 %v854_v31, %v857_v33 }
 0x1e7   : > { %v859_v35 = vmul.f32 1.442695, %v858_v34 }
 0x1e9   : > { %2743 = vpow2.f32 %v859_v35 }
 0x1ef   : > { %v2744_v36 = vpop.eup %2743 }
 0x1f0   : > { %v861_v37 = vsel %vm827_vm2, %v2744_v36, 0.0 }
 0x1f1   : > { %862 = vadd.xlane.f32.xlu0 %v861_v37 }
 0x205   : > { %1063 = vrot.lane.b32.xlu0 %v788_v21, %s2970_s2 }
 0x264   : > { %v863_v38 = vpop.xlane.xlu0 %862 }
 0x265   : > { %2745 = vrcp.f32 %v863_v38  ;;  %v875_v42 = vand.u32 2147483648, %v863_v38  ;;  %v873_v44 = vand.u32 2147483647, %v863_v38  ;;  %vm869_vm4 = vweird.f32 %v863_v38 }
 0x267   : > { %v876_v46 = vor.u32 1.1754944e-38, %v875_v42  ;;  %vm874_vm6 = vcmp.eq.f32.partialorder %v873_v44, 8.507059e+37 }
 0x26b   : > { %v2746_v39 = vpop.eup %2745 }
 0x26c   : > { %v865_v40 = vmul.f32 %v2746_v39, %v863_v38  ;;  %vm870_vm3 = vweird.f32 %v2746_v39 }
 0x26d   : > { %vm871_vm5 = vmor %vm869_vm4, %vm870_vm3 }
 0x26e   : > { %v866_v41 = vsub.f32 1.0, %v865_v40 }
 0x270   : > { %v867_v43 = vmul.f32 %v2746_v39, %v866_v41 }
 0x272   : > { %v868_v45 = vadd.f32 %v2746_v39, %v867_v43 }
 0x274   : > { %v872_v47 = vsel %vm871_vm5, %v2746_v39, %v868_v45  ;;  %vm1153_vm5 = vcmask 130048  }
 0x275   : > { %v877_v48 = vsel %vm874_vm6, %v876_v46, %v872_v47  ;;  %vm1155_vm6 = vcmask 195584  }
 0x276   : > { %v878_v49 = vmul.f32 %v2744_v36, %v877_v48 }
 0x277   : > { %v1064_v52 = vpop.permute.xlu0 %1063 }
 0x278   : > { %2405 = vmatmul.msk.f32.vlgmr.msrb.gmra.mxu3 %vm827_vm2, %v878_v49 }
 0x279   : > { %2409 = vmatpush.xpose.msk.msrb.mxu3 %vm827_vm2, %v985_v50 }
 0x280   : > { %2407 = vmatmul.msk.f32.vlgmr.msra.gmra.mxu3 %vm827_vm2, %v903_v51 }
 0x281   : > { %2412 = vmatpush.xpose.msk.msra.mxu3 %vm827_vm2, %v1064_v52 }
 0x288   : > { %2410 = vmatmul.msk.f32.vlgmr.msrb.gmra.mxu3 %vm827_vm2, %v983_v53 }
 0x290   : > { %2413 = vmatmul.msk.f32.vlgmr.msra.gmra.mxu3 %vm827_vm2, %v1062_v54 }
 0x2fb   : > { %v3316_v55 = vpop.f32.mrf.mxu3 }
 0x303   : > { %v927_v56 = vpop.f32.mrf.mxu3 }
 0x304   : > { %v930_v57 = vmul.f32 0.35355338, %v927_v56 }
 0x306   : > { %v931_v58 = vsel %vm827_vm2, %v930_v57, -inf }
 0x307   : > { %932 = vmax.xlane.f32.xlu2 %v931_v58 }
 0x30b   : > { %v1007_v59 = vpop.f32.mrf.mxu3 }
 0x30c   : > { %v1010_v60 = vmul.f32 0.35355338, %v1007_v59 }
 0x30e   : > { %v1011_v61 = vsel %vm827_vm2, %v1010_v60, -inf }
 0x30f   : > { %1012 = vmax.xlane.f32.xlu1 %v1011_v61  ;;  %v2567_v61 = vld [vmem:[%s3624_s6 + $0x38] sm:$0xff] }
 0x310   : > { %1186 = vmatpush.bf16.msrb.mxu1 %v2567_v61 }
 0x313   : > { %v1086_v62 = vpop.f32.mrf.mxu3 }
 0x314   : > { %v1089_v63 = vmul.f32 0.35355338, %v1086_v62  ;;  %v2566_v62 = vld [vmem:[%s3624_s6 + $0x30] sm:$0xff] }
 0x315   : > { %1187 = vmatpush.bf16.msrb.mxu1 %v2566_v62 }
 0x316   : > { %v1090_v0 = vsel %vm827_vm2, %v1089_v63, -inf }
 0x317   : > { %1091 = vmax.xlane.f32.xlu0 %v1090_v0 }
 0x32b   : > { %1114 = vrot.lane.b32.xlu0 %v3303_v27, %s2970_s2 }
 0x37a   : > { %v933_v1 = vpop.xlane.xlu2 %932 }
 0x37b   : > { %v934_v2 = vsub.f32 %v930_v57, %v933_v1 }
 0x37d   : > { %v935_v3 = vmul.f32 1.442695, %v934_v2 }
 0x37f   : > { %2747 = vpow2.f32 %v935_v3 }
 0x382   : > { %v1013_v4 = vpop.xlane.xlu1 %1012 }
 0x383   : > { %v1014_v5 = vsub.f32 %v1010_v60, %v1013_v4 }
 0x385   : > { %v2748_v6 = vpop.eup %2747  ;;  %v1015_v9 = vmul.f32 1.442695, %v1014_v5 }
 0x386   : > { %v937_v10 = vsel %vm827_vm2, %v2748_v6, 0.0 }
 0x387   : > { %2749 = vpow2.f32 %v1015_v9  ;;  %938 = vadd.xlane.f32.xlu2 %v937_v10 }
 0x38a   : > { %v1092_v11 = vpop.xlane.xlu0 %1091 }
 0x38b   : > { %v1093_v12 = vsub.f32 %v1089_v63, %v1092_v11 }
 0x38d   : > { %v3324_v13 = vpop.eup %2749  ;;  %v1094_v14 = vmul.f32 1.442695, %v1093_v12 }
 0x38e   : > { %v1017_v15 = vsel %vm827_vm2, %v3324_v13, 0.0 }
 0x38f   : > { %2751 = vpow2.f32 %v1094_v14  ;;  %1018 = vadd.xlane.f32.xlu2 %v1017_v15 }
 0x395   : > { %v2752_v16 = vpop.eup %2751 }
 0x396   : > { %v1096_v17 = vsel %vm827_vm2, %v2752_v16, 0.0 }
 0x397   : > { %1097 = vadd.xlane.f32.xlu1 %v1096_v17 }
 0x3a7   : > { %956 = vrot.lane.b32.xlu2 %v3303_v27, %s2969_s14 }
 0x3b0   : > { %1035 = vrot.lane.b32.xlu1 %v3303_v27, %s2968_s12  ;;  %v1115_v27 = vpop.permute.xlu0 %1114 }
 0x3fa   : > { %v939_v18 = vpop.xlane.xlu2 %938 }
 0x3fb   : > { %2753 = vrcp.f32 %v939_v18  ;;  %v951_v24 = vand.u32 2147483648, %v939_v18  ;;  %v949_v25 = vand.u32 2147483647, %v939_v18  ;;  %vm945_vm8 = vweird.f32 %v939_v18 }
 0x3fd   : > { %v952_v29 = vor.u32 1.1754944e-38, %v951_v24  ;;  %vm950_vm10 = vcmp.eq.f32.partialorder %v949_v25, 8.507059e+37  ;;  %v2568_v25 = vld [vmem:[%s3702_s25 + $0x10] sm:$0xff] }
 0x401   : > { %v2754_v19 = vpop.eup %2753 }
 0x402   : > { %v941_v20 = vmul.f32 %v2754_v19, %v939_v18  ;;  %v1019_v21 = vpop.xlane.xlu2 %1018  ;;  %vm946_vm7 = vweird.f32 %v2754_v19 }
 0x403   : > { %2755 = vrcp.f32 %v1019_v21  ;;  %vm947_vm9 = vmor %vm945_vm8, %vm946_vm7  ;;  %v1031_v46 = vand.u32 2147483648, %v1019_v21  ;;  %vm1025_vm15 = vweird.f32 %v1019_v21  ;;  %v1029_v48 = vand.u32 2147483647, %v1019_v21 }
 0x404   : > { %v942_v22 = vsub.f32 1.0, %v941_v20 }
 0x405   : > { %v1032_v53 = vor.u32 1.1754944e-38, %v1031_v46  ;;  %vm1030_vm4 = vcmp.eq.f32.partialorder %v1029_v48, 8.507059e+37 }
 0x406   : > { %v943_v23 = vmul.f32 %v2754_v19, %v942_v22 }
 0x408   : > { %v944_v26 = vadd.f32 %v2754_v19, %v943_v23 }
 0x409   : > { %v2756_v28 = vpop.eup %2755 }
 0x40a   : > { %v957_v30 = vpop.permute.xlu2 %956  ;;  %v1098_v31 = vpop.xlane.xlu1 %1097  ;;  %v948_v32 = vsel %vm947_vm9, %v2754_v19, %v944_v26  ;;  %v1021_v33 = vmul.f32 %v2756_v28, %v1019_v21  ;;  %vm1026_vm12 = vweird.f32 %v2756_v28 }
 0x40b   : > { %2757 = vrcp.f32 %v1098_v31  ;;  %977 = vmatpush.msrb.mxu0 %v957_v30  ;;  %v953_v34 = vsel %vm950_vm10, %v952_v29, %v948_v32  ;;  %v1110_v41 = vand.u32 2147483648, %v1098_v31  ;;  %v1108_v43 = vand.u32 2147483647, %v1098_v31  ;;  %vm1027_vm3 = vmor %vm1025_vm15, %vm1026_vm12 }
 0x40c   : > { %v954_v35 = vmul.f32 %v2748_v6, %v953_v34  ;;  %v1022_v36 = vsub.f32 1.0, %v1021_v33  ;;  %vm1104_vm13 = vweird.f32 %v1098_v31 }
 0x40d   : > { %1135 = vmatpush.msra.mxu0 %v1115_v27  ;;  %v1111_v47 = vor.u32 1.1754944e-38, %v1110_v41  ;;  %vm1109_vm0 = vcmp.eq.f32.partialorder %v1108_v43, 8.507059e+37  ;;  %v1230_v43 = vld [vmem:[%s3702_s25] sm:$0xf] }
 0x40e   : > { %2408 = vmatmul.msk.f32.vlgmr.msrb.gmra.mxu0 %vm827_vm2, %v954_v35  ;;  %v1023_v39 = vmul.f32 %v2756_v28, %v1022_v36 }
 0x410   : > { %v1024_v44 = vadd.f32 %v2756_v28, %v1023_v39 }
 0x411   : > { %v2758_v37 = vpop.eup %2757 }
 0x412   : > { %v1100_v38 = vmul.f32 %v2758_v37, %v1098_v31  ;;  %vm1105_vm11 = vweird.f32 %v2758_v37  ;;  %v1028_v52 = vsel %vm1027_vm3, %v2756_v28, %v1024_v44 }
 0x413   : > { %vm1106_vm14 = vmor %vm1104_vm13, %vm1105_vm11  ;;  %v1033_v54 = vsel %vm1030_vm4, %v1032_v53, %v1028_v52  ;;  %vm1273_vm11 = vcmask 1043456   ;;  %v1232_v53 = vld [vmem:[%s3702_s25 + $0x8] sm:$0xf] }
 0x414   : > { %v1101_v40 = vsub.f32 1.0, %v1100_v38  ;;  %v1034_v57 = vmul.f32 %v3324_v13, %v1033_v54  ;;  %v1275_v44 = vsel %vm1273_vm11, %v1230_v43, 0  ;;  %v1320_v54 = vsel %vm1273_vm11, %v1232_v53, 0 }
 0x415   : > { %1284 = vmatpush.bf16.msrb.mxu3 %v1275_v44  ;;  %1329 = vmatpush.bf16.msra.mxu1 %v1320_v54 }
 0x416   : > { %v1102_v42 = vmul.f32 %v2758_v37, %v1101_v40 }
 0x418   : > { %v1103_v45 = vadd.f32 %v2758_v37, %v1102_v42 }
 0x41a   : > { %v1107_v49 = vsel %vm1106_vm14, %v2758_v37, %v1103_v45  ;;  %v1233_v45 = vld [vmem:[%s3702_s25 + $0xc] sm:$0xf] }
 0x41b   : > { %v1112_v50 = vsel %vm1109_vm0, %v1111_v47, %v1107_v49  ;;  %v1341_v46 = vsel %vm1273_vm11, %v1233_v45, 0 }
 0x41c   : > { %v1113_v51 = vmul.f32 %v2752_v16, %v1112_v50 }
 0x41e   : > { %2414 = vmatmul.msk.f32.vlgmr.msra.gmra.mxu0 %vm827_vm2, %v1113_v51  ;;  %v1231_v51 = vld [vmem:[%s3702_s25 + $0x4] sm:$0xf] }
 0x41f   : > { %v1299_v52 = vsel %vm1273_vm11, %v1231_v51, 0 }
 0x420   : > { %1308 = vmatpush.bf16.msrb.mxu0 %v1299_v52 }
 0x422   : > { %v1036_v56 = vpop.permute.xlu1 %1035 }
 0x423   : > { %1056 = vmatpush.msrb.mxu2 %v1036_v56 }
 0x424   : > { %2411 = vmatmul.msk.f32.vlgmr.msrb.gmra.mxu2 %vm827_vm2, %v1034_v57 }
 0x48b   : > { %v979_v58 = vpop.f32.mrf.mxu0 }
 0x48c   : > { %1141 = vrot.lane.b32.xlu2 %v979_v58, %s2971_s26  ;;  %s3701_s26 = sld [smem:[#allocation36_spill]] }
 0x492   : > { %v2740_v6 = vld [vmem:[%s3701_s26] ss:$0 sm:$0xff]  ;;  %v2741_v35 = vld [vmem:[%s3701_s26 + $0x1] ss:$0 sm:$0xff]  ;;  %v2742_v37 = vld [vmem:[%s3701_s26 + $0x2] ss:$0 sm:$0xff] }
 0x49b   : > { %v1137_v59 = vpop.f32.mrf.mxu0 }
 0x49c   : > { %1149 = vrot.lane.b32.xlu1 %v1137_v59, %s2972_s30 }
 0x4a7   : > { %v1058_v60 = vpop.f32.mrf.mxu2 }
 0x4a8   : > { %1145 = vrot.lane.b32.xlu0 %v1058_v60, %s2973_s13 }
 0x4e6   : > { %v1142_v63 = vpop.permute.xlu2 %1141 }
 0x4e7   : > { %v1152_v0 = vsel %vm827_vm2, %v3316_v55, %v1142_v63  ;;  %v2974_v55 = vmov 32.0  }
 0x4e8   : > { %2759 = vrcp.f32 %v2974_v55 }
 0x4ee   : > { %v2760_v14 = vpop.eup %2759 }
 0x4ef   : > { %v1200_v15 = vmul.f32 32.0, %v2760_v14  ;;  %vm1204_vm7 = vweird.f32 %v2760_v14 }
 0x4f1   : > { %v1201_v16 = vsub.f32 1.0, %v1200_v15 }
 0x4f3   : > { %v1202_v17 = vmul.f32 %v2760_v14, %v1201_v16 }
 0x4f5   : > { %v1203_v18 = vadd.f32 %v2760_v14, %v1202_v17 }
 0x4f7   : > { %v1205_v19 = vsel %vm1204_vm7, %v2760_v14, %v1203_v18 }
 0x50e   : > { %v1150_v2 = vpop.permute.xlu1 %1149 }
 0x51a   : > { %v1146_v1 = vpop.permute.xlu0 %1145 }
 0x51b   : > { %v1154_v3 = vsel %vm1153_vm5, %v1152_v0, %v1146_v1 }
 0x51c   : > { %v1156_v4 = vsel %vm1155_vm6, %v1154_v3, %v1150_v2 }
 0x51d   : > { %v1157_v5 = vpack.c.bf16 %v1156_v4, %v1156_v4 }
 0x51f   : > { %2427 = vmatmul.msk.bf16.vlgmr.msrb.gmra.mxu1 %vm742_vm1, %v1157_v5 }
 0x59c   : > { %v1189_v9 = vpop.f32.mrf.mxu1 }
 0x59d   : > { %v1190_v10 = vadd.f32 %v2740_v6, %v1189_v9 }
 0x59f   : > { %v1193_v11 = vadd.f32 %v1190_v10, %v3255_v7  ;;  %v2569_v7 = vld [vmem:[%s3702_s25 + $0x18] sm:$0xff] }
 0x5a0   : > { %1262 = vmatpush.bf16.msra.mxu2 %v2569_v7 }
 0x5a1   : > { %v1196_v12 = vsel %vm742_vm1, %v1193_v11, 0.0 }
 0x5a2   : > { %1197 = vadd.xlane.f32.xlu2 %v1196_v12 }
 0x5a4   : > { %v1191_v13 = vpop.f32.mrf.mxu1  ;;  %1263 = vmatpush.bf16.msra.mxu2 %v2568_v25 }
 0x5a8   : > { %1350 = vmatpush.bf16.msrb.mxu2 %v1341_v46 }
 0x615   : > { %v1198_v20 = vpop.xlane.xlu2 %1197 }
 0x616   : > { %v1206_v21 = vmul.f32 %v1205_v19, %v1198_v20 }
 0x618   : > { %v1207_v22 = vsub.f32 %v1193_v11, %v1206_v21 }
 0x61a   : > { %v1208_v23 = vmul.f32 %v1207_v22, %v1207_v22 }
 0x61c   : > { %v1209_v24 = vsel %vm742_vm1, %v1208_v23, 0.0 }
 0x61d   : > { %1210 = vadd.xlane.f32.xlu0 %v1209_v24 }
 0x690   : > { %v1211_v26 = vpop.xlane.xlu0 %1210 }
 0x691   : > { %v1212_v28 = vmul.f32 %v1211_v26, %v1205_v19 }
 0x693   : > { %v1213_v29 = vadd.f32 1e-05, %v1212_v28 }
 0x695   : > { %2761 = vrsqrt.f32 %v1213_v29  ;;  %vm1220_vm9 = vweird.f32 %v1213_v29 }
 0x69b   : > { %v2762_v30 = vpop.eup %2761 }
 0x69c   : > { %v1215_v31 = vmul.f32 %v2762_v30, %v1213_v29  ;;  %vm1221_vm8 = vweird.f32 %v2762_v30 }
 0x69d   : > { %vm1222_vm10 = vmor %vm1220_vm9, %vm1221_vm8 }
 0x69e   : > { %v1216_v32 = vmul.f32 %v2762_v30, %v1215_v31 }
 0x6a0   : > { %v1217_v27 = vmul.f32 0.5, %v1216_v32 }
 0x6a2   : > { %v1218_v33 = vsub.f32 1.5, %v1217_v27 }
 0x6a4   : > { %v1219_v34 = vmul.f32 %v2762_v30, %v1218_v33 }
 0x6a6   : > { %v1223_v36 = vsel %vm1222_vm10, %v2762_v30, %v1219_v34 }
 0x6a7   : > { %v1224_v38 = vmul.f32 %v1223_v36, %v1207_v22 }
 0x6a9   : > { %v1226_v39 = vmul.f32 %v2741_v35, %v1224_v38 }
 0x6ab   : > { %v1228_v40 = vadd.f32 %v2742_v37, %v1226_v39 }
 0x6ad   : > { %1229 = vst.msk [vmem:[#allocation2] sm:$0xff] %vm742_vm1, %v1228_v40  ;;  %v1239_v41 = vadd.f32 %v1228_v40, %v3257_v8 }
 0x6af   : > { %v1240_v42 = vpack.c.bf16 %v1239_v41, %v1239_v41 }
 0x6b1   : > { %2440 = vmatmul.msk.bf16.vlgmr.msra.gmra.mxu2 %vm742_vm1, %v1240_v42  ;;  %vm1364_vm1 = vcmask 257024  }
 0x734   : > { %v1265_v47 = vpop.f32.mrf.mxu2 }
 0x735   : > { %v1269_v8 = vpack.c.bf16 %v1265_v47, %v1265_v47 }
 0x737   : > { %v1291_v48 = vunpack.c.l.b16 %v1269_v8  ;;  %2441 = vmatmul.msk.bf16.vlgmr.msrb.gmra.mxu3 %vm827_vm2, %v1269_v8 }
 0x739   : > { %v1292_v49 = vpack.c.b16 %v1291_v48, %v1291_v48 }
 0x73b   : > { %1335 = vrot.lane.b32.xlu1 %v1292_v49, %s2970_s2 }
 0x73c   : > { %v1267_v50 = vpop.f32.mrf.mxu2 }
 0x743   : > { %1293 = vrot.lane.b32.xlu1 %v1292_v49, %s2969_s14 }
 0x74b   : > { %1314 = vrot.lane.b32.xlu1 %v1292_v49, %s2968_s12 }
 0x7ad   : > { %v1336_v56 = vpop.permute.xlu1 %1335 }
 0x7ae   : > { %2444 = vmatmul.msk.bf16.vlgmr.msrb.gmra.mxu2 %vm827_vm2, %v1336_v56 }
 0x7b5   : > { %v1294_v57 = vpop.permute.xlu1 %1293 }
 0x7b6   : > { %2442 = vmatmul.msk.bf16.vlgmr.msrb.gmra.mxu0 %vm827_vm2, %v1294_v57 }
 0x7ba   : > { %v1286_v58 = vpop.f32.mrf.mxu3 }
 0x7bb   : > { %v1356_v59 = vmul.f32 0.35355338, %v1286_v58 }
 0x7bd   : > { %v1360_v60 = vpack.c.bf16 %v1356_v59, %v1356_v59  ;;  %v1315_v61 = vpop.permute.xlu1 %1314 }
 0x7be   : > { %2443 = vmatmul.msk.bf16.vlgmr.msra.gmra.mxu1 %vm827_vm2, %v1315_v61 }
 0x7bf   : > { %1365 = vst.msk [vmem:[#allocation3] sm:$0xf] %vm1364_vm1, %v1360_v60 }
 0x7c2   : > { %v1288_v62 = vpop.f32.mrf.mxu3 }
 0x831   : > { %v1352_v63 = vpop.f32.mrf.mxu2 }
 0x832   : > { %v1359_v0 = vmul.f32 0.35355338, %v1352_v63 }
 0x833   : > { %v1310_v1 = vpop.f32.mrf.mxu0 }
 0x834   : > { %v1363_v2 = vpack.c.bf16 %v1359_v0, %v1359_v0  ;;  %v1357_v3 = vmul.f32 0.35355338, %v1310_v1 }
 0x836   : > { %1368 = vst.msk [vmem:[#allocation3 + $0xc] sm:$0xf] %vm1364_vm1, %v1363_v2  ;;  %v1361_v4 = vpack.c.bf16 %v1357_v3, %v1357_v3 }
 0x838   : > { %1366 = vst.msk [vmem:[#allocation3 + $0x4] sm:$0xf] %vm1364_vm1, %v1361_v4 }
 0x839   : > { %v1354_v5 = vpop.f32.mrf.mxu2 }
 0x83b   : > { %v1312_v6 = vpop.f32.mrf.mxu0  ;;  %v1331_v9 = vpop.f32.mrf.mxu1 }
 0x83c   : > { %v1358_v10 = vmul.f32 0.35355338, %v1331_v9 }
 0x83e   : > { %v1362_v11 = vpack.c.bf16 %v1358_v10, %v1358_v10 }
 0x840   : > { %1367 = vst.msk [vmem:[#allocation3 + $0x8] sm:$0xf] %vm1364_vm1, %v1362_v11 }
 0x843   : > { %v1333_v12 = vpop.f32.mrf.mxu1 }
 0x844 PF: > { %v2571_v13 = vld [vmem:[%s600_s8 + $0x8] sm:$0xff]  ;;  %s3703_s2 = sld [smem:[#allocation33_spill]]  ;;  %v2975_v14 = vmov 0   ;;  %v2976_v15 = vmov 1   ;;  %v2570_v16 = vld [vmem:[%s600_s8] sm:$0xff]  ;;  %v2977_v17 = vmov 2  }
 0x845   : > { %2763 = vset.pattern.permute.xlu0 %v2975_v14  ;;  %2765 = vset.pattern.permute.xlu1 %v2976_v15  ;;  %v2572_v18 = vld [vmem:[#allocation3] sm:$0xff]  ;;  %vm1412_vm2 = vcmask 261120   ;;  %v2978_v19 = vmov 3   ;;  %v2979_v20 = vmov 4   ;;  %v2980_v21 = vmov 5   ;;  %v1488_v42 = vld [vmem:[#allocation4] sm:$0xff] }
 0x846   : > { %1425 = vmatpush.bf16.msra.mxu0 %v2571_v13  ;;  %2767 = vset.pattern.permute.xlu2 %v2977_v17  ;;  %v2772_v25 = vld [vmem:[%s3233_s29] ss:$0 sm:$0xff]  ;;  %v2773_v26 = vld [vmem:[%s3233_s29 + $0x1] ss:$0 sm:$0xff]  ;;  %v2774_v28 = vld [vmem:[%s3233_s29 + $0x2] ss:$0 sm:$0xff] }
 0x847   : > { %v2573_v22 = vld [vmem:[#allocation3 + $0x8] sm:$0xff]  ;;  %vm1568_vm10 = vcmask 7168   ;;  %v1490_v45 = vld [vmem:[#allocation4 + $0x10] sm:$0xff]  ;;  %v2581_v52 = vld [vmem:[%s3228_s10 + $0x38] sm:$0xff]  ;;  %p2495_p11 = scmp.ne.s32.totalorder %s2948_s27, 1 }
 0x848   : > { %v1491_v49 = vld [vmem:[#allocation4 + $0x18] sm:$0xff]  ;;  %2603 = vmatpush.bf16.msra.mxu2 %v2581_v52  ;;  %1667 = vmatpush.bf16.msra.mxu1 %v2581_v52  ;;  %v1489_v56 = vld [vmem:[#allocation4 + $0x8] sm:$0xff]  ;;  %v2579_v4 = vld [vmem:[%s3228_s10 + $0x28] sm:$0xff]  ;;  %s3704_s29 = sld [smem:[#allocation35_spill]] (!%p2495_p11)  ;;  %s2982_s13 = smov (!%p2495_p11), 112  }
 0x849   : > { %v2580_v3 = vld [vmem:[%s3228_s10 + $0x30] sm:$0xff]  ;;  %v2578_v5 = vld [vmem:[%s3228_s10 + $0x20] sm:$0xff]  ;;  %v2577_v6 = vld [vmem:[%s3228_s10 + $0x18] sm:$0xff]  ;;  %s2983_s0 = smov (!%p2495_p11), 104   ;;  %s2984_s11 = smov (!%p2495_p11), 120  }
 0x84a   : > { %v1441_v55 = vld [vmem:[%s3703_s2] sm:$0xff]  ;;  %1426 = vmatpush.bf16.msra.mxu0 %v2570_v16  ;;  %v2576_v9 = vld [vmem:[%s3228_s10 + $0x10] sm:$0xff]  ;;  %v2575_v10 = vld [vmem:[%s3228_s10 + $0x8] sm:$0xff]  ;;  %s2986_s26 = smov (!%p2495_p11), 8   ;;  %s2987_s7 = smov (!%p2495_p11), 24  }
 0x84b   : > { %1444 = vperm.xlu0 %2763, %v1441_v55   ;;  %1454 = vperm.xlu1 %2765, %v1441_v55   ;;  %v2574_v11 = vld [vmem:[%s3228_s10] sm:$0xff]  ;;  %v1575_v52 = vld [vmem:[#allocation6] sm:$0xff]  ;;  %s3705_s10 = sld [smem:[#allocation36_spill]] (!%p2495_p11) }
 0x84c   : > { %1465 = vperm.xlu2 %2767, %v1441_v55   ;;  %2604 = vmatpush.bf16.msra.mxu2 %v2580_v3  ;;  %s3706_s8 = sld [smem:[#allocation37_spill]] (!%p2495_p11) }
 0x84d   : > { %2461 = vmatmul.msk.bf16.vlgmr.msra.gmra.mxu0 %vm1412_vm2, %v2572_v18  ;;  %1668 = vmatpush.bf16.msra.mxu1 %v2580_v3 }
 0x850   : > { %2605 = vmatpush.bf16.msra.mxu2 %v2579_v4 }
 0x851   : > { %1669 = vmatpush.bf16.msra.mxu1 %v2579_v4 }
 0x853   : > { %2764 = vset.pattern.permute.xlu0 %v2978_v19  ;;  %2766 = vset.pattern.permute.xlu1 %v2979_v20 }
 0x854   : > { %1448 = vperm.xlu0 %2764, %v1441_v55   ;;  %1459 = vperm.xlu1 %2766, %v1441_v55  }
 0x855   : > { %2768 = vset.pattern.permute.xlu2 %v2980_v21  ;;  %2606 = vmatpush.bf16.msra.mxu2 %v2578_v5 }
 0x856   : > { %1470 = vperm.xlu2 %2768, %v1441_v55   ;;  %1670 = vmatpush.bf16.msra.mxu1 %v2578_v5 }
 0x859   : > { %2607 = vmatpush.bf16.msra.mxu2 %v2577_v6 }
 0x85a   : > { %1671 = vmatpush.bf16.msra.mxu1 %v2577_v6 }
 0x85c   : > { %2771 = vset.pattern.permute.xlu0 %v2975_v14  ;;  %2769 = vset.pattern.permute.xlu1 %v2975_v14 }
 0x85d   : > { %2462 = vmatmul.msk.bf16.gmra.mxu0 %vm1412_vm2, %v2573_v22  ;;  %2608 = vmatpush.bf16.msra.mxu2 %v2576_v9 }
 0x85e   : > { %2770 = vset.pattern.permute.xlu2 %v2975_v14  ;;  %1672 = vmatpush.bf16.msra.mxu1 %v2576_v9 }
 0x861   : > { %2609 = vmatpush.bf16.msra.mxu2 %v2575_v10 }
 0x862   : > { %1673 = vmatpush.bf16.msra.mxu1 %v2575_v10 }
 0x865   : > { %2610 = vmatpush.bf16.msra.mxu2 %v2574_v11 }
 0x866   : > { %1674 = vmatpush.bf16.msra.mxu1 %v2574_v11 }
 0x8a6   : > { %v1466_v23 = vpop.permute.xlu2 %1465 }
 0x8a7   : > { %vm1467_vm15 = vcmp.ge.s32.totalorder %v2774_v28, %v1466_v23 }
 0x8b0   : > { %v1471_v30 = vpop.permute.xlu2 %1470 }
 0x8b1   : > { %vm1472_vm5 = vcmp.lt.s32.totalorder %v2774_v28, %v1471_v30  ;;  %v1548_v30 = vld [vmem:[#allocation5] sm:$0xff] }
 0x8bd   : > { %v1445_v24 = vpop.permute.xlu0 %1444  ;;  %v1455_v7 = vpop.permute.xlu1 %1454 }
 0x8be   : > { %vm1446_vm12 = vcmp.ge.s32.totalorder %v2772_v25, %v1445_v24  ;;  %vm1456_vm13 = vcmp.ge.s32.totalorder %v2773_v26, %v1455_v7 }
 0x8c6   : > { %v1449_v29 = vpop.permute.xlu0 %1448  ;;  %v1460_v31 = vpop.permute.xlu1 %1459 }
 0x8c7   : > { %vm1450_vm14 = vcmp.lt.s32.totalorder %v2772_v25, %v1449_v29  ;;  %vm1461_vm3 = vcmp.lt.s32.totalorder %v2773_v26, %v1460_v31 }
 0x8c8   : > { %vm1451_vm0 = vmand %vm1446_vm12, %vm1450_vm14 }
 0x8c9   : > { %vm1457_vm4 = vmand %vm1451_vm0, %vm1456_vm13 }
 0x8ca   : > { %vm1462_vm6 = vmand %vm1457_vm4, %vm1461_vm3  ;;  %v1428_v27 = vpop.f32.mrf.mxu0 }
 0x8cb   : > { %vm1468_vm7 = vmand %vm1462_vm6, %vm1467_vm15 }
 0x8cc   : > { %vm1473_vm8 = vmand %vm1468_vm7, %vm1472_vm5 }
 0x8cd   : > { %v1474_v32 = vsel %vm1473_vm8, 1, %v2975_v14 }
 0x8ce   : > { %vm1475_vm9 = vcmp.eq.s32.totalorder %v1474_v32, 1 }
 0x8cf   : > { %v3406_v33 = vsel %vm1475_vm9, %v1428_v27, -1e+30 }
 0x8d0   : > { %1492 = vmax.xlane.f32.xlu0 %v3406_v33 }
 0x8d2   : > { %v1430_v34 = vpop.f32.mrf.mxu0 }
 0x8d3   : > { %v3409_v35 = vsel %vm1475_vm9, %v1430_v34, -1e+30  ;;  %v1551_v34 = vld [vmem:[#allocation5 + $0x18] sm:$0xff] }
 0x8d4   : > { %v2595_v36 = vpack.c.bf16 %v3409_v35, %v3406_v33 }
 0x8d6   : > { %2596 = vst [vmem:[%s3243_s19] sm:$0xff] %v2595_v36  }
 0x8da   : > { %v1433_v37 = vpop.f32.mrf.mxu0 }
 0x8db   : > { %v3414_v38 = vsel %vm1475_vm9, %v1433_v37, -1e+30 }
 0x8dc   : > { %1496 = vmax.xlane.f32.xlu1 %v3414_v38 }
 0x8e2   : > { %v1435_v39 = vpop.f32.mrf.mxu0 }
 0x8e3   : > { %v3417_v40 = vsel %vm1475_vm9, %v1435_v39, -1e+30 }
 0x8e4   : > { %v2600_v41 = vpack.c.bf16 %v3417_v40, %v3414_v38  ;;  %1498 = vmax.xlane.f32.xlu2 %v3417_v40 }
 0x8e6   : > { %2602 = vst [vmem:[%s3243_s19 + $0x8] sm:$0xff] %v2600_v41  }
 0x8ec   : > { %1494 = vmax.xlane.f32.xlu2 %v3409_v35 }
 0x943   : > { %v1493_v43 = vpop.xlane.xlu0 %1492 }
 0x944   : > { %v1500_v44 = vmax.f32 %v1488_v42, %v1493_v43 }
 0x946   : > { %1694 = vst.msk [vmem:[#allocation4] sm:$0xff] %vm1568_vm10, %v1500_v44  ;;  %1518 = vperm.xlu0 %2771, %v1500_v44   ;;  %v1504_v53 = vsub.f32 %v1488_v42, %v1500_v44  ;;  %v1549_v44 = vld [vmem:[#allocation5 + $0x8] sm:$0xff] }
 0x948   : > { %v1508_v57 = vmul.f32 1.442695, %v1504_v53 }
 0x94f   : > { %v1497_v46 = vpop.xlane.xlu1 %1496 }
 0x950   : > { %v1502_v47 = vmax.f32 %v1490_v45, %v1497_v46 }
 0x952   : > { %v1506_v8 = vsub.f32 %v1490_v45, %v1502_v47  ;;  %1696 = vst.msk [vmem:[#allocation4 + $0x10] sm:$0xff] %vm1568_vm10, %v1502_v47  ;;  %1528 = vperm.xlu1 %2769, %v1502_v47   ;;  %v1577_v45 = vld [vmem:[#allocation6 + $0x10] sm:$0xff] }
 0x954   : > { %v1512_v48 = vmul.f32 1.442695, %v1506_v8 }
 0x956   : > { %2775 = vpow2.f32 %v1512_v48 }
 0x957   : > { %v1499_v50 = vpop.xlane.xlu2 %1498  ;;  %2777 = vpow2.f32 %v1508_v57 }
 0x958   : > { %v1503_v51 = vmax.f32 %v1491_v49, %v1499_v50 }
 0x95a   : > { %1697 = vst.msk [vmem:[#allocation4 + $0x18] sm:$0xff] %vm1568_vm10, %v1503_v51  ;;  %1533 = vperm.xlu2 %2770, %v1503_v51   ;;  %v1507_v63 = vsub.f32 %v1491_v49, %v1503_v51  ;;  %v1578_v51 = vld [vmem:[#allocation6 + $0x18] sm:$0xff] }
 0x95c   : > { %v3428_v54 = vpop.eup %2775  ;;  %v1514_v0 = vmul.f32 1.442695, %v1507_v63 }
 0x95d   : > { %1591 = vperm.xlu0 %2771, %v3428_v54   ;;  %v2778_v62 = vpop.eup %2777 }
 0x95e   : > { %v1552_v32 = vmul.f32 %v2778_v62, %v1548_v30 }
 0x95f   : > { %v1495_v58 = vpop.xlane.xlu2 %1494 }
 0x960   : > { %v1501_v59 = vmax.f32 %v1489_v56, %v1495_v58 }
 0x962   : > { %1695 = vst.msk [vmem:[#allocation4 + $0x8] sm:$0xff] %vm1568_vm10, %v1501_v59  ;;  %1523 = vperm.xlu1 %2769, %v1501_v59   ;;  %v1505_v60 = vsub.f32 %v1489_v56, %v1501_v59 }
 0x964   : > { %v1510_v61 = vmul.f32 1.442695, %v1505_v60  ;;  %v1576_v60 = vld [vmem:[#allocation6 + $0x8] sm:$0xff] }
 0x966   : > { %2779 = vpow2.f32 %v1510_v61 }
 0x967   : > { %2781 = vpow2.f32 %v1514_v0 }
 0x96a   : > { %1581 = vperm.xlu1 %2769, %v2778_v62  }
 0x96c   : > { %v3432_v1 = vpop.eup %2779 }
 0x96d   : > { %v2782_v2 = vpop.eup %2781  ;;  %v1553_v46 = vmul.f32 %v3432_v1, %v1549_v44 }
 0x96e   : > { %v1555_v36 = vmul.f32 %v2782_v2, %v1551_v34 }
 0x972   : > { %1586 = vperm.xlu1 %2769, %v3432_v1  }
 0x97a   : > { %1596 = vperm.xlu1 %2769, %v2782_v2  }
 0x9b4   : > { %v1534_v55 = vpop.permute.xlu2 %1533 }
 0x9b5   : > { %v1539_v15 = vsub.f32 %v3417_v40, %v1534_v55 }
 0x9b7   : > { %v1546_v16 = vmul.f32 1.442695, %v1539_v15 }
 0x9b8   : > { %v1519_v12 = vpop.permute.xlu0 %1518 }
 0x9b9   : > { %v1536_v13 = vsub.f32 %v3406_v33, %v1519_v12 }
 0x9bb   : > { %v1540_v14 = vmul.f32 1.442695, %v1536_v13 }
 0x9bd   : > { %2783 = vpow2.f32 %v1540_v14 }
 0x9be   : > { %2785 = vpow2.f32 %v1546_v16 }
 0x9c3   : > { %v2784_v17 = vpop.eup %2783 }
 0x9c4   : > { %1556 = vadd.xlane.f32.xlu2 %v2784_v17  ;;  %v1529_v18 = vpop.permute.xlu1 %1528  ;;  %v2786_v20 = vpop.eup %2785 }
 0x9c5   : > { %v1538_v19 = vsub.f32 %v3414_v38, %v1529_v18 }
 0x9c7   : > { %v1544_v21 = vmul.f32 1.442695, %v1538_v19 }
 0x9c9   : > { %2787 = vpow2.f32 %v1544_v21 }
 0x9cc   : > { %1562 = vadd.xlane.f32.xlu2 %v2786_v20 }
 0x9cf   : > { %v2788_v22 = vpop.eup %2787  ;;  %v1592_v43 = vpop.permute.xlu0 %1591 }
 0x9d0   : > { %1560 = vadd.xlane.f32.xlu1 %v2788_v22  ;;  %v1574_v23 = vpack.c.bf16 %v2786_v20, %v2788_v22  ;;  %v1601_v8 = vmul.f32 %v1592_v43, %v1577_v45 }
 0x9d2   : > { %1680 = vmatmul.bf16.vlgmr.msra.gmra.mxu2 %v1574_v23 }
 0x9d4   : > { %v1524_v24 = vpop.permute.xlu1 %1523 }
 0x9d5   : > { %v1537_v7 = vsub.f32 %v3409_v35, %v1524_v24  ;;  %v1550_v35 = vld [vmem:[#allocation5 + $0x10] sm:$0xff] }
 0x9d6   : > { %v1554_v40 = vmul.f32 %v3428_v54, %v1550_v35 }
 0x9d7   : > { %v1542_v25 = vmul.f32 1.442695, %v1537_v7 }
 0x9d9   : > { %2789 = vpow2.f32 %v1542_v25 }
 0x9dc   : > { %v1582_v29 = vpop.permute.xlu1 %1581 }
 0x9dd   : > { %v1599_v56 = vmul.f32 %v1582_v29, %v1575_v52 }
 0x9df   : > { %v2790_v26 = vpop.eup %2789 }
 0x9e0   : > { %1558 = vadd.xlane.f32.xlu0 %v2790_v26  ;;  %v1573_v28 = vpack.c.bf16 %v2790_v26, %v2784_v17 }
 0x9e2   : > { %1675 = vmatmul.bf16.vlgmr.msra.gmra.mxu1 %v1573_v28 }
 0x9e4   : > { %v1587_v31 = vpop.permute.xlu1 %1586 }
 0x9e5   : > { %v1600_v61 = vmul.f32 %v1587_v31, %v1576_v60 }
 0x9ec   : > { %v1597_v37 = vpop.permute.xlu1 %1596 }
 0x9ed   : > { %v1602_v53 = vmul.f32 %v1597_v37, %v1578_v51 }
 0xa37   : > { %v1557_v27 = vpop.xlane.xlu2 %1556 }
 0xa38   : > { %v1564_v33 = vadd.f32 %v1557_v27, %v1552_v32 }
 0xa3a   : > { %1569 = vst.msk [vmem:[#allocation5] sm:$0xff] %vm1568_vm10, %v1564_v33 }
 0xa3f   : > { %v1563_v38 = vpop.xlane.xlu2 %1562 }
 0xa40   : > { %v1567_v39 = vadd.f32 %v1563_v38, %v1555_v36 }
 0xa42   : > { %1572 = vst.msk [vmem:[#allocation5 + $0x18] sm:$0xff] %vm1568_vm10, %v1567_v39 }
 0xa43   : > { %v1561_v41 = vpop.xlane.xlu1 %1560 }
 0xa44   : > { %v1566_v42 = vadd.f32 %v1561_v41, %v1554_v40 }
 0xa46   : > { %1571 = vst.msk [vmem:[#allocation5 + $0x10] sm:$0xff] %vm1568_vm10, %v1566_v42 }
 0xa53   : > { %v1559_v47 = vpop.xlane.xlu0 %1558 }
 0xa54   : > { %v1565_v48 = vadd.f32 %v1559_v47, %v1553_v46 }
 0xa55   : > { %v1681_v49 = vpop.f32.mrf.mxu2 }
 0xa56   : > { %1570 = vst.msk [vmem:[#allocation5 + $0x8] sm:$0xff] %vm1568_vm10, %v1565_v48  ;;  %v1688_v50 = vadd.f32 %v1681_v49, %v1601_v8 }
 0xa58   : > { %1692 = vst.msk [vmem:[#allocation6 + $0x10] sm:$0xff] %vm1412_vm2, %v1688_v50 }
 0xa5d   : > { %v1683_v54 = vpop.f32.mrf.mxu2 }
 0xa5e   : > { %v1689_v57 = vadd.f32 %v1683_v54, %v1602_v53 }
 0xa5f   : > { %v1676_v58 = vpop.f32.mrf.mxu1 }
 0xa60   : > { %1693 = vst.msk [vmem:[#allocation6 + $0x18] sm:$0xff] %vm1412_vm2, %v1689_v57  ;;  %v1686_v59 = vadd.f32 %v1676_v58, %v1599_v56 }
 0xa62   : > { %1690 = vst.msk [vmem:[#allocation6] sm:$0xff] %vm1412_vm2, %v1686_v59 }
 0xa66   : > { %1701 = sbr.rel (%p2495_p11) target bundleno = 4000 (0xfa0), region = 121 }
 0xa67   : > { %v1678_v62 = vpop.f32.mrf.mxu1 }
 0xa68   : > { %v1687_v63 = vadd.f32 %v1678_v62, %v1600_v61 }
 0xa6a   : > { %1691 = vst.msk [vmem:[#allocation6 + $0x8] sm:$0xff] %vm1412_vm2, %v1687_v63 }
 0xa6b   : > { %v2583_v0 = vld [vmem:[%s3704_s29 + $0x28] sm:$0xff]  ;;  %v2981_v2 = vmov 0   ;;  %v2582_v3 = vld [vmem:[%s3704_s29 + $0x20] sm:$0xff]  ;;  %v1706_v5 = vld [vmem:[#allocation5 + $0x18] sm:$0xff]  ;;  %vm1854_vm11 = vcmask 64512   ;;  %vm1856_vm1 = vcmask 130048  }
 0xa6c   : > { %v1705_v1 = vld [vmem:[#allocation5 + $0x10] sm:$0xff]  ;;  %2791 = vset.pattern.permute.xlu1 %v2981_v2  ;;  %v1704_v4 = vld [vmem:[#allocation5 + $0x8] sm:$0xff]  ;;  %2792 = vset.pattern.permute.xlu0 %v2981_v2  ;;  %2067 = vst.msk [vmem:[%s3238_s5 + $0x18] sm:$0xff] %vm1568_vm10, %v1706_v5  ;;  %v1703_v12 = vld [vmem:[#allocation5] sm:$0xff]  ;;  %vm1858_vm12 = vcmask 195584   ;;  %v2988_v57 = vmov 32.0  }
 0xa6d   : > { %2800 = vrcp.f32 %v1705_v1  ;;  %2066 = vst.msk [vmem:[%s3238_s5 + $0x10] sm:$0xff] %vm1568_vm10, %v1705_v1  ;;  %1800 = vrot.lane.b32.xlu0 %v2583_v0, %s2982_s13  ;;  %1769 = vmatpush.bf16.msra.mxu0 %v2583_v0  ;;  %v1713_v16 = vld [vmem:[#allocation6 + $0x10] sm:$0xff]  ;;  %v1714_v21 = vld [vmem:[#allocation6 + $0x18] sm:$0xff]  ;;  %v1711_v30 = vld [vmem:[#allocation6] sm:$0xff]  ;;  %vm2005_vm3 = vcmask 523264  }
 0xa6e   : > { %1798 = vrot.lane.b32.xlu2 %v2582_v3, %s2982_s13  ;;  %2065 = vst.msk [vmem:[%s3238_s5 + $0x8] sm:$0xff] %vm1568_vm10, %v1704_v4  ;;  %2802 = vrcp.f32 %v1706_v5  ;;  %v2585_v35 = vld [vmem:[%s3704_s29 + $0x38] sm:$0xff]  ;;  %v2584_v41 = vld [vmem:[%s3704_s29 + $0x30] sm:$0xff]  ;;  %v1702_v51 = vld [vmem:[#allocation2] sm:$0xff] }
 0xa6f   : > { %2804 = vrcp.f32 %v1704_v4  ;;  %2064 = vst.msk [vmem:[%s3238_s5] sm:$0xff] %vm1568_vm10, %v1703_v12  ;;  %s2985_s5 = smov 16   ;;  %v2793_v49 = vld [vmem:[%s3705_s10 + $0x3] ss:$0 sm:$0xff]  ;;  %v2587_v5 = vld [vmem:[%s3706_s8 + $0x8] sm:$0xff] }
 0xa70   : > { %2806 = vrcp.f32 %v1703_v12 }
 0xa71   : > { %1770 = vmatpush.bf16.msra.mxu0 %v2582_v3  ;;  %v1712_v25 = vld [vmem:[#allocation6 + $0x8] sm:$0xff]  ;;  %2808 = vrcp.f32 %v2988_v57 }
 0xa72   : > { %v2798_v57 = vld [vmem:[%s3705_s10 + $0x7] ss:$0 sm:$0xff] }
 0xa73   : > { %v2801_v6 = vpop.eup %2800 }
 0xa74   : > { %1727 = vperm.xlu1 %2791, %v2801_v6   ;;  %v2803_v9 = vpop.eup %2802  ;;  %v2586_v6 = vld [vmem:[%s3706_s8] sm:$0xff] }
 0xa75   : > { %1822 = vrot.lane.b32.xlu0 %v2583_v0, %s2983_s0  ;;  %v2805_v10 = vpop.eup %2804  ;;  %1889 = vmatpush.bf16.msrb.mxu0 %v2585_v35 }
 0xa76   : > { %1778 = vrot.lane.b32.xlu2 %v2583_v0, %s2984_s11  ;;  %v2807_v55 = vpop.eup %2806 }
 0xa77   : > { %v2809_v58 = vpop.eup %2808 }
 0xa78   : > { %v1903_v59 = vmul.f32 32.0, %v2809_v58  ;;  %vm1907_vm13 = vweird.f32 %v2809_v58 }
 0xa79   : > { %1890 = vmatpush.bf16.msrb.mxu0 %v2584_v41 }
 0xa7a   : > { %v1904_v60 = vsub.f32 1.0, %v1903_v59  ;;  %v2799_v59 = vld [vmem:[%s3705_s10 + $0x8] ss:$0 sm:$0xff] }
 0xa7c   : > { %1732 = vperm.xlu1 %2791, %v2803_v9   ;;  %v1905_v61 = vmul.f32 %v2809_v58, %v1904_v60 }
 0xa7d   : > { %1820 = vrot.lane.b32.xlu0 %v2582_v3, %s2983_s0  ;;  %s3708_s0 = sld [smem:[#allocation38_spill]] }
 0xa7e   : > { %1776 = vrot.lane.b32.xlu2 %v2582_v3, %s2984_s11  ;;  %v1906_v62 = vadd.f32 %v2809_v58, %v1905_v61 }
 0xa80   : > { %v3486_v63 = vsel %vm1907_vm13, %v2809_v58, %v1906_v62 }
 0xa84   : > { %1722 = vperm.xlu1 %2791, %v2805_v10  }
 0xa85   : > { %1717 = vperm.xlu0 %2792, %v2807_v55  }
 0xac8   : > { %v1799_v11 = vpop.permute.xlu2 %1798 }
 0xad0   : > { %v1779_v13 = vpop.permute.xlu2 %1778 }
 0xad1   : > { %1791 = vmatpush.bf16.msra.mxu1 %v1779_v13 }
 0xad8   : > { %v1777_v14 = vpop.permute.xlu2 %1776 }
 0xad9   : > { %1792 = vmatpush.bf16.msra.mxu1 %v1777_v14 }
 0xadd   : > { %1962 = vmatpush.bf16.msrb.mxu1 %v2587_v5 }
 0xadf   : > { %v1801_v15 = vpop.permute.xlu0 %1800 }
 0xae0   : > { %1813 = vmatpush.bf16.msra.mxu2 %v1801_v15 }
 0xae1   : > { %1963 = vmatpush.bf16.msrb.mxu1 %v2586_v6 }
 0xae4   : > { %1814 = vmatpush.bf16.msra.mxu2 %v1799_v11 }
 0xae6   : > { %v1728_v17 = vpop.permute.xlu1 %1727 }
 0xae7   : > { %v1737_v18 = vmul.f32 %v1728_v17, %v1713_v16  ;;  %v1823_v19 = vpop.permute.xlu0 %1822 }
 0xae8   : > { %1835 = vmatpush.bf16.msra.mxu3 %v1823_v19 }
 0xae9   : > { %v1741_v20 = vpack.c.bf16 %v1737_v18, %v1737_v18 }
 0xaeb   : > { %2510 = vmatmul.msk.bf16.vlgmr.msra.gmra.mxu2 %vm1412_vm2, %v1741_v20  ;;  %v2794_v20 = vld [vmem:[%s3705_s10 + $0x4] ss:$0 sm:$0xff] }
 0xaee   : > { %v1733_v22 = vpop.permute.xlu1 %1732 }
 0xaef   : > { %v1738_v23 = vmul.f32 %v1733_v22, %v1714_v21  ;;  %v1821_v24 = vpop.permute.xlu0 %1820 }
 0xaf0   : > { %1836 = vmatpush.bf16.msra.mxu3 %v1821_v24 }
 0xaf1   : > { %v1742_v7 = vpack.c.bf16 %v1738_v23, %v1738_v23  ;;  %v2795_v23 = vld [vmem:[%s3705_s10 + $0x5] ss:$0 sm:$0xff] }
 0xaf3   : > { %2511 = vmatmul.msk.bf16.vlgmr.msra.gmra.mxu3 %vm1412_vm2, %v1742_v7 }
 0xaf6   : > { %v1723_v26 = vpop.permute.xlu1 %1722 }
 0xaf7   : > { %v1736_v28 = vmul.f32 %v1723_v26, %v1712_v25  ;;  %v1718_v31 = vpop.permute.xlu0 %1717 }
 0xaf8   : > { %v1735_v32 = vmul.f32 %v1718_v31, %v1711_v30 }
 0xaf9   : > { %v1740_v29 = vpack.c.bf16 %v1736_v28, %v1736_v28  ;;  %v2796_v28 = vld [vmem:[%s3708_s0] ss:$0 sm:$0xff] }
 0xafa   : > { %v1739_v27 = vpack.c.bf16 %v1735_v32, %v1735_v32 }
 0xafb   : > { %2509 = vmatmul.msk.bf16.vlgmr.msra.gmra.mxu1 %vm1412_vm2, %v1740_v29 }
 0xafc   : > { %2508 = vmatmul.msk.bf16.vlgmr.msra.gmra.mxu0 %vm1412_vm2, %v1739_v27 }
 0xb6e   : > { %v1816_v33 = vpop.f32.mrf.mxu2 }
 0xb6f   : > { %1847 = vrot.lane.b32.xlu2 %v1816_v33, %s2985_s5  ;;  %s3707_s5 = sld [smem:[#allocation39_spill]]  ;;  %v2797_v33 = vld [vmem:[%s3705_s10 + $0x6] ss:$0 sm:$0xff] }
 0xb75   : > { %v2591_v9 = vld [vmem:[%s3707_s5 + $0x18] sm:$0xff]  ;;  %v2590_v12 = vld [vmem:[%s3707_s5 + $0x10] sm:$0xff]  ;;  %v2589_v55 = vld [vmem:[%s3707_s5 + $0x8] sm:$0xff] }
 0xb76   : > { %v1818_v34 = vpop.f32.mrf.mxu2  ;;  %v1838_v36 = vpop.f32.mrf.mxu3  ;;  %2013 = vmatpush.bf16.msrb.mxu2 %v2591_v9  ;;  %v2588_v26 = vld [vmem:[%s3707_s5] sm:$0xff] }
 0xb78   : > { %v1794_v37 = vpop.f32.mrf.mxu1 }
 0xb79   : > { %1843 = vrot.lane.b32.xlu1 %v1794_v37, %s2986_s26  ;;  %v1772_v40 = vpop.f32.mrf.mxu0 }
 0xb7a   : > { %2014 = vmatpush.bf16.msrb.mxu2 %v2590_v12 }
 0xb7e   : > { %v1840_v38 = vpop.f32.mrf.mxu3  ;;  %2015 = vmatpush.bf16.msrb.mxu2 %v2589_v55 }
 0xb80   : > { %v1796_v39 = vpop.f32.mrf.mxu1 }
 0xb81   : > { %1851 = vrot.lane.b32.xlu1 %v1838_v36, %s2987_s7  ;;  %v1774_v42 = vpop.f32.mrf.mxu0 }
 0xb82   : > { %2016 = vmatpush.bf16.msrb.mxu2 %v2588_v26 }
 0xbc9   : > { %v1848_v45 = vpop.permute.xlu2 %1847 }
 0xbeb   : > { %v1844_v43 = vpop.permute.xlu1 %1843 }
 0xbec   : > { %v1855_v44 = vsel %vm1854_vm11, %v1772_v40, %v1844_v43 }
 0xbed   : > { %v1857_v47 = vsel %vm1856_vm1, %v1855_v44, %v1848_v45  ;;  %v2052_v44 = vld [vmem:[#allocation4] sm:$0xff]  ;;  %v2053_v45 = vld [vmem:[#allocation4 + $0x8] sm:$0xff] }
 0xbee   : > { %2056 = vst.msk [vmem:[%s3223_s22] sm:$0xff] %vm1568_vm10, %v2052_v44 }
 0xbef   : > { %2057 = vst.msk [vmem:[%s3223_s22 + $0x8] sm:$0xff] %vm1568_vm10, %v2053_v45 }
 0xbf3   : > { %v1852_v46 = vpop.permute.xlu1 %1851 }
 0xbf4   : > { %v1859_v8 = vsel %vm1858_vm12, %v1857_v47, %v1852_v46  ;;  %v2054_v46 = vld [vmem:[#allocation4 + $0x10] sm:$0xff]  ;;  %v2055_v47 = vld [vmem:[#allocation4 + $0x18] sm:$0xff] }
 0xbf5   : > { %v1860_v48 = vpack.c.bf16 %v1859_v8, %v1859_v8  ;;  %2058 = vst.msk [vmem:[%s3223_s22 + $0x10] sm:$0xff] %vm1568_vm10, %v2054_v46 }
 0xbf6   : > { %2059 = vst.msk [vmem:[%s3223_s22 + $0x18] sm:$0xff] %vm1568_vm10, %v2055_v47 }
 0xbf7   : > { %2524 = vmatmul.msk.bf16.vlgmr.msrb.gmra.mxu0 %vm1412_vm2, %v1860_v48 }
 0xc74   : > { %v1892_v50 = vpop.f32.mrf.mxu0 }
 0xc75   : > { %v1893_v52 = vadd.f32 %v2793_v49, %v1892_v50 }
 0xc77   : > { %v1896_v53 = vadd.f32 %v1893_v52, %v1702_v51 }
 0xc79   : > { %v1899_v54 = vsel %vm1412_vm2, %v1896_v53, 0.0 }
 0xc7a   : > { %1900 = vadd.xlane.f32.xlu2 %v1899_v54 }
 0xc7c   : > { %v1894_v56 = vpop.f32.mrf.mxu0 }
 0xced   : > { %v1901_v0 = vpop.xlane.xlu2 %1900 }
 0xcee   : > { %v1909_v1 = vmul.f32 %v3486_v63, %v1901_v0 }
 0xcf0   : > { %v1910_v2 = vsub.f32 %v1896_v53, %v1909_v1 }
 0xcf2   : > { %v1911_v3 = vmul.f32 %v1910_v2, %v1910_v2 }
 0xcf4   : > { %v1912_v4 = vsel %vm1412_vm2, %v1911_v3, 0.0 }
 0xcf5   : > { %1913 = vadd.xlane.f32.xlu0 %v1912_v4 }
 0xd68   : > { %v1914_v10 = vpop.xlane.xlu0 %1913 }
 0xd69   : > { %v1915_v11 = vmul.f32 %v1914_v10, %v3486_v63 }
 0xd6b   : > { %v1916_v13 = vadd.f32 1e-05, %v1915_v11 }
 0xd6d   : > { %2810 = vrsqrt.f32 %v1916_v13  ;;  %vm1923_vm15 = vweird.f32 %v1916_v13 }
 0xd73   : > { %v2811_v14 = vpop.eup %2810 }
 0xd74   : > { %v1918_v15 = vmul.f32 %v2811_v14, %v1916_v13  ;;  %vm1924_vm14 = vweird.f32 %v2811_v14 }
 0xd75   : > { %vm1925_vm0 = vmor %vm1923_vm15, %vm1924_vm14 }
 0xd76   : > { %v1919_v16 = vmul.f32 %v2811_v14, %v1918_v15 }
 0xd78   : > { %v1920_v17 = vmul.f32 0.5, %v1919_v16 }
 0xd7a   : > { %v1921_v18 = vsub.f32 1.5, %v1920_v17 }
 0xd7c   : > { %v1922_v19 = vmul.f32 %v2811_v14, %v1921_v18 }
 0xd7e   : > { %v1926_v21 = vsel %vm1925_vm0, %v2811_v14, %v1922_v19 }
 0xd7f   : > { %v1927_v22 = vmul.f32 %v1926_v21, %v1910_v2 }
 0xd81   : > { %v1929_v24 = vmul.f32 %v2794_v20, %v1927_v22 }
 0xd83   : > { %v1931_v7 = vadd.f32 %v2795_v23, %v1929_v24 }
 0xd85   : > { %v1932_v25 = vpack.c.bf16 %v1931_v7, %v1931_v7 }
 0xd87   : > { %2533 = vmatmul.msk.bf16.vlgmr.msrb.gmra.mxu1 %vm1412_vm2, %v1932_v25 }
 0xe04   : > { %v1965_v29 = vpop.f32.mrf.mxu1 }
 0xe05   : > { %v1966_v30 = vadd.f32 %v2796_v28, %v1965_v29 }
 0xe07   : > { %v1969_v31 = vmax.f32 %v1966_v30, 0.0 }
 0xe09   : > { %v1970_v32 = vpack.c.bf16 %v1969_v31, %v1969_v31 }
 0xe0b   : > { %2550 = vmatmul.msk.bf16.vlgmr.msrb.gmra.mxu2 %vm2005_vm3, %v1970_v32 }
 0xe0c   : > { %v1967_v27 = vpop.f32.mrf.mxu1 }
 0xe8e   : > { %v2018_v34 = vpop.f32.mrf.mxu2 }
 0xe8f   : > { %v2019_v36 = vadd.f32 %v2797_v33, %v2018_v34 }
 0xe91   : > { %v2022_v37 = vadd.f32 %v2019_v36, %v1931_v7 }
 0xe93   : > { %v2025_v38 = vsel %vm1412_vm2, %v2022_v37, 0.0 }
 0xe94   : > { %2026 = vadd.xlane.f32.xlu1 %v2025_v38 }
 0xe96   : > { %v2020_v39 = vpop.f32.mrf.mxu2 }
 0xf07   : > { %v2027_v35 = vpop.xlane.xlu1 %2026 }
 0xf08   : > { %v2028_v40 = vmul.f32 %v2027_v35, %v3486_v63 }
 0xf0a   : > { %v2029_v41 = vsub.f32 %v2022_v37, %v2028_v40 }
 0xf0c   : > { %v2030_v42 = vmul.f32 %v2029_v41, %v2029_v41 }
 0xf0e   : > { %v2031_v43 = vsel %vm1412_vm2, %v2030_v42, 0.0 }
 0xf0f   : > { %2032 = vadd.xlane.f32.xlu2 %v2031_v43 }
 0xf82   : > { %v2033_v8 = vpop.xlane.xlu2 %2032 }
 0xf83   : > { %v2034_v48 = vmul.f32 %v2033_v8, %v3486_v63 }
 0xf85   : > { %v2035_v49 = vadd.f32 1e-05, %v2034_v48 }
 0xf87   : > { %2812 = vrsqrt.f32 %v2035_v49  ;;  %vm2042_vm5 = vweird.f32 %v2035_v49 }
 0xf8d   : > { %v2813_v50 = vpop.eup %2812 }
 0xf8e   : > { %v2037_v51 = vmul.f32 %v2813_v50, %v2035_v49  ;;  %vm2043_vm4 = vweird.f32 %v2813_v50 }
 0xf8f   : > { %vm2044_vm6 = vmor %vm2042_vm5, %vm2043_vm4 }
 0xf90   : > { %v2038_v52 = vmul.f32 %v2813_v50, %v2037_v51 }
 0xf92   : > { %v2039_v53 = vmul.f32 0.5, %v2038_v52 }
 0xf94   : > { %v2040_v54 = vsub.f32 1.5, %v2039_v53 }
 0xf96   : > { %v2041_v56 = vmul.f32 %v2813_v50, %v2040_v54 }
 0xf98   : > { %v2045_v58 = vsel %vm2044_vm6, %v2813_v50, %v2041_v56 }
 0xf99   : > { %v2046_v60 = vmul.f32 %v2045_v58, %v2029_v41 }
 0xf9b   : > { %v2048_v61 = vmul.f32 %v2798_v57, %v2046_v60 }
 0xf9d   : > { %v2050_v62 = vadd.f32 %v2799_v59, %v2048_v61 }
 0xf9f   : > { %2051 = vst.msk [vmem:[%s661_s21] sm:$0xff] %vm1412_vm2, %v2050_v62 }
 0xfa0 PF: > { %s2553_s12 = sshll.u32 %s2952_s28, 3  ;;  %s3710_s24 = sld [smem:[#allocation40_spill]] }
 0xfa1   : > { %s2096_s25 = sshll.u32 %s661_s21, 4  ;;  %s2108_s0 = sadd.s32 %s2948_s27, %s2553_s12  ;;  %s2097_s25 = int_to_ptr.vmem [resolvable:$true] %s2096_s25 }
 0xfa2   : > { %s3712_s11 = sand.u32 1, %s2932_s23  }
 0xfa3   : > { %s2069_s26 = scalar_lea.sflag [#allocation9], %s3712_s11 }
 0xfa6   : > { %s3711_s13 = smov %s3710_s24  ;;  %s2094_s29 = scalar_lea.hbm %s3710_s24, %s2553_s12 }
 0xfa7   : > { %s2098_s10 = sshll.u32 %s2094_s29, 4  ;;  %s2834_s9 = scalar_lea.hbm %s3711_s13, 16  ;;  %s2099_s10 = int_to_ptr.hbm [resolvable:$true] %s2098_s10 }
 0xfa8   : > { %s2828_s7 = sshra.s32 %s2099_s10, 4  ;;  %s2829_s7 = int_to_ptr.hbm [resolvable:$true] %s2828_s7 }
 0xfa9   : > { %s2830_s18 = scalar_lea.hbm %s2829_s7, 8  ;;  %p2835_p3 = scmp.lt.s32.totalorder %s2829_s7, %s3711_s13 }
 0xfaa   : > { %p2831_p0 = scmp.ne.s32.totalorder %s2829_s7, %s2830_s18  ;;  %p2836_p5 = scmp.lt.s32.totalorder %s2834_s9, %s2830_s18 }
 0xfac   : > { %p2832_p4 = pnand %p2831_p0, %p3157_p7  ;;  %p2837_p6 = por %p2836_p5, %p2835_p3 }
 0xfae   : > { %p2833_p1 = pneg %p2832_p4 }
 0xfb0   : > { %p2838_p8 = pnand %p2837_p6, %p2833_p1 }
 0xfb2   : > { %2841 = shalt.err (!%p2838_p8)
}
 0xfb3   : > { %s3713_s27 = sld [smem:[#allocation17_spill]]  ;;  %s2555_s12 = sshll.u32 %s2108_s0, 2 }
 0xfb4   : > { %2611 = dma.vmem_to_hbm [thread:$0]  (%p3157_p7), %s2097_s25, 128, %s2099_s10, %s2069_s26  }
 0xfb5   : > { %s3715_s29 = sld [smem:[#allocation41_spill]]  ;;  %s2111_s22 = sshll.u32 %s3243_s19, 4  ;;  %s2112_s22 = int_to_ptr.vmem [resolvable:$true] %s2111_s22 }
 0xfb9   : > { %s3717_s7 = sand.u32 1, %s3713_s27  }
 0xfba   : > { %s2074_s18 = scalar_lea.sflag [#allocation11], %s3717_s7 }
 0xfbb   : > { %s3716_s11 = smov %s3715_s29  ;;  %s2110_s28 = scalar_lea.hbm %s3715_s29, %s2555_s12 }
 0xfbc   : > { %s2113_s1 = sshll.u32 %s2110_s28, 4  ;;  %s2862_s10 = scalar_lea.hbm %s3716_s11, 64  ;;  %s2114_s1 = int_to_ptr.hbm [resolvable:$true] %s2113_s1 }
 0xfbd   : > { %s2856_s9 = sshra.s32 %s2114_s1, 4  ;;  %s2857_s9 = int_to_ptr.hbm [resolvable:$true] %s2856_s9 }
 0xfbe   : > { %s2858_s14 = scalar_lea.hbm %s2857_s9, 16  ;;  %p2863_p7 = scmp.lt.s32.totalorder %s2857_s9, %s3716_s11 }
 0xfbf   : > { %p2859_p9 = scmp.ne.s32.totalorder %s2857_s9, %s2858_s14  ;;  %p2864_p0 = scmp.lt.s32.totalorder %s2862_s10, %s2858_s14 }
 0xfc1   : > { %p2860_p10 = pnand %p2859_p9, %p3178_p13  ;;  %p2865_p4 = por %p2864_p0, %p2863_p7 }
 0xfc3   : > { %p2861_p11 = pneg %p2860_p10 }
 0xfc5   : > { %p2866_p1 = pnand %p2865_p4, %p2861_p11 }
 0xfc7   : > { %2869 = shalt.err (!%p2866_p1)
}
 0xfc8   : > { %s2989_s19 = smov 64   ;;  %s2990_s17 = smov 128  }
 0xfc9   : > { %s2991_s27 = smov 4  }
 0xfca   : > { %2612 = dma.vmem_to_hbm [thread:$0]  (%p3178_p13), %s2112_s22, 256, %s2114_s1, %s2074_s18, %s2989_s19, %s2990_s17, %s2991_s27  }
 0xfcb PF: > { %s3718_s12 = sld [smem:[#allocation21_spill]] }
 0xfcc   : > { %s3719_s2 = sld [smem:[#allocation15_spill]] }
 0xfd1   : > { %p2622_p3 = scmp.ge.s32.totalorder %s3718_s12, 2 }
 0xfd2   : > { %s2134_s29 = sand.u32 1, %s3719_s2  }
 0xfd3   : > { %p2616_p5 = pnand %p2622_p3, %p3165_p12  ;;  %s2135_s28 = scalar_lea.sflag [#allocation9], %s2134_s29 }
 0xfd5   : > { %p2617_p6 = pneg %p2616_p5 }
 0xfd7   : > { %2915 = dma.done.wait (%p2617_p6), %s2135_s28, 128  }
 0xfd8   : > { %2917 = vsyncadd (%p2617_p6), %s2135_s28, 4294967168  ;;  %s3721_s7 = sld [smem:[#allocation14_spill]]  ;;  %p2619_p8 = pnand %p2622_p3, %p3184_p2 }
 0xfda   : > { %p2620_p9 = pneg %p2619_p8 }
 0xfde   : > { %s2144_s14 = sand.u32 1, %s3721_s7  }
 0xfdf   : > { %s2145_s21 = scalar_lea.sflag [#allocation11], %s2144_s14 }
 0xfe0   : > { %2919 = dma.done.wait (%p2620_p9), %s2145_s21, 256  }
 0xfe1   : > { %2921 = vsyncadd (%p2620_p9), %s2145_s21, 4294967040  ;;  %s33_s0 = sadd.s32 1, %s3718_s12   ;;  %s3723_s21 = sld [smem:[#allocation17_spill]] }
 0xfe2   : > { %p30_p13 = scmp.ge.s32.totalorder %s33_s0, 6   ;;  %s3724_s1 = sld [smem:[#allocation16_spill]] }
 0xfe3   : > { %s3725_s24 = sld [smem:[#allocation26_spill]]  ;;  %s3732_s22 = smov %s2932_s23 }
 0xfe4   : > { %s3726_s25 = sld [smem:[#allocation18_spill]] }
 0xfe5   : > { %s3727_s26 = sld [smem:[#allocation27_spill]]  ;;  %32 = sbr.rel (!%p30_p13) target bundleno = 22 (0x16), region = 220 }
 0xfe6   : > { %s3728_s27 = sld [smem:[#allocation19_spill]] }
 0xfe7   : > { %s3729_s28 = sld [smem:[#allocation20_spill]] }
 0xfe8   : > { %s3730_s29 = sld [smem:[#allocation22_spill]]  ;;  %s3733_s23 = smov %s3724_s1 }
 0xfe9   : > { %s3731_s30 = sld [smem:[#allocation23_spill]] }
 0xfea   :  { %2167 = vsyncpa [#allocation9], 1 }
 0xfeb   :  { %2169 = vsyncpa [#allocation9 + $0x1], 1 }
 0xfec   :  { %2170 = vsyncpa [#allocation11], 1 }
 0xfed   :  { %2172 = vsyncpa [#allocation11 + $0x1], 1 }

// kernel: tpu_custom_call.1
= control target key start
LH: loop header
LB: loop body
LE: loop exit
PB: predicated region body
PF: predicated region fallthrough
CT: control target
= control target key end

     0   :  { %s3612_s0 = inlined_call_operand.vmem [shape: f32[2,8,32], index: 0, kind: input, shape index: {}]   ;;  %s3613_s1 = inlined_call_operand.vmem [shape: f32[2,8,32], index: 1, kind: input, shape index: {}]   ;;  %s3614_s2 = inlined_call_operand.vmem [shape: bf16[2,32,256], index: 2, kind: input, shape index: {}]   ;;  %s3615_s3 = inlined_call_operand.vmem [shape: bf16[2,256,32], index: 3, kind: input, shape index: {}]   ;;  %s3616_s4 = inlined_call_operand.vmem [shape: s32[3,256], index: 4, kind: input, shape index: {}]   ;;  %s3617_s5 = inlined_call_operand.vmem [shape: s32[8,6], index: 5, kind: input, shape index: {}]   ;;  %s3618_s6 = inlined_call_operand.vmem [shape: bf16[4,32,32], index: 6, kind: input, shape index: {}]   ;;  %s3619_s7 = inlined_call_operand.vmem [shape: f32[3,32], index: 7, kind: input, shape index: {}]   ;;  %s3620_s8 = inlined_call_operand.vmem [shape: bf16[4,32,32], index: 8, kind: input, shape index: {}]   ;;  %s3621_s9 = inlined_call_operand.vmem [shape: f32[9,32], index: 9, kind: input, shape index: {}]   ;;  %s3622_s10 = inlined_call_operand.vmem [shape: bf16[32,64], index: 10, kind: input, shape index: {}]   ;;  %s3623_s11 = inlined_call_operand.vmem [shape: f32[1,64], index: 11, kind: input, shape index: {}]   ;;  %s3624_s12 = inlined_call_operand.vmem [shape: bf16[64,32], index: 12, kind: input, shape index: {}]   ;;  %s3625_s13 = inlined_call_operand.hbm [shape: f32[2,8,32], index: 13, kind: output, shape index: {0}]   ;;  %s3626_s14 = inlined_call_operand.hbm [shape: bf16[2,32,256], index: 14, kind: output, shape index: {1}]   ;;  %s3627_s15 = inlined_call_operand.vmem [shape: f32[2,32,1], index: 15, kind: output, shape index: {2}]   ;;  %s3628_s16 = inlined_call_operand.vmem [shape: f32[2,32,1], index: 16, kind: output, shape index: {3}]  }
   0x1   :  { %3657 = sst [smem:[#allocation30_spill]] %s3612_s0 }
   0x2   :  { %3658 = sst [smem:[#allocation31_spill]] %s3613_s1 }
   0x3   :  { %3659 = sst [smem:[#allocation32_spill]] %s3614_s2 }
   0x4   :  { %3660 = sst [smem:[#allocation33_spill]] %s3617_s5 }
   0x5   :  { %3661 = sst [smem:[#allocation34_spill]] %s3619_s7 }
   0x6   :  { %3662 = sst [smem:[#allocation35_spill]] %s3620_s8 }
   0x7   :  { %3663 = sst [smem:[#allocation36_spill]] %s3621_s9 }
   0x8   :  { %3664 = sst [smem:[#allocation37_spill]] %s3622_s10 }
   0x9   :  { %3665 = sst [smem:[#allocation38_spill]] %s3623_s11 }
   0xa   :  { %3666 = sst [smem:[#allocation39_spill]] %s3624_s12 }
   0xb   :  { %3667 = sst [smem:[#allocation40_spill]] %s3625_s13 }
   0xc   :  { %3668 = sst [smem:[#allocation41_spill]] %s3626_s14 }
   0xd   :  { %22 = vsyncpa [#allocation9], 0 }
   0xe   :  { %24 = vsyncpa [#allocation9 + $0x1], 0 }
   0xf   :  { %25 = vsyncpa [#allocation11], 0 }
  0x10   :  { %27 = vsyncpa [#allocation11 + $0x1], 0  ;;  %s3071_s21 = smov 0   ;;  %s3073_s22 = smov 0  }
  0x11   :  { %s3075_s23 = smov 0   ;;  %s3077_s24 = smov 0  }
  0x12   :  { %s3079_s25 = smov 0   ;;  %s3081_s26 = smov 0  }
  0x13   :  { %s3083_s27 = smov 0   ;;  %s3085_s28 = smov 0  }
  0x14   :  { %s3087_s29 = smov 0   ;;  %s3089_s30 = smov 0  }
  0x15   :  { %s3091_s0 = smov 0  }
  0x16 LB: > { %3669 = sst [smem:[#allocation14_spill]] %s2918_s21  ;;  %s2340_s17 = sadd.s32 4294967295, %s2958_s0   ;;  %s2958_s0 = sphi %s3091_s0, %s33_s0   ;;  %s2954_s30 = sphi %s3089_s30, %s3725_s30   ;;  %s2950_s29 = sphi %s3087_s29, %s3724_s29   ;;  %s2946_s28 = sphi %s3085_s28, %s3723_s28   ;;  %s2942_s27 = sphi %s3083_s27, %s3722_s27   ;;  %s2938_s26 = sphi %s3081_s26, %s3721_s26   ;;  %s2934_s25 = sphi %s3079_s25, %s3720_s25   ;;  %s2930_s24 = sphi %s3077_s24, %s3719_s24   ;;  %s2926_s23 = sphi %s3075_s23, %s3727_s23   ;;  %s2922_s22 = sphi %s3073_s22, %s3726_s22   ;;  %s2918_s21 = sphi %s3071_s21, %s3717_s21  }
  0x17   : > { %3670 = sst [smem:[#allocation15_spill]] %s2922_s22  ;;  %s2341_s18 = sadd.s32 4294967294, %s2958_s0  }
  0x18   : > { %3671 = sst [smem:[#allocation16_spill]] %s2930_s24  ;;  %s42_s19 = sadd.s32 1, %s2950_s29 }
  0x19   : > { %3672 = sst [smem:[#allocation17_spill]] %s2934_s25  ;;  %s45_s20 = sadd.s32 1, %s2954_s30 }
  0x1a   : > { %3673 = sst [smem:[#allocation18_spill]] %s2938_s26  ;;  %p43_p0 = scmp.ge.s32.totalorder %s42_s19, 2 }
  0x1b   : > { %3674 = sst [smem:[#allocation19_spill]] %s2950_s29  ;;  %s106_s14 = sadd.s32 1, %s2938_s26 }
  0x1c   : > { %3675 = sst [smem:[#allocation20_spill]] %s2954_s30  ;;  %p113_p1 = scmp.ne.s32.totalorder %s2938_s26, %s2934_s25 }
  0x1d   : > { %3676 = sst [smem:[#allocation21_spill]] %s2958_s0  ;;  %p114_p2 = scmp.eq.s32.totalorder %s2958_s0, 0 }
  0x1e   : > { %s3729_s19 = smov (%p43_p0, %s42_s19), 0  ;;  %s3731_s20 = smov (!%p43_p0, %s45_s20), %s2954_s30 }
  0x1f   : > { %3677 = sst [smem:[#allocation22_spill]] %s3729_s19  ;;  %s102_s13 = ssub.s32 %s2950_s29, %s3729_s19 }
  0x20   : > { %p3142_p3 = por %p114_p2, %p113_p1  ;;  %p47_p4 = scmp.ge.s32.totalorder %s3731_s20, 2 }
  0x21   : > { %s354_s12 = sadd.s32 1, %s2930_s24  ;;  %p364_p5 = scmp.ne.s32.totalorder %s2930_s24, %s2926_s23 }
  0x22   : > { %p365_p6 = scmp.eq.s32.totalorder %s2340_s17, 3  ;;  %s3733_s20 = smov (%p47_p4, %s3731_s20), 0 }
  0x23   : > { %3679 = sst [smem:[#allocation23_spill]] %s3733_s20  ;;  %p370_p8 = scmp.ne.s32.totalorder %s2926_s23, %s2922_s22 }
  0x24   : > { %p3151_p7 = por %p365_p6, %p364_p5  ;;  %s101_s19 = ssub.s32 %s2954_s30, %s3733_s20 }
  0x25   : > { %p371_p9 = scmp.eq.s32.totalorder %s2341_s18, 3  ;;  %s103_s5 = sor.u32 %s102_s13, %s101_s19 }
  0x26   : > { %s3680_s10 = scalar_select %p3151_p7, 1, 0 }
  0x27   : > { %p352_p10 = scmp.eq.s32.totalorder %s101_s19, 0  ;;  %p104_p11 = scmp.eq.s32.totalorder %s103_s5, 0 }
  0x28   : > { %3681 = sst [smem:[#allocation24_spill]] %s3680_s10  ;;  %p3159_p12 = por %p371_p9, %p370_p8 }
  0x29   : > { %s3164_s9 = scalar_select %p352_p10, %s2930_s24, %s354_s12  }
  0x2a   : > { %s3682_s8 = scalar_select %p3159_p12, 1, 0 }
  0x2b   : > { %3684 = sst [smem:[#allocation26_spill]] %s3164_s9  ;;  %p3172_p13 = por %p365_p6, %p113_p1 }
  0x2c   : > { %3683 = sst [smem:[#allocation25_spill]] %s3682_s8  ;;  %p398_p0 = scmp.ne.s32.totalorder %s2934_s25, %s2918_s21 }
  0x2d   : > { %s3167_s17 = scalar_select %p104_p11, %s2938_s26, %s106_s14  }
  0x2e   : > { %s3686_s7 = scalar_select %p3172_p13, 1, 0 }
  0x2f   : > { %3685 = sst [smem:[#allocation27_spill]] %s3167_s17  ;;  %p3178_p2 = por %p398_p0, %p371_p9 }
  0x30   : > { %3687 = sst [smem:[#allocation28_spill]] %s3686_s7  ;;  %p2343_p4 = scmp.ge.s32.totalorder %s2958_s0, 4 }
  0x31   : > { %s3688_s20 = scalar_select %p3178_p2, 1, 0 }
  0x32   : > { %491 = sbr.rel (%p2343_p4) target bundleno = 69 (0x45), region = 48 }
  0x33   : > { %3689 = sst [smem:[#allocation29_spill]] %s3688_s20 }
  0x37   : > { %508 = sbr.rel (!%p3142_p3) target bundleno = 69 (0x45), region = 60  ;;  %s510_s5 = sand.u32 (%p3142_p3), 1, %s2938_s26  }
  0x38   : > { %s2345_s12 = sshll.u32 (%p3142_p3), %s2954_s30, 3  ;;  %s2344_s13 = sshll.u32 (%p3142_p3), %s510_s5, 4 }
  0x39   : > { %s514_s14 = sadd.s32 (%p3142_p3), %s2950_s29, %s2345_s12  ;;  %s3690_s2 = sld [smem:[#allocation32_spill]] (%p3142_p3) }
  0x3a   : > { %s2346_s18 = sshll.u32 (%p3142_p3), %s514_s14, 2  ;;  %s512_s24 = scalar_lea.vmem (%p3142_p3), [#allocation7], %s2344_s13 }
  0x3f   : > { %s516_s9 = scalar_lea.vmem %s3690_s2, %s2346_s18 }
  0x40   : > { %v533_v0 = vld [vmem:[%s516_s9] sm:$0xf]  ;;  %v535_v1 = vld [vmem:[%s516_s9 + $0x8] sm:$0xf]  ;;  %v537_v2 = vld [vmem:[%s516_s9 + $0x10] sm:$0xf] }
  0x41   : > { %534 = vst [vmem:[%s512_s24] sm:$0xf] %v533_v0  ;;  %v539_v3 = vld [vmem:[%s516_s9 + $0x18] sm:$0xf] }
  0x42   : > { %536 = vst [vmem:[%s512_s24 + $0x4] sm:$0xf] %v535_v1 }
  0x43   : > { %538 = vst [vmem:[%s512_s24 + $0x8] sm:$0xf] %v537_v2 }
  0x44   : > { %540 = vst [vmem:[%s512_s24 + $0xc] sm:$0xf] %v539_v3 }
  0x45 PF: > { %p2347_p1 = scmp.ge.s32.totalorder %s2958_s0, 1  ;;  %p591_p3 = scmp.lt.s32.totalorder %s2958_s0, 5 }
  0x47   : > { %p592_p5 = pnand %p2347_p1, %p591_p3 }
  0x48   : > { %s3643_s9 = sand.u32 (!%p592_p5), 1, %s2934_s25   ;;  %s3645_s11 = sand.u32 (!%p592_p5), 1, %s2926_s23  }
  0x49   : > { %595 = sbr.rel (%p592_p5) target bundleno = 4043 (0xfcb), region = 109  ;;  %s3197_s24 = sshll.u32 (!%p592_p5), %s3643_s9, 4 }
  0x4a   : > { %s3201_s17 = sshll.u32 (!%p592_p5), %s3645_s11, 3  ;;  %p683_p6 = scmp.lt.s32.totalorder (!%p592_p5), %s2946_s28, 1 }
  0x4b   : > { %s2353_s5 = sshll.u32 (!%p592_p5), %s2942_s27, 4  ;;  %p701_p9 = scmp.lt.s32.totalorder (!%p592_p5), %s2942_s27, 1 }
  0x4c   : > { %p694_p8 = scmp.lt.s32.totalorder (!%p592_p5), %s2353_s5, 31  ;;  %s3691_s2 = sld [smem:[#allocation30_spill]] (!%p592_p5) }
  0x4d   : > { %s3692_s1 = sld [smem:[#allocation31_spill]] (!%p592_p5)  ;;  %s600_s8 = scalar_lea.vmem (!%p592_p5), [#allocation7], %s3197_s24 }
  0x4e   : > { %s684_s12 = scalar_select %p683_p6, %s2946_s28, 1 }
  0x4f   : > { %s3735_s5 = smov (!%p694_p8, %s2353_s5), 31  ;;  %s661_s21 = scalar_lea.vmem [#allocation8], %s3201_s17 }
  0x50   : > { %s2351_s13 = sshll.u32 %s684_s12, 3  ;;  %s2354_s14 = sshll.u32 %s684_s12, 5 }
  0x51   : > { %s702_s11 = scalar_select %p701_p9, %s2942_s27, 1 }
  0x52   : > { %s686_s30 = scalar_lea.vmem %s3691_s2, %s2351_s13  ;;  %s697_s20 = sadd.s32 %s2354_s14, %s3735_s5 }
  0x53   : > { %s690_s26 = scalar_lea.vmem %s3692_s1, %s2351_s13  ;;  %s3217_s22 = scalar_lea.vmem %s3627_s15, %s2354_s14 }
  0x54   : > { %s2355_s0 = sshll.u32 %s697_s20, 2  ;;  %s2356_s7 = sshll.u32 %s702_s11, 2 }
  0x55   : > { %s3222_s10 = scalar_lea.vmem %s3615_s3, %s2355_s0  ;;  %s3227_s29 = scalar_lea.vmem %s3616_s4, %s2356_s7 }
  0x56   : > { %s3232_s5 = scalar_lea.vmem %s3628_s16, %s2354_s14  ;;  %s3237_s19 = scalar_lea.vmem [#allocation10], %s3197_s24 }
  0x57   : > { %p2361_p10 = scmp.ne.s32.totalorder %s2942_s27, 0 }
  0x58   : > { %s3693_s0 = sld [smem:[#allocation34_spill]] (!%p2361_p10)  ;;  %s2962_s12 = smov (!%p2361_p10), 112  }
  0x59   : > { %719 = sbr.rel (%p2361_p10) target bundleno = 2116 (0x844), region = 117  ;;  %s2963_s14 = smov (!%p2361_p10), 120  }
  0x5a   : > { %s2964_s2 = smov (!%p2361_p10), 104   ;;  %s2967_s13 = smov (!%p2361_p10), 16  }
  0x5b   : > { %s3696_s25 = sld [smem:[#allocation35_spill]] (!%p2361_p10) }
  0x5e   : > { %v2555_v4 = vld [vmem:[%s3618_s6 + $0x8] sm:$0xff]  ;;  %v2557_v5 = vld [vmem:[%s3618_s6 + $0x18] sm:$0xff]  ;;  %vm1369_vm0 = vcmask 7168   ;;  %v2554_v6 = vld [vmem:[%s3618_s6] sm:$0xff]  ;;  %v2960_v9 = vmov -inf   ;;  %v2961_v15 = vmov 0.0   ;;  %s3694_s20 = smov %s3693_s0 }
  0x5f   : > { %v3249_v7 = vld [vmem:[%s686_s30] sm:$0xff]  ;;  %1370 = vst.msk [vmem:[#allocation4] sm:$0xff] %vm1369_vm0, %v2960_v9  ;;  %752 = vmatpush.bf16.msra.mxu0 %v2555_v4  ;;  %784 = vmatpush.bf16.msra.mxu1 %v2557_v5  ;;  %v2556_v10 = vld [vmem:[%s3618_s6 + $0x10] sm:$0xff]  ;;  %v2559_v12 = vld [vmem:[%s3618_s6 + $0x28] sm:$0xff]  ;;  %vm742_vm1 = vcmask 261120   ;;  %vm827_vm2 = vcmask 64512  }
  0x60   : > { %v3251_v8 = vld [vmem:[%s690_s26] sm:$0xff]  ;;  %1371 = vst.msk [vmem:[#allocation4 + $0x8] sm:$0xff] %vm1369_vm0, %v2960_v9  ;;  %820 = vmatpush.bf16.msra.mxu2 %v2559_v12  ;;  %v791_v16 = vpack.c.bf16 %v3249_v7, %v3249_v7  ;;  %s2965_s26 = smov 8   ;;  %s2966_s30 = smov 24  }
  0x61   : > { %v722_v11 = vadd.f32 %v3251_v8, %v3249_v7  ;;  %1372 = vst.msk [vmem:[#allocation4 + $0x10] sm:$0xff] %vm1369_vm0, %v2960_v9  ;;  %v2558_v13 = vld [vmem:[%s3618_s6 + $0x20] sm:$0xff] }
  0x62   : > { %1373 = vst.msk [vmem:[#allocation4 + $0x18] sm:$0xff] %vm1369_vm0, %v2960_v9  ;;  %v2732_v17 = vld [vmem:[%s3693_s0 + $0x1] ss:$0 sm:$0xff]  ;;  %v2731_v18 = vld [vmem:[%s3694_s20] ss:$0 sm:$0xff] }
  0x63   : > { %v723_v14 = vpack.c.bf16 %v722_v11, %v722_v11  ;;  %1374 = vst.msk [vmem:[#allocation5] sm:$0xff] %vm1369_vm0, %v2961_v15  ;;  %753 = vmatpush.bf16.msra.mxu0 %v2554_v6  ;;  %785 = vmatpush.bf16.msra.mxu1 %v2556_v10  ;;  %v2733_v25 = vld [vmem:[%s3694_s20 + $0x2] ss:$0 sm:$0xff] }
  0x64   : > { %1375 = vst.msk [vmem:[#allocation5 + $0x8] sm:$0xff] %vm1369_vm0, %v2961_v15  ;;  %821 = vmatpush.bf16.msra.mxu2 %v2558_v13 }
  0x65   : > { %1376 = vst.msk [vmem:[#allocation5 + $0x10] sm:$0xff] %vm1369_vm0, %v2961_v15 }
  0x66   : > { %1377 = vst.msk [vmem:[#allocation5 + $0x18] sm:$0xff] %vm1369_vm0, %v2961_v15  ;;  %2370 = vmatmul.msk.bf16.vlgmr.msra.gmra.mxu0 %vm742_vm1, %v723_v14  ;;  %2383 = vmatmul.msk.bf16.vlgmr.msra.gmra.mxu1 %vm742_vm1, %v723_v14 }
  0x67   : > { %1378 = vst.msk [vmem:[#allocation6] sm:$0xff] %vm742_vm1, %v2961_v15  ;;  %2396 = vmatmul.msk.bf16.vlgmr.msra.gmra.mxu2 %vm742_vm1, %v791_v16 }
  0x68   : > { %1379 = vst.msk [vmem:[#allocation6 + $0x8] sm:$0xff] %vm742_vm1, %v2961_v15 }
  0x69   : > { %1380 = vst.msk [vmem:[#allocation6 + $0x10] sm:$0xff] %vm742_vm1, %v2961_v15 }
  0x6a   : > { %1381 = vst.msk [vmem:[#allocation6 + $0x18] sm:$0xff] %vm742_vm1, %v2961_v15 }
  0xe3   : > { %v755_v19 = vpop.f32.mrf.mxu0  ;;  %v787_v20 = vpop.f32.mrf.mxu1 }
  0xe4   : > { %v788_v21 = vadd.f32 %v2732_v17, %v787_v20  ;;  %v756_v22 = vadd.f32 %v2731_v18, %v755_v19 }
  0xe6   : > { %984 = vrot.lane.b32.xlu2 %v788_v21, %s2962_s12  ;;  %904 = vrot.lane.b32.xlu1 %v788_v21, %s2963_s14 }
  0xe7   : > { %2397 = vmatpush.xpose.msk.msra.mxu3 %vm827_vm2, %v788_v21 }
  0xea   : > { %2398 = vmatmul.msk.f32.vlgmr.msra.gmra.mxu3 %vm827_vm2, %v756_v22  ;;  %v823_v26 = vpop.f32.mrf.mxu2 }
  0xeb   : > { %v757_v23 = vpop.f32.mrf.mxu0  ;;  %v789_v24 = vpop.f32.mrf.mxu1  ;;  %v3297_v27 = vadd.f32 %v2733_v25, %v823_v26 }
  0xed   : > { %897 = vmatpush.msrb.mxu3 %v3297_v27 }
  0xee   : > { %982 = vrot.lane.b32.xlu2 %v756_v22, %s2962_s12  ;;  %902 = vrot.lane.b32.xlu1 %v756_v22, %s2963_s14 }
  0xf2   : > { %v825_v28 = vpop.f32.mrf.mxu2 }
  0xf6   : > { %1061 = vrot.lane.b32.xlu1 %v756_v22, %s2964_s2 }
 0x140   : > { %v985_v50 = vpop.permute.xlu2 %984 }
 0x148   : > { %v983_v53 = vpop.permute.xlu2 %982 }
 0x158   : > { %v905_v29 = vpop.permute.xlu1 %904 }
 0x159   : > { %2400 = vmatpush.xpose.msk.msra.mxu3 %vm827_vm2, %v905_v29 }
 0x160   : > { %v903_v51 = vpop.permute.xlu1 %902 }
 0x168   : > { %v1062_v54 = vpop.permute.xlu1 %1061 }
 0x16d   : > { %v851_v30 = vpop.f32.mrf.mxu3 }
 0x16e   : > { %v854_v31 = vmul.f32 0.35355338, %v851_v30 }
 0x170   : > { %v855_v32 = vsel %vm827_vm2, %v854_v31, -inf }
 0x171   : > { %856 = vmax.xlane.f32.xlu0 %v855_v32 }
 0x1e4   : > { %v857_v33 = vpop.xlane.xlu0 %856 }
 0x1e5   : > { %v858_v34 = vsub.f32 %v854_v31, %v857_v33 }
 0x1e7   : > { %v859_v35 = vmul.f32 1.442695, %v858_v34 }
 0x1e9   : > { %2737 = vpow2.f32 %v859_v35 }
 0x1ef   : > { %v2738_v36 = vpop.eup %2737 }
 0x1f0   : > { %v861_v37 = vsel %vm827_vm2, %v2738_v36, 0.0 }
 0x1f1   : > { %862 = vadd.xlane.f32.xlu0 %v861_v37 }
 0x205   : > { %1063 = vrot.lane.b32.xlu0 %v788_v21, %s2964_s2 }
 0x264   : > { %v863_v38 = vpop.xlane.xlu0 %862 }
 0x265   : > { %2739 = vrcp.f32 %v863_v38  ;;  %v875_v42 = vand.u32 2147483648, %v863_v38  ;;  %v873_v44 = vand.u32 2147483647, %v863_v38  ;;  %vm869_vm4 = vweird.f32 %v863_v38 }
 0x267   : > { %v876_v46 = vor.u32 1.1754944e-38, %v875_v42  ;;  %vm874_vm6 = vcmp.eq.f32.partialorder %v873_v44, 8.507059e+37 }
 0x26b   : > { %v2740_v39 = vpop.eup %2739 }
 0x26c   : > { %v865_v40 = vmul.f32 %v2740_v39, %v863_v38  ;;  %vm870_vm3 = vweird.f32 %v2740_v39 }
 0x26d   : > { %vm871_vm5 = vmor %vm869_vm4, %vm870_vm3 }
 0x26e   : > { %v866_v41 = vsub.f32 1.0, %v865_v40 }
 0x270   : > { %v867_v43 = vmul.f32 %v2740_v39, %v866_v41 }
 0x272   : > { %v868_v45 = vadd.f32 %v2740_v39, %v867_v43 }
 0x274   : > { %v872_v47 = vsel %vm871_vm5, %v2740_v39, %v868_v45  ;;  %vm1153_vm5 = vcmask 130048  }
 0x275   : > { %v877_v48 = vsel %vm874_vm6, %v876_v46, %v872_v47  ;;  %vm1155_vm6 = vcmask 195584  }
 0x276   : > { %v878_v49 = vmul.f32 %v2738_v36, %v877_v48 }
 0x277   : > { %v1064_v52 = vpop.permute.xlu0 %1063 }
 0x278   : > { %2399 = vmatmul.msk.f32.vlgmr.msrb.gmra.mxu3 %vm827_vm2, %v878_v49 }
 0x279   : > { %2403 = vmatpush.xpose.msk.msrb.mxu3 %vm827_vm2, %v985_v50 }
 0x280   : > { %2401 = vmatmul.msk.f32.vlgmr.msra.gmra.mxu3 %vm827_vm2, %v903_v51 }
 0x281   : > { %2406 = vmatpush.xpose.msk.msra.mxu3 %vm827_vm2, %v1064_v52 }
 0x288   : > { %2404 = vmatmul.msk.f32.vlgmr.msrb.gmra.mxu3 %vm827_vm2, %v983_v53 }
 0x290   : > { %2407 = vmatmul.msk.f32.vlgmr.msra.gmra.mxu3 %vm827_vm2, %v1062_v54 }
 0x2fb   : > { %v3310_v55 = vpop.f32.mrf.mxu3 }
 0x303   : > { %v927_v56 = vpop.f32.mrf.mxu3 }
 0x304   : > { %v930_v57 = vmul.f32 0.35355338, %v927_v56 }
 0x306   : > { %v931_v58 = vsel %vm827_vm2, %v930_v57, -inf }
 0x307   : > { %932 = vmax.xlane.f32.xlu2 %v931_v58 }
 0x30b   : > { %v1007_v59 = vpop.f32.mrf.mxu3 }
 0x30c   : > { %v1010_v60 = vmul.f32 0.35355338, %v1007_v59 }
 0x30e   : > { %v1011_v61 = vsel %vm827_vm2, %v1010_v60, -inf }
 0x30f   : > { %1012 = vmax.xlane.f32.xlu1 %v1011_v61  ;;  %v2561_v61 = vld [vmem:[%s3618_s6 + $0x38] sm:$0xff] }
 0x310   : > { %1186 = vmatpush.bf16.msrb.mxu1 %v2561_v61 }
 0x313   : > { %v1086_v62 = vpop.f32.mrf.mxu3 }
 0x314   : > { %v1089_v63 = vmul.f32 0.35355338, %v1086_v62  ;;  %v2560_v62 = vld [vmem:[%s3618_s6 + $0x30] sm:$0xff] }
 0x315   : > { %1187 = vmatpush.bf16.msrb.mxu1 %v2560_v62 }
 0x316   : > { %v1090_v0 = vsel %vm827_vm2, %v1089_v63, -inf }
 0x317   : > { %1091 = vmax.xlane.f32.xlu0 %v1090_v0 }
 0x32b   : > { %1114 = vrot.lane.b32.xlu0 %v3297_v27, %s2964_s2 }
 0x37a   : > { %v933_v1 = vpop.xlane.xlu2 %932 }
 0x37b   : > { %v934_v2 = vsub.f32 %v930_v57, %v933_v1 }
 0x37d   : > { %v935_v3 = vmul.f32 1.442695, %v934_v2 }
 0x37f   : > { %2741 = vpow2.f32 %v935_v3 }
 0x382   : > { %v1013_v4 = vpop.xlane.xlu1 %1012 }
 0x383   : > { %v1014_v5 = vsub.f32 %v1010_v60, %v1013_v4 }
 0x385   : > { %v2742_v6 = vpop.eup %2741  ;;  %v1015_v9 = vmul.f32 1.442695, %v1014_v5 }
 0x386   : > { %v937_v10 = vsel %vm827_vm2, %v2742_v6, 0.0 }
 0x387   : > { %2743 = vpow2.f32 %v1015_v9  ;;  %938 = vadd.xlane.f32.xlu2 %v937_v10 }
 0x38a   : > { %v1092_v11 = vpop.xlane.xlu0 %1091 }
 0x38b   : > { %v1093_v12 = vsub.f32 %v1089_v63, %v1092_v11 }
 0x38d   : > { %v3318_v13 = vpop.eup %2743  ;;  %v1094_v14 = vmul.f32 1.442695, %v1093_v12 }
 0x38e   : > { %v1017_v15 = vsel %vm827_vm2, %v3318_v13, 0.0 }
 0x38f   : > { %2745 = vpow2.f32 %v1094_v14  ;;  %1018 = vadd.xlane.f32.xlu2 %v1017_v15 }
 0x395   : > { %v2746_v16 = vpop.eup %2745 }
 0x396   : > { %v1096_v17 = vsel %vm827_vm2, %v2746_v16, 0.0 }
 0x397   : > { %1097 = vadd.xlane.f32.xlu1 %v1096_v17 }
 0x3a7   : > { %956 = vrot.lane.b32.xlu2 %v3297_v27, %s2963_s14 }
 0x3b0   : > { %1035 = vrot.lane.b32.xlu1 %v3297_v27, %s2962_s12  ;;  %v1115_v27 = vpop.permute.xlu0 %1114 }
 0x3fa   : > { %v939_v18 = vpop.xlane.xlu2 %938 }
 0x3fb   : > { %2747 = vrcp.f32 %v939_v18  ;;  %v951_v24 = vand.u32 2147483648, %v939_v18  ;;  %v949_v25 = vand.u32 2147483647, %v939_v18  ;;  %vm945_vm8 = vweird.f32 %v939_v18 }
 0x3fd   : > { %v952_v29 = vor.u32 1.1754944e-38, %v951_v24  ;;  %vm950_vm10 = vcmp.eq.f32.partialorder %v949_v25, 8.507059e+37  ;;  %v2562_v25 = vld [vmem:[%s3696_s25 + $0x10] sm:$0xff] }
 0x401   : > { %v2748_v19 = vpop.eup %2747 }
 0x402   : > { %v941_v20 = vmul.f32 %v2748_v19, %v939_v18  ;;  %v1019_v21 = vpop.xlane.xlu2 %1018  ;;  %vm946_vm7 = vweird.f32 %v2748_v19 }
 0x403   : > { %2749 = vrcp.f32 %v1019_v21  ;;  %vm947_vm9 = vmor %vm945_vm8, %vm946_vm7  ;;  %v1031_v46 = vand.u32 2147483648, %v1019_v21  ;;  %vm1025_vm15 = vweird.f32 %v1019_v21  ;;  %v1029_v48 = vand.u32 2147483647, %v1019_v21 }
 0x404   : > { %v942_v22 = vsub.f32 1.0, %v941_v20 }
 0x405   : > { %v1032_v53 = vor.u32 1.1754944e-38, %v1031_v46  ;;  %vm1030_vm4 = vcmp.eq.f32.partialorder %v1029_v48, 8.507059e+37 }
 0x406   : > { %v943_v23 = vmul.f32 %v2748_v19, %v942_v22 }
 0x408   : > { %v944_v26 = vadd.f32 %v2748_v19, %v943_v23 }
 0x409   : > { %v2750_v28 = vpop.eup %2749 }
 0x40a   : > { %v957_v30 = vpop.permute.xlu2 %956  ;;  %v1098_v31 = vpop.xlane.xlu1 %1097  ;;  %v948_v32 = vsel %vm947_vm9, %v2748_v19, %v944_v26  ;;  %v1021_v33 = vmul.f32 %v2750_v28, %v1019_v21  ;;  %vm1026_vm12 = vweird.f32 %v2750_v28 }
 0x40b   : > { %2751 = vrcp.f32 %v1098_v31  ;;  %977 = vmatpush.msrb.mxu0 %v957_v30  ;;  %v953_v34 = vsel %vm950_vm10, %v952_v29, %v948_v32  ;;  %v1110_v41 = vand.u32 2147483648, %v1098_v31  ;;  %v1108_v43 = vand.u32 2147483647, %v1098_v31  ;;  %vm1027_vm3 = vmor %vm1025_vm15, %vm1026_vm12 }
 0x40c   : > { %v954_v35 = vmul.f32 %v2742_v6, %v953_v34  ;;  %v1022_v36 = vsub.f32 1.0, %v1021_v33  ;;  %vm1104_vm13 = vweird.f32 %v1098_v31 }
 0x40d   : > { %1135 = vmatpush.msra.mxu0 %v1115_v27  ;;  %v1111_v47 = vor.u32 1.1754944e-38, %v1110_v41  ;;  %vm1109_vm0 = vcmp.eq.f32.partialorder %v1108_v43, 8.507059e+37  ;;  %v1230_v43 = vld [vmem:[%s3696_s25] sm:$0xf] }
 0x40e   : > { %2402 = vmatmul.msk.f32.vlgmr.msrb.gmra.mxu0 %vm827_vm2, %v954_v35  ;;  %v1023_v39 = vmul.f32 %v2750_v28, %v1022_v36 }
 0x410   : > { %v1024_v44 = vadd.f32 %v2750_v28, %v1023_v39 }
 0x411   : > { %v2752_v37 = vpop.eup %2751 }
 0x412   : > { %v1100_v38 = vmul.f32 %v2752_v37, %v1098_v31  ;;  %vm1105_vm11 = vweird.f32 %v2752_v37  ;;  %v1028_v52 = vsel %vm1027_vm3, %v2750_v28, %v1024_v44 }
 0x413   : > { %vm1106_vm14 = vmor %vm1104_vm13, %vm1105_vm11  ;;  %v1033_v54 = vsel %vm1030_vm4, %v1032_v53, %v1028_v52  ;;  %vm1273_vm11 = vcmask 1043456   ;;  %v1232_v53 = vld [vmem:[%s3696_s25 + $0x8] sm:$0xf] }
 0x414   : > { %v1101_v40 = vsub.f32 1.0, %v1100_v38  ;;  %v1034_v57 = vmul.f32 %v3318_v13, %v1033_v54  ;;  %v1275_v44 = vsel %vm1273_vm11, %v1230_v43, 0  ;;  %v1320_v54 = vsel %vm1273_vm11, %v1232_v53, 0 }
 0x415   : > { %1284 = vmatpush.bf16.msrb.mxu3 %v1275_v44  ;;  %1329 = vmatpush.bf16.msra.mxu1 %v1320_v54 }
 0x416   : > { %v1102_v42 = vmul.f32 %v2752_v37, %v1101_v40 }
 0x418   : > { %v1103_v45 = vadd.f32 %v2752_v37, %v1102_v42 }
 0x41a   : > { %v1107_v49 = vsel %vm1106_vm14, %v2752_v37, %v1103_v45  ;;  %v1233_v45 = vld [vmem:[%s3696_s25 + $0xc] sm:$0xf] }
 0x41b   : > { %v1112_v50 = vsel %vm1109_vm0, %v1111_v47, %v1107_v49  ;;  %v1341_v46 = vsel %vm1273_vm11, %v1233_v45, 0 }
 0x41c   : > { %v1113_v51 = vmul.f32 %v2746_v16, %v1112_v50 }
 0x41e   : > { %2408 = vmatmul.msk.f32.vlgmr.msra.gmra.mxu0 %vm827_vm2, %v1113_v51  ;;  %v1231_v51 = vld [vmem:[%s3696_s25 + $0x4] sm:$0xf] }
 0x41f   : > { %v1299_v52 = vsel %vm1273_vm11, %v1231_v51, 0 }
 0x420   : > { %1308 = vmatpush.bf16.msrb.mxu0 %v1299_v52 }
 0x422   : > { %v1036_v56 = vpop.permute.xlu1 %1035 }
 0x423   : > { %1056 = vmatpush.msrb.mxu2 %v1036_v56 }
 0x424   : > { %2405 = vmatmul.msk.f32.vlgmr.msrb.gmra.mxu2 %vm827_vm2, %v1034_v57 }
 0x48b   : > { %v979_v58 = vpop.f32.mrf.mxu0 }
 0x48c   : > { %1141 = vrot.lane.b32.xlu2 %v979_v58, %s2965_s26  ;;  %s3695_s26 = sld [smem:[#allocation36_spill]] }
 0x492   : > { %v2734_v6 = vld [vmem:[%s3695_s26] ss:$0 sm:$0xff]  ;;  %v2735_v35 = vld [vmem:[%s3695_s26 + $0x1] ss:$0 sm:$0xff]  ;;  %v2736_v37 = vld [vmem:[%s3695_s26 + $0x2] ss:$0 sm:$0xff] }
 0x49b   : > { %v1137_v59 = vpop.f32.mrf.mxu0 }
 0x49c   : > { %1149 = vrot.lane.b32.xlu1 %v1137_v59, %s2966_s30 }
 0x4a7   : > { %v1058_v60 = vpop.f32.mrf.mxu2 }
 0x4a8   : > { %1145 = vrot.lane.b32.xlu0 %v1058_v60, %s2967_s13 }
 0x4e6   : > { %v1142_v63 = vpop.permute.xlu2 %1141 }
 0x4e7   : > { %v1152_v0 = vsel %vm827_vm2, %v3310_v55, %v1142_v63  ;;  %v2968_v55 = vmov 32.0  }
 0x4e8   : > { %2753 = vrcp.f32 %v2968_v55 }
 0x4ee   : > { %v2754_v14 = vpop.eup %2753 }
 0x4ef   : > { %v1200_v15 = vmul.f32 32.0, %v2754_v14  ;;  %vm1204_vm7 = vweird.f32 %v2754_v14 }
 0x4f1   : > { %v1201_v16 = vsub.f32 1.0, %v1200_v15 }
 0x4f3   : > { %v1202_v17 = vmul.f32 %v2754_v14, %v1201_v16 }
 0x4f5   : > { %v1203_v18 = vadd.f32 %v2754_v14, %v1202_v17 }
 0x4f7   : > { %v1205_v19 = vsel %vm1204_vm7, %v2754_v14, %v1203_v18 }
 0x50e   : > { %v1150_v2 = vpop.permute.xlu1 %1149 }
 0x51a   : > { %v1146_v1 = vpop.permute.xlu0 %1145 }
 0x51b   : > { %v1154_v3 = vsel %vm1153_vm5, %v1152_v0, %v1146_v1 }
 0x51c   : > { %v1156_v4 = vsel %vm1155_vm6, %v1154_v3, %v1150_v2 }
 0x51d   : > { %v1157_v5 = vpack.c.bf16 %v1156_v4, %v1156_v4 }
 0x51f   : > { %2421 = vmatmul.msk.bf16.vlgmr.msrb.gmra.mxu1 %vm742_vm1, %v1157_v5 }
 0x59c   : > { %v1189_v9 = vpop.f32.mrf.mxu1 }
 0x59d   : > { %v1190_v10 = vadd.f32 %v2734_v6, %v1189_v9 }
 0x59f   : > { %v1193_v11 = vadd.f32 %v1190_v10, %v3249_v7  ;;  %v2563_v7 = vld [vmem:[%s3696_s25 + $0x18] sm:$0xff] }
 0x5a0   : > { %1262 = vmatpush.bf16.msra.mxu2 %v2563_v7 }
 0x5a1   : > { %v1196_v12 = vsel %vm742_vm1, %v1193_v11, 0.0 }
 0x5a2   : > { %1197 = vadd.xlane.f32.xlu2 %v1196_v12 }
 0x5a4   : > { %v1191_v13 = vpop.f32.mrf.mxu1  ;;  %1263 = vmatpush.bf16.msra.mxu2 %v2562_v25 }
 0x5a8   : > { %1350 = vmatpush.bf16.msrb.mxu2 %v1341_v46 }
 0x615   : > { %v1198_v20 = vpop.xlane.xlu2 %1197 }
 0x616   : > { %v1206_v21 = vmul.f32 %v1205_v19, %v1198_v20 }
 0x618   : > { %v1207_v22 = vsub.f32 %v1193_v11, %v1206_v21 }
 0x61a   : > { %v1208_v23 = vmul.f32 %v1207_v22, %v1207_v22 }
 0x61c   : > { %v1209_v24 = vsel %vm742_vm1, %v1208_v23, 0.0 }
 0x61d   : > { %1210 = vadd.xlane.f32.xlu0 %v1209_v24 }
 0x690   : > { %v1211_v26 = vpop.xlane.xlu0 %1210 }
 0x691   : > { %v1212_v28 = vmul.f32 %v1211_v26, %v1205_v19 }
 0x693   : > { %v1213_v29 = vadd.f32 1e-05, %v1212_v28 }
 0x695   : > { %2755 = vrsqrt.f32 %v1213_v29  ;;  %vm1220_vm9 = vweird.f32 %v1213_v29 }
 0x69b   : > { %v2756_v30 = vpop.eup %2755 }
 0x69c   : > { %v1215_v31 = vmul.f32 %v2756_v30, %v1213_v29  ;;  %vm1221_vm8 = vweird.f32 %v2756_v30 }
 0x69d   : > { %vm1222_vm10 = vmor %vm1220_vm9, %vm1221_vm8 }
 0x69e   : > { %v1216_v32 = vmul.f32 %v2756_v30, %v1215_v31 }
 0x6a0   : > { %v1217_v27 = vmul.f32 0.5, %v1216_v32 }
 0x6a2   : > { %v1218_v33 = vsub.f32 1.5, %v1217_v27 }
 0x6a4   : > { %v1219_v34 = vmul.f32 %v2756_v30, %v1218_v33 }
 0x6a6   : > { %v1223_v36 = vsel %vm1222_vm10, %v2756_v30, %v1219_v34 }
 0x6a7   : > { %v1224_v38 = vmul.f32 %v1223_v36, %v1207_v22 }
 0x6a9   : > { %v1226_v39 = vmul.f32 %v2735_v35, %v1224_v38 }
 0x6ab   : > { %v1228_v40 = vadd.f32 %v2736_v37, %v1226_v39 }
 0x6ad   : > { %1229 = vst.msk [vmem:[#allocation2] sm:$0xff] %vm742_vm1, %v1228_v40  ;;  %v1239_v41 = vadd.f32 %v1228_v40, %v3251_v8 }
 0x6af   : > { %v1240_v42 = vpack.c.bf16 %v1239_v41, %v1239_v41 }
 0x6b1   : > { %2434 = vmatmul.msk.bf16.vlgmr.msra.gmra.mxu2 %vm742_vm1, %v1240_v42  ;;  %vm1364_vm1 = vcmask 257024  }
 0x734   : > { %v1265_v47 = vpop.f32.mrf.mxu2 }
 0x735   : > { %v1269_v8 = vpack.c.bf16 %v1265_v47, %v1265_v47 }
 0x737   : > { %v1291_v48 = vunpack.c.l.b16 %v1269_v8  ;;  %2435 = vmatmul.msk.bf16.vlgmr.msrb.gmra.mxu3 %vm827_vm2, %v1269_v8 }
 0x739   : > { %v1292_v49 = vpack.c.b16 %v1291_v48, %v1291_v48 }
 0x73b   : > { %1335 = vrot.lane.b32.xlu1 %v1292_v49, %s2964_s2 }
 0x73c   : > { %v1267_v50 = vpop.f32.mrf.mxu2 }
 0x743   : > { %1293 = vrot.lane.b32.xlu1 %v1292_v49, %s2963_s14 }
 0x74b   : > { %1314 = vrot.lane.b32.xlu1 %v1292_v49, %s2962_s12 }
 0x7ad   : > { %v1336_v56 = vpop.permute.xlu1 %1335 }
 0x7ae   : > { %2438 = vmatmul.msk.bf16.vlgmr.msrb.gmra.mxu2 %vm827_vm2, %v1336_v56 }
 0x7b5   : > { %v1294_v57 = vpop.permute.xlu1 %1293 }
 0x7b6   : > { %2436 = vmatmul.msk.bf16.vlgmr.msrb.gmra.mxu0 %vm827_vm2, %v1294_v57 }
 0x7ba   : > { %v1286_v58 = vpop.f32.mrf.mxu3 }
 0x7bb   : > { %v1356_v59 = vmul.f32 0.35355338, %v1286_v58 }
 0x7bd   : > { %v1360_v60 = vpack.c.bf16 %v1356_v59, %v1356_v59  ;;  %v1315_v61 = vpop.permute.xlu1 %1314 }
 0x7be   : > { %2437 = vmatmul.msk.bf16.vlgmr.msra.gmra.mxu1 %vm827_vm2, %v1315_v61 }
 0x7bf   : > { %1365 = vst.msk [vmem:[#allocation3] sm:$0xf] %vm1364_vm1, %v1360_v60 }
 0x7c2   : > { %v1288_v62 = vpop.f32.mrf.mxu3 }
 0x831   : > { %v1352_v63 = vpop.f32.mrf.mxu2 }
 0x832   : > { %v1359_v0 = vmul.f32 0.35355338, %v1352_v63 }
 0x833   : > { %v1310_v1 = vpop.f32.mrf.mxu0 }
 0x834   : > { %v1363_v2 = vpack.c.bf16 %v1359_v0, %v1359_v0  ;;  %v1357_v3 = vmul.f32 0.35355338, %v1310_v1 }
 0x836   : > { %1368 = vst.msk [vmem:[#allocation3 + $0xc] sm:$0xf] %vm1364_vm1, %v1363_v2  ;;  %v1361_v4 = vpack.c.bf16 %v1357_v3, %v1357_v3 }
 0x838   : > { %1366 = vst.msk [vmem:[#allocation3 + $0x4] sm:$0xf] %vm1364_vm1, %v1361_v4 }
 0x839   : > { %v1354_v5 = vpop.f32.mrf.mxu2 }
 0x83b   : > { %v1312_v6 = vpop.f32.mrf.mxu0  ;;  %v1331_v9 = vpop.f32.mrf.mxu1 }
 0x83c   : > { %v1358_v10 = vmul.f32 0.35355338, %v1331_v9 }
 0x83e   : > { %v1362_v11 = vpack.c.bf16 %v1358_v10, %v1358_v10 }
 0x840   : > { %1367 = vst.msk [vmem:[#allocation3 + $0x8] sm:$0xf] %vm1364_vm1, %v1362_v11 }
 0x843   : > { %v1333_v12 = vpop.f32.mrf.mxu1 }
 0x844 PF: > { %v2565_v13 = vld [vmem:[%s600_s8 + $0x8] sm:$0xff]  ;;  %s3697_s2 = sld [smem:[#allocation33_spill]]  ;;  %v2969_v14 = vmov 0   ;;  %v2970_v15 = vmov 1   ;;  %v2564_v16 = vld [vmem:[%s600_s8] sm:$0xff]  ;;  %v2971_v17 = vmov 2  }
 0x845   : > { %2757 = vset.pattern.permute.xlu0 %v2969_v14  ;;  %2759 = vset.pattern.permute.xlu1 %v2970_v15  ;;  %v2566_v18 = vld [vmem:[#allocation3] sm:$0xff]  ;;  %vm1412_vm2 = vcmask 261120   ;;  %v2972_v19 = vmov 3   ;;  %v2973_v20 = vmov 4   ;;  %v2974_v21 = vmov 5   ;;  %v1488_v42 = vld [vmem:[#allocation4] sm:$0xff] }
 0x846   : > { %1425 = vmatpush.bf16.msra.mxu0 %v2565_v13  ;;  %2761 = vset.pattern.permute.xlu2 %v2971_v17  ;;  %v2766_v25 = vld [vmem:[%s3227_s29] ss:$0 sm:$0xff]  ;;  %v2767_v26 = vld [vmem:[%s3227_s29 + $0x1] ss:$0 sm:$0xff]  ;;  %v2768_v28 = vld [vmem:[%s3227_s29 + $0x2] ss:$0 sm:$0xff] }
 0x847   : > { %v2567_v22 = vld [vmem:[#allocation3 + $0x8] sm:$0xff]  ;;  %vm1568_vm10 = vcmask 7168   ;;  %v1490_v45 = vld [vmem:[#allocation4 + $0x10] sm:$0xff]  ;;  %v2575_v52 = vld [vmem:[%s3222_s10 + $0x38] sm:$0xff]  ;;  %p2489_p11 = scmp.ne.s32.totalorder %s2942_s27, 1 }
 0x848   : > { %v1491_v49 = vld [vmem:[#allocation4 + $0x18] sm:$0xff]  ;;  %2597 = vmatpush.bf16.msra.mxu2 %v2575_v52  ;;  %1667 = vmatpush.bf16.msra.mxu1 %v2575_v52  ;;  %v1489_v56 = vld [vmem:[#allocation4 + $0x8] sm:$0xff]  ;;  %v2573_v4 = vld [vmem:[%s3222_s10 + $0x28] sm:$0xff]  ;;  %s3698_s29 = sld [smem:[#allocation35_spill]] (!%p2489_p11)  ;;  %s2976_s13 = smov (!%p2489_p11), 112  }
 0x849   : > { %v2574_v3 = vld [vmem:[%s3222_s10 + $0x30] sm:$0xff]  ;;  %v2572_v5 = vld [vmem:[%s3222_s10 + $0x20] sm:$0xff]  ;;  %v2571_v6 = vld [vmem:[%s3222_s10 + $0x18] sm:$0xff]  ;;  %s2977_s0 = smov (!%p2489_p11), 104   ;;  %s2978_s11 = smov (!%p2489_p11), 120  }
 0x84a   : > { %v1441_v55 = vld [vmem:[%s3697_s2] sm:$0xff]  ;;  %1426 = vmatpush.bf16.msra.mxu0 %v2564_v16  ;;  %v2570_v9 = vld [vmem:[%s3222_s10 + $0x10] sm:$0xff]  ;;  %v2569_v10 = vld [vmem:[%s3222_s10 + $0x8] sm:$0xff]  ;;  %s2980_s26 = smov (!%p2489_p11), 8   ;;  %s2981_s7 = smov (!%p2489_p11), 24  }
 0x84b   : > { %1444 = vperm.xlu0 %2757, %v1441_v55   ;;  %1454 = vperm.xlu1 %2759, %v1441_v55   ;;  %v2568_v11 = vld [vmem:[%s3222_s10] sm:$0xff]  ;;  %v1575_v52 = vld [vmem:[#allocation6] sm:$0xff]  ;;  %s3699_s10 = sld [smem:[#allocation36_spill]] (!%p2489_p11) }
 0x84c   : > { %1465 = vperm.xlu2 %2761, %v1441_v55   ;;  %2598 = vmatpush.bf16.msra.mxu2 %v2574_v3  ;;  %s3700_s8 = sld [smem:[#allocation37_spill]] (!%p2489_p11) }
 0x84d   : > { %2455 = vmatmul.msk.bf16.vlgmr.msra.gmra.mxu0 %vm1412_vm2, %v2566_v18  ;;  %1668 = vmatpush.bf16.msra.mxu1 %v2574_v3 }
 0x850   : > { %2599 = vmatpush.bf16.msra.mxu2 %v2573_v4 }
 0x851   : > { %1669 = vmatpush.bf16.msra.mxu1 %v2573_v4 }
 0x853   : > { %2758 = vset.pattern.permute.xlu0 %v2972_v19  ;;  %2760 = vset.pattern.permute.xlu1 %v2973_v20 }
 0x854   : > { %1448 = vperm.xlu0 %2758, %v1441_v55   ;;  %1459 = vperm.xlu1 %2760, %v1441_v55  }
 0x855   : > { %2762 = vset.pattern.permute.xlu2 %v2974_v21  ;;  %2600 = vmatpush.bf16.msra.mxu2 %v2572_v5 }
 0x856   : > { %1470 = vperm.xlu2 %2762, %v1441_v55   ;;  %1670 = vmatpush.bf16.msra.mxu1 %v2572_v5 }
 0x859   : > { %2601 = vmatpush.bf16.msra.mxu2 %v2571_v6 }
 0x85a   : > { %1671 = vmatpush.bf16.msra.mxu1 %v2571_v6 }
 0x85c   : > { %2765 = vset.pattern.permute.xlu0 %v2969_v14  ;;  %2763 = vset.pattern.permute.xlu1 %v2969_v14 }
 0x85d   : > { %2456 = vmatmul.msk.bf16.gmra.mxu0 %vm1412_vm2, %v2567_v22  ;;  %2602 = vmatpush.bf16.msra.mxu2 %v2570_v9 }
 0x85e   : > { %2764 = vset.pattern.permute.xlu2 %v2969_v14  ;;  %1672 = vmatpush.bf16.msra.mxu1 %v2570_v9 }
 0x861   : > { %2603 = vmatpush.bf16.msra.mxu2 %v2569_v10 }
 0x862   : > { %1673 = vmatpush.bf16.msra.mxu1 %v2569_v10 }
 0x865   : > { %2604 = vmatpush.bf16.msra.mxu2 %v2568_v11 }
 0x866   : > { %1674 = vmatpush.bf16.msra.mxu1 %v2568_v11 }
 0x8a6   : > { %v1466_v23 = vpop.permute.xlu2 %1465 }
 0x8a7   : > { %vm1467_vm15 = vcmp.ge.s32.totalorder %v2768_v28, %v1466_v23 }
 0x8b0   : > { %v1471_v30 = vpop.permute.xlu2 %1470 }
 0x8b1   : > { %vm1472_vm5 = vcmp.lt.s32.totalorder %v2768_v28, %v1471_v30  ;;  %v1548_v30 = vld [vmem:[#allocation5] sm:$0xff] }
 0x8bd   : > { %v1445_v24 = vpop.permute.xlu0 %1444  ;;  %v1455_v7 = vpop.permute.xlu1 %1454 }
 0x8be   : > { %vm1446_vm12 = vcmp.ge.s32.totalorder %v2766_v25, %v1445_v24  ;;  %vm1456_vm13 = vcmp.ge.s32.totalorder %v2767_v26, %v1455_v7 }
 0x8c6   : > { %v1449_v29 = vpop.permute.xlu0 %1448  ;;  %v1460_v31 = vpop.permute.xlu1 %1459 }
 0x8c7   : > { %vm1450_vm14 = vcmp.lt.s32.totalorder %v2766_v25, %v1449_v29  ;;  %vm1461_vm3 = vcmp.lt.s32.totalorder %v2767_v26, %v1460_v31 }
 0x8c8   : > { %vm1451_vm0 = vmand %vm1446_vm12, %vm1450_vm14 }
 0x8c9   : > { %vm1457_vm4 = vmand %vm1451_vm0, %vm1456_vm13 }
 0x8ca   : > { %vm1462_vm6 = vmand %vm1457_vm4, %vm1461_vm3  ;;  %v1428_v27 = vpop.f32.mrf.mxu0 }
 0x8cb   : > { %vm1468_vm7 = vmand %vm1462_vm6, %vm1467_vm15 }
 0x8cc   : > { %vm1473_vm8 = vmand %vm1468_vm7, %vm1472_vm5 }
 0x8cd   : > { %v1474_v32 = vsel %vm1473_vm8, 1, %v2969_v14 }
 0x8ce   : > { %vm1475_vm9 = vcmp.eq.s32.totalorder %v1474_v32, 1 }
 0x8cf   : > { %v3400_v33 = vsel %vm1475_vm9, %v1428_v27, -1e+30 }
 0x8d0   : > { %1492 = vmax.xlane.f32.xlu0 %v3400_v33 }
 0x8d2   : > { %v1430_v34 = vpop.f32.mrf.mxu0 }
 0x8d3   : > { %v3403_v35 = vsel %vm1475_vm9, %v1430_v34, -1e+30  ;;  %v1551_v34 = vld [vmem:[#allocation5 + $0x18] sm:$0xff] }
 0x8d4   : > { %v2589_v36 = vpack.c.bf16 %v3403_v35, %v3400_v33 }
 0x8d6   : > { %2590 = vst [vmem:[%s3237_s19] sm:$0xff] %v2589_v36  }
 0x8da   : > { %v1433_v37 = vpop.f32.mrf.mxu0 }
 0x8db   : > { %v3408_v38 = vsel %vm1475_vm9, %v1433_v37, -1e+30 }
 0x8dc   : > { %1496 = vmax.xlane.f32.xlu1 %v3408_v38 }
 0x8e2   : > { %v1435_v39 = vpop.f32.mrf.mxu0 }
 0x8e3   : > { %v3411_v40 = vsel %vm1475_vm9, %v1435_v39, -1e+30 }
 0x8e4   : > { %v2594_v41 = vpack.c.bf16 %v3411_v40, %v3408_v38  ;;  %1498 = vmax.xlane.f32.xlu2 %v3411_v40 }
 0x8e6   : > { %2596 = vst [vmem:[%s3237_s19 + $0x8] sm:$0xff] %v2594_v41  }
 0x8ec   : > { %1494 = vmax.xlane.f32.xlu2 %v3403_v35 }
 0x943   : > { %v1493_v43 = vpop.xlane.xlu0 %1492 }
 0x944   : > { %v1500_v44 = vmax.f32 %v1488_v42, %v1493_v43 }
 0x946   : > { %1694 = vst.msk [vmem:[#allocation4] sm:$0xff] %vm1568_vm10, %v1500_v44  ;;  %1518 = vperm.xlu0 %2765, %v1500_v44   ;;  %v1504_v53 = vsub.f32 %v1488_v42, %v1500_v44  ;;  %v1549_v44 = vld [vmem:[#allocation5 + $0x8] sm:$0xff] }
 0x948   : > { %v1508_v57 = vmul.f32 1.442695, %v1504_v53 }
 0x94f   : > { %v1497_v46 = vpop.xlane.xlu1 %1496 }
 0x950   : > { %v1502_v47 = vmax.f32 %v1490_v45, %v1497_v46 }
 0x952   : > { %v1506_v8 = vsub.f32 %v1490_v45, %v1502_v47  ;;  %1696 = vst.msk [vmem:[#allocation4 + $0x10] sm:$0xff] %vm1568_vm10, %v1502_v47  ;;  %1528 = vperm.xlu1 %2763, %v1502_v47   ;;  %v1577_v45 = vld [vmem:[#allocation6 + $0x10] sm:$0xff] }
 0x954   : > { %v1512_v48 = vmul.f32 1.442695, %v1506_v8 }
 0x956   : > { %2769 = vpow2.f32 %v1512_v48 }
 0x957   : > { %v1499_v50 = vpop.xlane.xlu2 %1498  ;;  %2771 = vpow2.f32 %v1508_v57 }
 0x958   : > { %v1503_v51 = vmax.f32 %v1491_v49, %v1499_v50 }
 0x95a   : > { %1697 = vst.msk [vmem:[#allocation4 + $0x18] sm:$0xff] %vm1568_vm10, %v1503_v51  ;;  %1533 = vperm.xlu2 %2764, %v1503_v51   ;;  %v1507_v63 = vsub.f32 %v1491_v49, %v1503_v51  ;;  %v1578_v51 = vld [vmem:[#allocation6 + $0x18] sm:$0xff] }
 0x95c   : > { %v3422_v54 = vpop.eup %2769  ;;  %v1514_v0 = vmul.f32 1.442695, %v1507_v63 }
 0x95d   : > { %1591 = vperm.xlu0 %2765, %v3422_v54   ;;  %v2772_v62 = vpop.eup %2771 }
 0x95e   : > { %v1552_v32 = vmul.f32 %v2772_v62, %v1548_v30 }
 0x95f   : > { %v1495_v58 = vpop.xlane.xlu2 %1494 }
 0x960   : > { %v1501_v59 = vmax.f32 %v1489_v56, %v1495_v58 }
 0x962   : > { %1695 = vst.msk [vmem:[#allocation4 + $0x8] sm:$0xff] %vm1568_vm10, %v1501_v59  ;;  %1523 = vperm.xlu1 %2763, %v1501_v59   ;;  %v1505_v60 = vsub.f32 %v1489_v56, %v1501_v59 }
 0x964   : > { %v1510_v61 = vmul.f32 1.442695, %v1505_v60  ;;  %v1576_v60 = vld [vmem:[#allocation6 + $0x8] sm:$0xff] }
 0x966   : > { %2773 = vpow2.f32 %v1510_v61 }
 0x967   : > { %2775 = vpow2.f32 %v1514_v0 }
 0x96a   : > { %1581 = vperm.xlu1 %2763, %v2772_v62  }
 0x96c   : > { %v3426_v1 = vpop.eup %2773 }
 0x96d   : > { %v2776_v2 = vpop.eup %2775  ;;  %v1553_v46 = vmul.f32 %v3426_v1, %v1549_v44 }
 0x96e   : > { %v1555_v36 = vmul.f32 %v2776_v2, %v1551_v34 }
 0x972   : > { %1586 = vperm.xlu1 %2763, %v3426_v1  }
 0x97a   : > { %1596 = vperm.xlu1 %2763, %v2776_v2  }
 0x9b4   : > { %v1534_v55 = vpop.permute.xlu2 %1533 }
 0x9b5   : > { %v1539_v15 = vsub.f32 %v3411_v40, %v1534_v55 }
 0x9b7   : > { %v1546_v16 = vmul.f32 1.442695, %v1539_v15 }
 0x9b8   : > { %v1519_v12 = vpop.permute.xlu0 %1518 }
 0x9b9   : > { %v1536_v13 = vsub.f32 %v3400_v33, %v1519_v12 }
 0x9bb   : > { %v1540_v14 = vmul.f32 1.442695, %v1536_v13 }
 0x9bd   : > { %2777 = vpow2.f32 %v1540_v14 }
 0x9be   : > { %2779 = vpow2.f32 %v1546_v16 }
 0x9c3   : > { %v2778_v17 = vpop.eup %2777 }
 0x9c4   : > { %1556 = vadd.xlane.f32.xlu2 %v2778_v17  ;;  %v1529_v18 = vpop.permute.xlu1 %1528  ;;  %v2780_v20 = vpop.eup %2779 }
 0x9c5   : > { %v1538_v19 = vsub.f32 %v3408_v38, %v1529_v18 }
 0x9c7   : > { %v1544_v21 = vmul.f32 1.442695, %v1538_v19 }
 0x9c9   : > { %2781 = vpow2.f32 %v1544_v21 }
 0x9cc   : > { %1562 = vadd.xlane.f32.xlu2 %v2780_v20 }
 0x9cf   : > { %v2782_v22 = vpop.eup %2781  ;;  %v1592_v43 = vpop.permute.xlu0 %1591 }
 0x9d0   : > { %1560 = vadd.xlane.f32.xlu1 %v2782_v22  ;;  %v1574_v23 = vpack.c.bf16 %v2780_v20, %v2782_v22  ;;  %v1601_v8 = vmul.f32 %v1592_v43, %v1577_v45 }
 0x9d2   : > { %1680 = vmatmul.bf16.vlgmr.msra.gmra.mxu2 %v1574_v23 }
 0x9d4   : > { %v1524_v24 = vpop.permute.xlu1 %1523 }
 0x9d5   : > { %v1537_v7 = vsub.f32 %v3403_v35, %v1524_v24  ;;  %v1550_v35 = vld [vmem:[#allocation5 + $0x10] sm:$0xff] }
 0x9d6   : > { %v1554_v40 = vmul.f32 %v3422_v54, %v1550_v35 }
 0x9d7   : > { %v1542_v25 = vmul.f32 1.442695, %v1537_v7 }
 0x9d9   : > { %2783 = vpow2.f32 %v1542_v25 }
 0x9dc   : > { %v1582_v29 = vpop.permute.xlu1 %1581 }
 0x9dd   : > { %v1599_v56 = vmul.f32 %v1582_v29, %v1575_v52 }
 0x9df   : > { %v2784_v26 = vpop.eup %2783 }
 0x9e0   : > { %1558 = vadd.xlane.f32.xlu0 %v2784_v26  ;;  %v1573_v28 = vpack.c.bf16 %v2784_v26, %v2778_v17 }
 0x9e2   : > { %1675 = vmatmul.bf16.vlgmr.msra.gmra.mxu1 %v1573_v28 }
 0x9e4   : > { %v1587_v31 = vpop.permute.xlu1 %1586 }
 0x9e5   : > { %v1600_v61 = vmul.f32 %v1587_v31, %v1576_v60 }
 0x9ec   : > { %v1597_v37 = vpop.permute.xlu1 %1596 }
 0x9ed   : > { %v1602_v53 = vmul.f32 %v1597_v37, %v1578_v51 }
 0xa37   : > { %v1557_v27 = vpop.xlane.xlu2 %1556 }
 0xa38   : > { %v1564_v33 = vadd.f32 %v1557_v27, %v1552_v32 }
 0xa3a   : > { %1569 = vst.msk [vmem:[#allocation5] sm:$0xff] %vm1568_vm10, %v1564_v33 }
 0xa3f   : > { %v1563_v38 = vpop.xlane.xlu2 %1562 }
 0xa40   : > { %v1567_v39 = vadd.f32 %v1563_v38, %v1555_v36 }
 0xa42   : > { %1572 = vst.msk [vmem:[#allocation5 + $0x18] sm:$0xff] %vm1568_vm10, %v1567_v39 }
 0xa43   : > { %v1561_v41 = vpop.xlane.xlu1 %1560 }
 0xa44   : > { %v1566_v42 = vadd.f32 %v1561_v41, %v1554_v40 }
 0xa46   : > { %1571 = vst.msk [vmem:[#allocation5 + $0x10] sm:$0xff] %vm1568_vm10, %v1566_v42 }
 0xa53   : > { %v1559_v47 = vpop.xlane.xlu0 %1558 }
 0xa54   : > { %v1565_v48 = vadd.f32 %v1559_v47, %v1553_v46 }
 0xa55   : > { %v1681_v49 = vpop.f32.mrf.mxu2 }
 0xa56   : > { %1570 = vst.msk [vmem:[#allocation5 + $0x8] sm:$0xff] %vm1568_vm10, %v1565_v48  ;;  %v1688_v50 = vadd.f32 %v1681_v49, %v1601_v8 }
 0xa58   : > { %1692 = vst.msk [vmem:[#allocation6 + $0x10] sm:$0xff] %vm1412_vm2, %v1688_v50 }
 0xa5d   : > { %v1683_v54 = vpop.f32.mrf.mxu2 }
 0xa5e   : > { %v1689_v57 = vadd.f32 %v1683_v54, %v1602_v53 }
 0xa5f   : > { %v1676_v58 = vpop.f32.mrf.mxu1 }
 0xa60   : > { %1693 = vst.msk [vmem:[#allocation6 + $0x18] sm:$0xff] %vm1412_vm2, %v1689_v57  ;;  %v1686_v59 = vadd.f32 %v1676_v58, %v1599_v56 }
 0xa62   : > { %1690 = vst.msk [vmem:[#allocation6] sm:$0xff] %vm1412_vm2, %v1686_v59 }
 0xa66   : > { %1701 = sbr.rel (%p2489_p11) target bundleno = 4000 (0xfa0), region = 121 }
 0xa67   : > { %v1678_v62 = vpop.f32.mrf.mxu1 }
 0xa68   : > { %v1687_v63 = vadd.f32 %v1678_v62, %v1600_v61 }
 0xa6a   : > { %1691 = vst.msk [vmem:[#allocation6 + $0x8] sm:$0xff] %vm1412_vm2, %v1687_v63 }
 0xa6b   : > { %v2577_v0 = vld [vmem:[%s3698_s29 + $0x28] sm:$0xff]  ;;  %v2975_v2 = vmov 0   ;;  %v2576_v3 = vld [vmem:[%s3698_s29 + $0x20] sm:$0xff]  ;;  %v1706_v5 = vld [vmem:[#allocation5 + $0x18] sm:$0xff]  ;;  %vm1854_vm11 = vcmask 64512   ;;  %vm1856_vm1 = vcmask 130048  }
 0xa6c   : > { %v1705_v1 = vld [vmem:[#allocation5 + $0x10] sm:$0xff]  ;;  %2785 = vset.pattern.permute.xlu1 %v2975_v2  ;;  %v1704_v4 = vld [vmem:[#allocation5 + $0x8] sm:$0xff]  ;;  %2786 = vset.pattern.permute.xlu0 %v2975_v2  ;;  %2067 = vst.msk [vmem:[%s3232_s5 + $0x18] sm:$0xff] %vm1568_vm10, %v1706_v5  ;;  %v1703_v12 = vld [vmem:[#allocation5] sm:$0xff]  ;;  %vm1858_vm12 = vcmask 195584   ;;  %v2982_v57 = vmov 32.0  }
 0xa6d   : > { %2794 = vrcp.f32 %v1705_v1  ;;  %2066 = vst.msk [vmem:[%s3232_s5 + $0x10] sm:$0xff] %vm1568_vm10, %v1705_v1  ;;  %1800 = vrot.lane.b32.xlu0 %v2577_v0, %s2976_s13  ;;  %1769 = vmatpush.bf16.msra.mxu0 %v2577_v0  ;;  %v1713_v16 = vld [vmem:[#allocation6 + $0x10] sm:$0xff]  ;;  %v1714_v21 = vld [vmem:[#allocation6 + $0x18] sm:$0xff]  ;;  %v1711_v30 = vld [vmem:[#allocation6] sm:$0xff]  ;;  %vm2005_vm3 = vcmask 523264  }
 0xa6e   : > { %1798 = vrot.lane.b32.xlu2 %v2576_v3, %s2976_s13  ;;  %2065 = vst.msk [vmem:[%s3232_s5 + $0x8] sm:$0xff] %vm1568_vm10, %v1704_v4  ;;  %2796 = vrcp.f32 %v1706_v5  ;;  %v2579_v35 = vld [vmem:[%s3698_s29 + $0x38] sm:$0xff]  ;;  %v2578_v41 = vld [vmem:[%s3698_s29 + $0x30] sm:$0xff]  ;;  %v1702_v51 = vld [vmem:[#allocation2] sm:$0xff] }
 0xa6f   : > { %2798 = vrcp.f32 %v1704_v4  ;;  %2064 = vst.msk [vmem:[%s3232_s5] sm:$0xff] %vm1568_vm10, %v1703_v12  ;;  %s2979_s5 = smov 16   ;;  %v2787_v49 = vld [vmem:[%s3699_s10 + $0x3] ss:$0 sm:$0xff]  ;;  %v2581_v5 = vld [vmem:[%s3700_s8 + $0x8] sm:$0xff] }
 0xa70   : > { %2800 = vrcp.f32 %v1703_v12 }
 0xa71   : > { %1770 = vmatpush.bf16.msra.mxu0 %v2576_v3  ;;  %v1712_v25 = vld [vmem:[#allocation6 + $0x8] sm:$0xff]  ;;  %2802 = vrcp.f32 %v2982_v57 }
 0xa72   : > { %v2792_v57 = vld [vmem:[%s3699_s10 + $0x7] ss:$0 sm:$0xff] }
 0xa73   : > { %v2795_v6 = vpop.eup %2794 }
 0xa74   : > { %1727 = vperm.xlu1 %2785, %v2795_v6   ;;  %v2797_v9 = vpop.eup %2796  ;;  %v2580_v6 = vld [vmem:[%s3700_s8] sm:$0xff] }
 0xa75   : > { %1822 = vrot.lane.b32.xlu0 %v2577_v0, %s2977_s0  ;;  %v2799_v10 = vpop.eup %2798  ;;  %1889 = vmatpush.bf16.msrb.mxu0 %v2579_v35 }
 0xa76   : > { %1778 = vrot.lane.b32.xlu2 %v2577_v0, %s2978_s11  ;;  %v2801_v55 = vpop.eup %2800 }
 0xa77   : > { %v2803_v58 = vpop.eup %2802 }
 0xa78   : > { %v1903_v59 = vmul.f32 32.0, %v2803_v58  ;;  %vm1907_vm13 = vweird.f32 %v2803_v58 }
 0xa79   : > { %1890 = vmatpush.bf16.msrb.mxu0 %v2578_v41 }
 0xa7a   : > { %v1904_v60 = vsub.f32 1.0, %v1903_v59  ;;  %v2793_v59 = vld [vmem:[%s3699_s10 + $0x8] ss:$0 sm:$0xff] }
 0xa7c   : > { %1732 = vperm.xlu1 %2785, %v2797_v9   ;;  %v1905_v61 = vmul.f32 %v2803_v58, %v1904_v60 }
 0xa7d   : > { %1820 = vrot.lane.b32.xlu0 %v2576_v3, %s2977_s0  ;;  %s3702_s0 = sld [smem:[#allocation38_spill]] }
 0xa7e   : > { %1776 = vrot.lane.b32.xlu2 %v2576_v3, %s2978_s11  ;;  %v1906_v62 = vadd.f32 %v2803_v58, %v1905_v61 }
 0xa80   : > { %v3480_v63 = vsel %vm1907_vm13, %v2803_v58, %v1906_v62 }
 0xa84   : > { %1722 = vperm.xlu1 %2785, %v2799_v10  }
 0xa85   : > { %1717 = vperm.xlu0 %2786, %v2801_v55  }
 0xac8   : > { %v1799_v11 = vpop.permute.xlu2 %1798 }
 0xad0   : > { %v1779_v13 = vpop.permute.xlu2 %1778 }
 0xad1   : > { %1791 = vmatpush.bf16.msra.mxu1 %v1779_v13 }
 0xad8   : > { %v1777_v14 = vpop.permute.xlu2 %1776 }
 0xad9   : > { %1792 = vmatpush.bf16.msra.mxu1 %v1777_v14 }
 0xadd   : > { %1962 = vmatpush.bf16.msrb.mxu1 %v2581_v5 }
 0xadf   : > { %v1801_v15 = vpop.permute.xlu0 %1800 }
 0xae0   : > { %1813 = vmatpush.bf16.msra.mxu2 %v1801_v15 }
 0xae1   : > { %1963 = vmatpush.bf16.msrb.mxu1 %v2580_v6 }
 0xae4   : > { %1814 = vmatpush.bf16.msra.mxu2 %v1799_v11 }
 0xae6   : > { %v1728_v17 = vpop.permute.xlu1 %1727 }
 0xae7   : > { %v1737_v18 = vmul.f32 %v1728_v17, %v1713_v16  ;;  %v1823_v19 = vpop.permute.xlu0 %1822 }
 0xae8   : > { %1835 = vmatpush.bf16.msra.mxu3 %v1823_v19 }
 0xae9   : > { %v1741_v20 = vpack.c.bf16 %v1737_v18, %v1737_v18 }
 0xaeb   : > { %2504 = vmatmul.msk.bf16.vlgmr.msra.gmra.mxu2 %vm1412_vm2, %v1741_v20  ;;  %v2788_v20 = vld [vmem:[%s3699_s10 + $0x4] ss:$0 sm:$0xff] }
 0xaee   : > { %v1733_v22 = vpop.permute.xlu1 %1732 }
 0xaef   : > { %v1738_v23 = vmul.f32 %v1733_v22, %v1714_v21  ;;  %v1821_v24 = vpop.permute.xlu0 %1820 }
 0xaf0   : > { %1836 = vmatpush.bf16.msra.mxu3 %v1821_v24 }
 0xaf1   : > { %v1742_v7 = vpack.c.bf16 %v1738_v23, %v1738_v23  ;;  %v2789_v23 = vld [vmem:[%s3699_s10 + $0x5] ss:$0 sm:$0xff] }
 0xaf3   : > { %2505 = vmatmul.msk.bf16.vlgmr.msra.gmra.mxu3 %vm1412_vm2, %v1742_v7 }
 0xaf6   : > { %v1723_v26 = vpop.permute.xlu1 %1722 }
 0xaf7   : > { %v1736_v28 = vmul.f32 %v1723_v26, %v1712_v25  ;;  %v1718_v31 = vpop.permute.xlu0 %1717 }
 0xaf8   : > { %v1735_v32 = vmul.f32 %v1718_v31, %v1711_v30 }
 0xaf9   : > { %v1740_v29 = vpack.c.bf16 %v1736_v28, %v1736_v28  ;;  %v2790_v28 = vld [vmem:[%s3702_s0] ss:$0 sm:$0xff] }
 0xafa   : > { %v1739_v27 = vpack.c.bf16 %v1735_v32, %v1735_v32 }
 0xafb   : > { %2503 = vmatmul.msk.bf16.vlgmr.msra.gmra.mxu1 %vm1412_vm2, %v1740_v29 }
 0xafc   : > { %2502 = vmatmul.msk.bf16.vlgmr.msra.gmra.mxu0 %vm1412_vm2, %v1739_v27 }
 0xb6e   : > { %v1816_v33 = vpop.f32.mrf.mxu2 }
 0xb6f   : > { %1847 = vrot.lane.b32.xlu2 %v1816_v33, %s2979_s5  ;;  %s3701_s5 = sld [smem:[#allocation39_spill]]  ;;  %v2791_v33 = vld [vmem:[%s3699_s10 + $0x6] ss:$0 sm:$0xff] }
 0xb75   : > { %v2585_v9 = vld [vmem:[%s3701_s5 + $0x18] sm:$0xff]  ;;  %v2584_v12 = vld [vmem:[%s3701_s5 + $0x10] sm:$0xff]  ;;  %v2583_v55 = vld [vmem:[%s3701_s5 + $0x8] sm:$0xff] }
 0xb76   : > { %v1818_v34 = vpop.f32.mrf.mxu2  ;;  %v1838_v36 = vpop.f32.mrf.mxu3  ;;  %2013 = vmatpush.bf16.msrb.mxu2 %v2585_v9  ;;  %v2582_v26 = vld [vmem:[%s3701_s5] sm:$0xff] }
 0xb78   : > { %v1794_v37 = vpop.f32.mrf.mxu1 }
 0xb79   : > { %1843 = vrot.lane.b32.xlu1 %v1794_v37, %s2980_s26  ;;  %v1772_v40 = vpop.f32.mrf.mxu0 }
 0xb7a   : > { %2014 = vmatpush.bf16.msrb.mxu2 %v2584_v12 }
 0xb7e   : > { %v1840_v38 = vpop.f32.mrf.mxu3  ;;  %2015 = vmatpush.bf16.msrb.mxu2 %v2583_v55 }
 0xb80   : > { %v1796_v39 = vpop.f32.mrf.mxu1 }
 0xb81   : > { %1851 = vrot.lane.b32.xlu1 %v1838_v36, %s2981_s7  ;;  %v1774_v42 = vpop.f32.mrf.mxu0 }
 0xb82   : > { %2016 = vmatpush.bf16.msrb.mxu2 %v2582_v26 }
 0xbc9   : > { %v1848_v45 = vpop.permute.xlu2 %1847 }
 0xbeb   : > { %v1844_v43 = vpop.permute.xlu1 %1843 }
 0xbec   : > { %v1855_v44 = vsel %vm1854_vm11, %v1772_v40, %v1844_v43 }
 0xbed   : > { %v1857_v47 = vsel %vm1856_vm1, %v1855_v44, %v1848_v45  ;;  %v2052_v44 = vld [vmem:[#allocation4] sm:$0xff]  ;;  %v2053_v45 = vld [vmem:[#allocation4 + $0x8] sm:$0xff] }
 0xbee   : > { %2056 = vst.msk [vmem:[%s3217_s22] sm:$0xff] %vm1568_vm10, %v2052_v44 }
 0xbef   : > { %2057 = vst.msk [vmem:[%s3217_s22 + $0x8] sm:$0xff] %vm1568_vm10, %v2053_v45 }
 0xbf3   : > { %v1852_v46 = vpop.permute.xlu1 %1851 }
 0xbf4   : > { %v1859_v8 = vsel %vm1858_vm12, %v1857_v47, %v1852_v46  ;;  %v2054_v46 = vld [vmem:[#allocation4 + $0x10] sm:$0xff]  ;;  %v2055_v47 = vld [vmem:[#allocation4 + $0x18] sm:$0xff] }
 0xbf5   : > { %v1860_v48 = vpack.c.bf16 %v1859_v8, %v1859_v8  ;;  %2058 = vst.msk [vmem:[%s3217_s22 + $0x10] sm:$0xff] %vm1568_vm10, %v2054_v46 }
 0xbf6   : > { %2059 = vst.msk [vmem:[%s3217_s22 + $0x18] sm:$0xff] %vm1568_vm10, %v2055_v47 }
 0xbf7   : > { %2518 = vmatmul.msk.bf16.vlgmr.msrb.gmra.mxu0 %vm1412_vm2, %v1860_v48 }
 0xc74   : > { %v1892_v50 = vpop.f32.mrf.mxu0 }
 0xc75   : > { %v1893_v52 = vadd.f32 %v2787_v49, %v1892_v50 }
 0xc77   : > { %v1896_v53 = vadd.f32 %v1893_v52, %v1702_v51 }
 0xc79   : > { %v1899_v54 = vsel %vm1412_vm2, %v1896_v53, 0.0 }
 0xc7a   : > { %1900 = vadd.xlane.f32.xlu2 %v1899_v54 }
 0xc7c   : > { %v1894_v56 = vpop.f32.mrf.mxu0 }
 0xced   : > { %v1901_v0 = vpop.xlane.xlu2 %1900 }
 0xcee   : > { %v1909_v1 = vmul.f32 %v3480_v63, %v1901_v0 }
 0xcf0   : > { %v1910_v2 = vsub.f32 %v1896_v53, %v1909_v1 }
 0xcf2   : > { %v1911_v3 = vmul.f32 %v1910_v2, %v1910_v2 }
 0xcf4   : > { %v1912_v4 = vsel %vm1412_vm2, %v1911_v3, 0.0 }
 0xcf5   : > { %1913 = vadd.xlane.f32.xlu0 %v1912_v4 }
 0xd68   : > { %v1914_v10 = vpop.xlane.xlu0 %1913 }
 0xd69   : > { %v1915_v11 = vmul.f32 %v1914_v10, %v3480_v63 }
 0xd6b   : > { %v1916_v13 = vadd.f32 1e-05, %v1915_v11 }
 0xd6d   : > { %2804 = vrsqrt.f32 %v1916_v13  ;;  %vm1923_vm15 = vweird.f32 %v1916_v13 }
 0xd73   : > { %v2805_v14 = vpop.eup %2804 }
 0xd74   : > { %v1918_v15 = vmul.f32 %v2805_v14, %v1916_v13  ;;  %vm1924_vm14 = vweird.f32 %v2805_v14 }
 0xd75   : > { %vm1925_vm0 = vmor %vm1923_vm15, %vm1924_vm14 }
 0xd76   : > { %v1919_v16 = vmul.f32 %v2805_v14, %v1918_v15 }
 0xd78   : > { %v1920_v17 = vmul.f32 0.5, %v1919_v16 }
 0xd7a   : > { %v1921_v18 = vsub.f32 1.5, %v1920_v17 }
 0xd7c   : > { %v1922_v19 = vmul.f32 %v2805_v14, %v1921_v18 }
 0xd7e   : > { %v1926_v21 = vsel %vm1925_vm0, %v2805_v14, %v1922_v19 }
 0xd7f   : > { %v1927_v22 = vmul.f32 %v1926_v21, %v1910_v2 }
 0xd81   : > { %v1929_v24 = vmul.f32 %v2788_v20, %v1927_v22 }
 0xd83   : > { %v1931_v7 = vadd.f32 %v2789_v23, %v1929_v24 }
 0xd85   : > { %v1932_v25 = vpack.c.bf16 %v1931_v7, %v1931_v7 }
 0xd87   : > { %2527 = vmatmul.msk.bf16.vlgmr.msrb.gmra.mxu1 %vm1412_vm2, %v1932_v25 }
 0xe04   : > { %v1965_v29 = vpop.f32.mrf.mxu1 }
 0xe05   : > { %v1966_v30 = vadd.f32 %v2790_v28, %v1965_v29 }
 0xe07   : > { %v1969_v31 = vmax.f32 %v1966_v30, 0.0 }
 0xe09   : > { %v1970_v32 = vpack.c.bf16 %v1969_v31, %v1969_v31 }
 0xe0b   : > { %2544 = vmatmul.msk.bf16.vlgmr.msrb.gmra.mxu2 %vm2005_vm3, %v1970_v32 }
 0xe0c   : > { %v1967_v27 = vpop.f32.mrf.mxu1 }
 0xe8e   : > { %v2018_v34 = vpop.f32.mrf.mxu2 }
 0xe8f   : > { %v2019_v36 = vadd.f32 %v2791_v33, %v2018_v34 }
 0xe91   : > { %v2022_v37 = vadd.f32 %v2019_v36, %v1931_v7 }
 0xe93   : > { %v2025_v38 = vsel %vm1412_vm2, %v2022_v37, 0.0 }
 0xe94   : > { %2026 = vadd.xlane.f32.xlu1 %v2025_v38 }
 0xe96   : > { %v2020_v39 = vpop.f32.mrf.mxu2 }
 0xf07   : > { %v2027_v35 = vpop.xlane.xlu1 %2026 }
 0xf08   : > { %v2028_v40 = vmul.f32 %v2027_v35, %v3480_v63 }
 0xf0a   : > { %v2029_v41 = vsub.f32 %v2022_v37, %v2028_v40 }
 0xf0c   : > { %v2030_v42 = vmul.f32 %v2029_v41, %v2029_v41 }
 0xf0e   : > { %v2031_v43 = vsel %vm1412_vm2, %v2030_v42, 0.0 }
 0xf0f   : > { %2032 = vadd.xlane.f32.xlu2 %v2031_v43 }
 0xf82   : > { %v2033_v8 = vpop.xlane.xlu2 %2032 }
 0xf83   : > { %v2034_v48 = vmul.f32 %v2033_v8, %v3480_v63 }
 0xf85   : > { %v2035_v49 = vadd.f32 1e-05, %v2034_v48 }
 0xf87   : > { %2806 = vrsqrt.f32 %v2035_v49  ;;  %vm2042_vm5 = vweird.f32 %v2035_v49 }
 0xf8d   : > { %v2807_v50 = vpop.eup %2806 }
 0xf8e   : > { %v2037_v51 = vmul.f32 %v2807_v50, %v2035_v49  ;;  %vm2043_vm4 = vweird.f32 %v2807_v50 }
 0xf8f   : > { %vm2044_vm6 = vmor %vm2042_vm5, %vm2043_vm4 }
 0xf90   : > { %v2038_v52 = vmul.f32 %v2807_v50, %v2037_v51 }
 0xf92   : > { %v2039_v53 = vmul.f32 0.5, %v2038_v52 }
 0xf94   : > { %v2040_v54 = vsub.f32 1.5, %v2039_v53 }
 0xf96   : > { %v2041_v56 = vmul.f32 %v2807_v50, %v2040_v54 }
 0xf98   : > { %v2045_v58 = vsel %vm2044_vm6, %v2807_v50, %v2041_v56 }
 0xf99   : > { %v2046_v60 = vmul.f32 %v2045_v58, %v2029_v41 }
 0xf9b   : > { %v2048_v61 = vmul.f32 %v2792_v57, %v2046_v60 }
 0xf9d   : > { %v2050_v62 = vadd.f32 %v2793_v59, %v2048_v61 }
 0xf9f   : > { %2051 = vst.msk [vmem:[%s661_s21] sm:$0xff] %vm1412_vm2, %v2050_v62 }
 0xfa0 PF: > { %s2547_s12 = sshll.u32 %s2946_s28, 3  ;;  %s3704_s24 = sld [smem:[#allocation40_spill]] }
 0xfa1   : > { %s2096_s25 = sshll.u32 %s661_s21, 4  ;;  %s2108_s0 = sadd.s32 %s2942_s27, %s2547_s12  ;;  %s2097_s25 = int_to_ptr.vmem [resolvable:$true] %s2096_s25 }
 0xfa2   : > { %s3706_s11 = sand.u32 1, %s2926_s23  }
 0xfa3   : > { %s2069_s26 = scalar_lea.sflag [#allocation9], %s3706_s11 }
 0xfa6   : > { %s3705_s13 = smov %s3704_s24  ;;  %s2094_s29 = scalar_lea.hbm %s3704_s24, %s2547_s12 }
 0xfa7   : > { %s2098_s10 = sshll.u32 %s2094_s29, 4  ;;  %s2828_s9 = scalar_lea.hbm %s3705_s13, 16  ;;  %s2099_s10 = int_to_ptr.hbm [resolvable:$true] %s2098_s10 }
 0xfa8   : > { %s2822_s7 = sshra.s32 %s2099_s10, 4  ;;  %s2823_s7 = int_to_ptr.hbm [resolvable:$true] %s2822_s7 }
 0xfa9   : > { %s2824_s18 = scalar_lea.hbm %s2823_s7, 8  ;;  %p2829_p3 = scmp.lt.s32.totalorder %s2823_s7, %s3705_s13 }
 0xfaa   : > { %p2825_p0 = scmp.ne.s32.totalorder %s2823_s7, %s2824_s18  ;;  %p2830_p5 = scmp.lt.s32.totalorder %s2828_s9, %s2824_s18 }
 0xfac   : > { %p2826_p4 = pnand %p2825_p0, %p3151_p7  ;;  %p2831_p6 = por %p2830_p5, %p2829_p3 }
 0xfae   : > { %p2827_p1 = pneg %p2826_p4 }
 0xfb0   : > { %p2832_p8 = pnand %p2831_p6, %p2827_p1 }
 0xfb2   : > { %2835 = shalt.err (!%p2832_p8)
}
 0xfb3   : > { %s3707_s27 = sld [smem:[#allocation17_spill]]  ;;  %s2549_s12 = sshll.u32 %s2108_s0, 2 }
 0xfb4   : > { %2605 = dma.vmem_to_hbm [thread:$0]  (%p3151_p7), %s2097_s25, 128, %s2099_s10, %s2069_s26  }
 0xfb5   : > { %s3709_s29 = sld [smem:[#allocation41_spill]]  ;;  %s2111_s22 = sshll.u32 %s3237_s19, 4  ;;  %s2112_s22 = int_to_ptr.vmem [resolvable:$true] %s2111_s22 }
 0xfb9   : > { %s3711_s7 = sand.u32 1, %s3707_s27  }
 0xfba   : > { %s2074_s18 = scalar_lea.sflag [#allocation11], %s3711_s7 }
 0xfbb   : > { %s3710_s11 = smov %s3709_s29  ;;  %s2110_s28 = scalar_lea.hbm %s3709_s29, %s2549_s12 }
 0xfbc   : > { %s2113_s1 = sshll.u32 %s2110_s28, 4  ;;  %s2856_s10 = scalar_lea.hbm %s3710_s11, 64  ;;  %s2114_s1 = int_to_ptr.hbm [resolvable:$true] %s2113_s1 }
 0xfbd   : > { %s2850_s9 = sshra.s32 %s2114_s1, 4  ;;  %s2851_s9 = int_to_ptr.hbm [resolvable:$true] %s2850_s9 }
 0xfbe   : > { %s2852_s14 = scalar_lea.hbm %s2851_s9, 16  ;;  %p2857_p7 = scmp.lt.s32.totalorder %s2851_s9, %s3710_s11 }
 0xfbf   : > { %p2853_p9 = scmp.ne.s32.totalorder %s2851_s9, %s2852_s14  ;;  %p2858_p0 = scmp.lt.s32.totalorder %s2856_s10, %s2852_s14 }
 0xfc1   : > { %p2854_p10 = pnand %p2853_p9, %p3172_p13  ;;  %p2859_p4 = por %p2858_p0, %p2857_p7 }
 0xfc3   : > { %p2855_p11 = pneg %p2854_p10 }
 0xfc5   : > { %p2860_p1 = pnand %p2859_p4, %p2855_p11 }
 0xfc7   : > { %2863 = shalt.err (!%p2860_p1)
}
 0xfc8   : > { %s2983_s19 = smov 64   ;;  %s2984_s17 = smov 128  }
 0xfc9   : > { %s2985_s27 = smov 4  }
 0xfca   : > { %2606 = dma.vmem_to_hbm [thread:$0]  (%p3172_p13), %s2112_s22, 256, %s2114_s1, %s2074_s18, %s2983_s19, %s2984_s17, %s2985_s27  }
 0xfcb PF: > { %s3712_s12 = sld [smem:[#allocation21_spill]] }
 0xfcc   : > { %s3713_s2 = sld [smem:[#allocation15_spill]] }
 0xfd1   : > { %p2616_p3 = scmp.ge.s32.totalorder %s3712_s12, 2 }
 0xfd2   : > { %s2134_s29 = sand.u32 1, %s3713_s2  }
 0xfd3   : > { %p2610_p5 = pnand %p2616_p3, %p3159_p12  ;;  %s2135_s28 = scalar_lea.sflag [#allocation9], %s2134_s29 }
 0xfd5   : > { %p2611_p6 = pneg %p2610_p5 }
 0xfd7   : > { %2909 = dma.done.wait (%p2611_p6), %s2135_s28, 128  }
 0xfd8   : > { %2911 = vsyncadd (%p2611_p6), %s2135_s28, 4294967168  ;;  %s3715_s7 = sld [smem:[#allocation14_spill]]  ;;  %p2613_p8 = pnand %p2616_p3, %p3178_p2 }
 0xfda   : > { %p2614_p9 = pneg %p2613_p8 }
 0xfde   : > { %s2144_s14 = sand.u32 1, %s3715_s7  }
 0xfdf   : > { %s2145_s21 = scalar_lea.sflag [#allocation11], %s2144_s14 }
 0xfe0   : > { %2913 = dma.done.wait (%p2614_p9), %s2145_s21, 256  }
 0xfe1   : > { %2915 = vsyncadd (%p2614_p9), %s2145_s21, 4294967040  ;;  %s33_s0 = sadd.s32 1, %s3712_s12   ;;  %s3717_s21 = sld [smem:[#allocation17_spill]] }
 0xfe2   : > { %p30_p13 = scmp.ge.s32.totalorder %s33_s0, 6   ;;  %s3718_s1 = sld [smem:[#allocation16_spill]] }
 0xfe3   : > { %s3719_s24 = sld [smem:[#allocation26_spill]]  ;;  %s3726_s22 = smov %s2926_s23 }
 0xfe4   : > { %s3720_s25 = sld [smem:[#allocation18_spill]] }
 0xfe5   : > { %s3721_s26 = sld [smem:[#allocation27_spill]]  ;;  %32 = sbr.rel (!%p30_p13) target bundleno = 22 (0x16), region = 220 }
 0xfe6   : > { %s3722_s27 = sld [smem:[#allocation19_spill]] }
 0xfe7   : > { %s3723_s28 = sld [smem:[#allocation20_spill]] }
 0xfe8   : > { %s3724_s29 = sld [smem:[#allocation22_spill]]  ;;  %s3727_s23 = smov %s3718_s1 }
 0xfe9   : > { %s3725_s30 = sld [smem:[#allocation23_spill]] }
 0xfea   :  { %2167 = vsyncpa [#allocation9], 1 }
 0xfeb   :  { %2169 = vsyncpa [#allocation9 + $0x1], 1 }
 0xfec   :  { %2170 = vsyncpa [#allocation11], 1 }
 0xfed   :  { %2172 = vsyncpa [#allocation11 + $0x1], 1 }

</bundles_post_ra>
